<compile_context>
chip_gen: v7x
topology: tpu7x:2x2x1
jax: 0.10.0
libtpu: 0.0.40
codegen_flags: <defaults>
</compile_context>

<pallas_src>
import functools

import jax
import jax.numpy as jnp
from jax.experimental import pallas as pl
from jax.experimental.pallas import tpu as pltpu


def autopad(k, p=None):
    if p is None:
        p = k // 2 if isinstance(k, int) else [x // 2 for x in k]
    return p


def _round_up(x, m):
    return (x + m - 1) // m * m


# ------------------------------ Pallas kernels --------------------------------
def _gather_taps(x_ref, *, k, s, th, wo, row0):
    """k*k shifted (th, wo, C1) slices of the resident padded plane (implicit im2col)."""
    taps = []
    for di in range(k):
        for dj in range(k):
            if s == 1:
                xs = x_ref[0, pl.ds(row0 + di, th), pl.ds(dj, wo), :]
            else:
                # TODO(synk): s>1 issues sublane-strided loads per tap; a space-to-depth
                # pre-pack in the wrapper would keep these unit-stride.
                xs = x_ref[0, pl.ds(row0 + di, th, stride=s),
                           pl.ds(dj, wo, stride=s), :]
            taps.append(xs)
    return taps


def _epilogue(acc, shift_ref, o_ref, th, wo, tn):
    y = acc + shift_ref[...]          # BN shift (scale already folded into weights), f32
    y = y * jax.nn.sigmoid(y)         # SiLU, f32 epilogue
    o_ref[...] = y.reshape(1, th, wo, tn).astype(o_ref.dtype)


def _conv_kernel_fused(x_ref, w_ref, shift_ref, o_ref, *, k, s, th, wo):
    # x_ref:     (1, Hp, Wp, C1)    padded NHWC plane of one image (resident)
    # w_ref:     (k*k*C1, TN)       BN-scale-folded weights, one output-channel tile
    # shift_ref: (1, TN)            f32 BN shift
    # o_ref:     (1, th, wo, TN)    lane-dense output tile
    r = pl.program_id(2)
    c1 = x_ref.shape[3]
    tn = o_ref.shape[3]
    row0 = r * (th * s)

    taps = _gather_taps(x_ref, k=k, s=s, th=th, wo=wo, row0=row0)
    lhs = taps[0] if len(taps) == 1 else jnp.concatenate(taps, axis=-1)
    lhs = lhs.reshape(th * wo, k * k * c1)
    # single MXU matmul, K = k*k*C1; bf16 operands, f32 accumulation inside the MXU
    acc = jnp.dot(lhs, w_ref[...], preferred_element_type=jnp.float32)
    _epilogue(acc, shift_ref, o_ref, th, wo, tn)


def _conv_kernel_pertap(x_ref, w_ref, shift_ref, o_ref, *, k, s, th, wo):
    # Fallback variant: per-tap dots (w_ref: (k*k, C1, TN)), acc seeded by the first dot.
    r = pl.program_id(2)
    c1 = x_ref.shape[3]
    tn = o_ref.shape[3]
    row0 = r * (th * s)

    taps = _gather_taps(x_ref, k=k, s=s, th=th, wo=wo, row0=row0)
    acc = None
    for t, xs in enumerate(taps):
        part = jnp.dot(xs.reshape(th * wo, c1), w_ref[t],
                       preferred_element_type=jnp.float32)
        acc = part if acc is None else acc + part
    _epilogue(acc, shift_ref, o_ref, th, wo, tn)


# ------------------------------- wrapper --------------------------------------
def conv_bn_silu(x_nchw, weight, gamma, beta, running_mean, running_var,
                 *, k=1, s=1, p=None, eps=1e-3,
                 compute_dtype=jnp.bfloat16, block_rows=None, block_cout=None):
    """Equivalent of Conv.forward(x) with the PyTorch module in eval mode (g=1, SiLU).

    compute_dtype: MXU operand / padded-output storage dtype (bf16 default, f32 optional).
    """
    # TODO(synk): grouped conv (g > 1) is not implemented; the module default is g=1.
    p = autopad(k, p)
    c2, c1, kh, kw = weight.shape
    assert kh == k and kw == k
    N, C1, H, W = x_nchw.shape
    assert C1 == c1

    Ho = (H + 2 * p - k) // s + 1
    Wo = (W + 2 * p - k) // s + 1

    # output-channel tiling: lane-dense 128 minimum; 256 fills the 2x256 MXU (v6e/v7x)
    if block_cout is None:
        block_cout = 128 if c2 <= 128 else 256
    tn = _round_up(block_cout, 128)
    c2p = _round_up(c2, tn)
    nc = c2p // tn

    # ~512 matmul rows per grid step (mem-bound sweet spot), never more than Ho
    if block_rows is None:
        th = max(1, min(Ho, max(1, 512 // max(Wo, 1))))
    else:
        th = max(1, min(Ho, block_rows))
    nr = -(-Ho // th)                               # cdiv; ragged last tile is padded

    # NCHW -> NHWC, spatial zero-pad; extra bottom rows so the last (possibly ragged)
    # row tile's k x k window stays in bounds.
    x_nhwc = jnp.transpose(x_nchw, (0, 2, 3, 1))
    hp_needed = (nr * th - 1) * s + k
    extra = max(0, hp_needed - (H + 2 * p))
    x_pad = jnp.pad(x_nhwc, ((0, 0), (p, p + extra), (p, p), (0, 0)))
    x_pad = x_pad.astype(compute_dtype)
    hp, wp = x_pad.shape[1], x_pad.shape[2]

    # fold BN scale into the conv weight (compute_dtype operands, f32 shift); pad C2
    inv_std = gamma / jnp.sqrt(running_var + eps)
    w_hwio = jnp.transpose(weight * inv_std[:, None, None, None], (2, 3, 1, 0))
    w_hwio = jnp.pad(w_hwio, ((0, 0), (0, 0), (0, 0), (0, c2p - c2)))
    w_hwio = w_hwio.astype(compute_dtype)
    shift = jnp.pad(beta - running_mean * inv_std, (0, c2p - c2))
    shift = shift.reshape(1, c2p).astype(jnp.float32)

    store_dtype = compute_dtype        # halve padded-output HBM writes; final cast below
    kc = k * k * c1

    # explicit VMEM budget (raise-only relative to the scoped default)
    in_b = jnp.dtype(compute_dtype).itemsize
    out_b = jnp.dtype(store_dtype).itemsize
    need = (2 * hp * wp * c1 * in_b               # resident plane (<=2 buffers)
            + 2 * kc * tn * in_b                  # weight tile
            + 2 * tn * 4                          # shift
            + 2 * th * Wo * tn * out_b            # output tile
            + th * Wo * (kc * in_b + tn * 4))     # im2col LHS + f32 accumulator
    vmem_limit = min(128 << 20, max(32 << 20, int(need * 1.25) + (4 << 20)))

    def _run(fused, buffered):
        if fused:
            kern = functools.partial(_conv_kernel_fused, k=k, s=s, th=th, wo=Wo)
            w_arg = w_hwio.reshape(kc, c2p)
            w_block, w_map = (kc, tn), (lambda n, c, r: (0, c))
        else:
            kern = functools.partial(_conv_kernel_pertap, k=k, s=s, th=th, wo=Wo)
            w_arg = w_hwio.reshape(k * k, c1, c2p)
            w_block, w_map = (k * k, c1, tn), (lambda n, c, r: (0, 0, c))

        def in_spec(shape, imap):
            if buffered:
                # inputs are resident / reused across the inner grid axes -> 1 buffer
                return pl.BlockSpec(shape, imap, pipeline_mode=pl.Buffered(1))
            return pl.BlockSpec(shape, imap)

        return pl.pallas_call(
            kern,
            out_shape=jax.ShapeDtypeStruct((N, nr * th, Wo, c2p), store_dtype),
            grid_spec=pltpu.PrefetchScalarGridSpec(
                num_scalar_prefetch=0,
                grid=(N, nc, nr),
                in_specs=[
                    in_spec((1, hp, wp, c1), lambda n, c, r: (n, 0, 0, 0)),
                    in_spec(w_block, w_map),
                    in_spec((1, tn), lambda n, c, r: (0, c)),
                ],
                out_specs=pl.BlockSpec((1, th, Wo, tn),
                                       lambda n, c, r: (n, r, 0, c)),
            ),
            compiler_params=pltpu.CompilerParams(
                # every (n, c, r) writes a distinct output block -> fully parallel,
                # keeps both v7x TensorCores busy even when N == 1
                dimension_semantics=("parallel", "parallel", "parallel"),
                vmem_limit_bytes=vmem_limit,
            ),
        )(x_pad, w_arg, shift)

    try:
        out = _run(fused=True, buffered=True)
    except Exception:
        # Conservative fallback (per-tap MXU accumulation, default double-buffering)
        # for jax/Mosaic builds without minor-dim concat or Buffered(1) support.
        out = _run(fused=False, buffered=False)

    out = out[:, :Ho, :, :c2]                       # drop row / channel padding
    return jnp.transpose(out, (0, 3, 1, 2)).astype(x_nchw.dtype)   # back to NCHW


# ------------------------------- reference ------------------------------------
def _reference(x_nchw, weight, gamma, beta, mean, var, *, k, s, p=None, eps=1e-3):
    p = autopad(k, p)
    y = jax.lax.conv_general_dilated(
        x_nchw, weight, window_strides=(s, s),
        padding=[(p, p), (p, p)],
        dimension_numbers=("NCHW", "OIHW", "NCHW"),
        precision=jax.lax.Precision.HIGHEST)
    scale = (gamma / jnp.sqrt(var + eps)).reshape(1, -1, 1, 1)
    shift = (beta - mean * gamma / jnp.sqrt(var + eps)).reshape(1, -1, 1, 1)
    y = y * scale + shift
    return y * jax.nn.sigmoid(y)


# --------------------------------- main ----------------------------------------
if __name__ == "__main__":
    key = jax.random.PRNGKey(0)
    kx, kw3, kw1, kg, kb, km, kv = jax.random.split(key, 7)

    # small shapes consistent with the module: Conv(c1=4, c2=8, ...)
    N, C1, H, W = 2, 4, 16, 16
    C2 = 8

    x = jax.random.normal(kx, (N, C1, H, W), dtype=jnp.float32)
    gamma = jax.random.normal(kg, (C2,), dtype=jnp.float32) * 0.1 + 1.0
    beta = jax.random.normal(kb, (C2,), dtype=jnp.float32) * 0.1
    running_mean = jax.random.normal(km, (C2,), dtype=jnp.float32) * 0.1
    running_var = jnp.abs(jax.random.normal(kv, (C2,), dtype=jnp.float32)) * 0.5 + 0.5

    # bf16 operands / f32 accumulation vs f32 HIGHEST reference -> relaxed tolerance
    TOL = dict(atol=2e-2, rtol=2e-2)

    # config 1: k=3, s=1 (typical CSP conv)
    w3 = jax.random.normal(kw3, (C2, C1, 3, 3), dtype=jnp.float32) * 0.1
    out3 = jax.block_until_ready(
        conv_bn_silu(x, w3, gamma, beta, running_mean, running_var, k=3, s=1))
    ref3 = _reference(x, w3, gamma, beta, running_mean, running_var, k=3, s=1)
    assert out3.shape == (N, C2, H, W), out3.shape
    assert jnp.allclose(out3, ref3, **TOL), float(jnp.max(jnp.abs(out3 - ref3)))

    # config 2: k=1, s=1 (module defaults)
    w1 = jax.random.normal(kw1, (C2, C1, 1, 1), dtype=jnp.float32) * 0.1
    out1 = jax.block_until_ready(
        conv_bn_silu(x, w1, gamma, beta, running_mean, running_var, k=1, s=1))
    ref1 = _reference(x, w1, gamma, beta, running_mean, running_var, k=1, s=1)
    assert out1.shape == (N, C2, H, W), out1.shape
    assert jnp.allclose(out1, ref1, **TOL), float(jnp.max(jnp.abs(out1 - ref1)))

    print("KERNEL_OK")
</pallas_src>

<mosaic_0001>
module attributes {stable_mosaic.version = 11 : i64} {
  func.func @_conv_kernel_fused(%arg0: i32, %arg1: i32, %arg2: i32, %arg3: memref<1x18x18x4xbf16, #tpu.memory_space<vmem>>, %arg4: memref<36x128xbf16, #tpu.memory_space<vmem>>, %arg5: memref<1x128xf32, #tpu.memory_space<vmem>>, %arg6: memref<1x16x16x128xbf16, #tpu.memory_space<vmem>>) attributes {dimension_semantics = [#tpu.dimension_semantics<parallel>, #tpu.dimension_semantics<parallel>, #tpu.dimension_semantics<parallel>], iteration_bounds = array<i64: 2, 1, 1>, scalar_prefetch = 0 : i64, scratch_operands = 0 : i64, tpu.core_type = #tpu.core_type<tc>, window_params = [{pipeline_mode = #tpu.pipeline_mode<synchronous>, transform_indices = @transform_0, window_bounds = array<i64: 1, 18, 18, 4>}, {pipeline_mode = #tpu.pipeline_mode<synchronous>, transform_indices = @transform_1, window_bounds = array<i64: 36, 128>}, {pipeline_mode = #tpu.pipeline_mode<synchronous>, transform_indices = @transform_2, window_bounds = array<i64: 1, 128>}, {transform_indices = @transform_3, window_bounds = array<i64: 1, 16, 16, 128>}]} {
    %c16_i32 = arith.constant 16 : i32
    %0 = arith.muli %arg2, %c16_i32 : i32
    %c0_i32 = arith.constant 0 : i32
    %1 = arith.addi %0, %c0_i32 : i32
    %c0 = arith.constant 0 : index
    %2 = arith.index_cast %1 : i32 to index
    %c0_0 = arith.constant 0 : index
    %c0_1 = arith.constant 0 : index
    %3 = vector.load %arg3[%c0, %2, %c0_0, %c0_1] : memref<1x18x18x4xbf16, #tpu.memory_space<vmem>>, vector<1x16x16x4xbf16>
    %4 = vector.shape_cast %3 : vector<1x16x16x4xbf16> to vector<16x16x4xbf16>
    %c0_i32_2 = arith.constant 0 : i32
    %5 = arith.addi %0, %c0_i32_2 : i32
    %c0_3 = arith.constant 0 : index
    %6 = arith.index_cast %5 : i32 to index
    %c1 = arith.constant 1 : index
    %c0_4 = arith.constant 0 : index
    %7 = vector.load %arg3[%c0_3, %6, %c1, %c0_4] : memref<1x18x18x4xbf16, #tpu.memory_space<vmem>>, vector<1x16x16x4xbf16>
    %8 = vector.shape_cast %7 : vector<1x16x16x4xbf16> to vector<16x16x4xbf16>
    %c0_i32_5 = arith.constant 0 : i32
    %9 = arith.addi %0, %c0_i32_5 : i32
    %c0_6 = arith.constant 0 : index
    %10 = arith.index_cast %9 : i32 to index
    %c2 = arith.constant 2 : index
    %c0_7 = arith.constant 0 : index
    %11 = vector.load %arg3[%c0_6, %10, %c2, %c0_7] : memref<1x18x18x4xbf16, #tpu.memory_space<vmem>>, vector<1x16x16x4xbf16>
    %12 = vector.shape_cast %11 : vector<1x16x16x4xbf16> to vector<16x16x4xbf16>
    %c1_i32 = arith.constant 1 : i32
    %13 = arith.addi %0, %c1_i32 : i32
    %c0_8 = arith.constant 0 : index
    %14 = arith.index_cast %13 : i32 to index
    %c0_9 = arith.constant 0 : index
    %c0_10 = arith.constant 0 : index
    %15 = vector.load %arg3[%c0_8, %14, %c0_9, %c0_10] : memref<1x18x18x4xbf16, #tpu.memory_space<vmem>>, vector<1x16x16x4xbf16>
    %16 = vector.shape_cast %15 : vector<1x16x16x4xbf16> to vector<16x16x4xbf16>
    %c1_i32_11 = arith.constant 1 : i32
    %17 = arith.addi %0, %c1_i32_11 : i32
    %c0_12 = arith.constant 0 : index
    %18 = arith.index_cast %17 : i32 to index
    %c1_13 = arith.constant 1 : index
    %c0_14 = arith.constant 0 : index
    %19 = vector.load %arg3[%c0_12, %18, %c1_13, %c0_14] : memref<1x18x18x4xbf16, #tpu.memory_space<vmem>>, vector<1x16x16x4xbf16>
    %20 = vector.shape_cast %19 : vector<1x16x16x4xbf16> to vector<16x16x4xbf16>
    %c1_i32_15 = arith.constant 1 : i32
    %21 = arith.addi %0, %c1_i32_15 : i32
    %c0_16 = arith.constant 0 : index
    %22 = arith.index_cast %21 : i32 to index
    %c2_17 = arith.constant 2 : index
    %c0_18 = arith.constant 0 : index
    %23 = vector.load %arg3[%c0_16, %22, %c2_17, %c0_18] : memref<1x18x18x4xbf16, #tpu.memory_space<vmem>>, vector<1x16x16x4xbf16>
    %24 = vector.shape_cast %23 : vector<1x16x16x4xbf16> to vector<16x16x4xbf16>
    %c2_i32 = arith.constant 2 : i32
    %25 = arith.addi %0, %c2_i32 : i32
    %c0_19 = arith.constant 0 : index
    %26 = arith.index_cast %25 : i32 to index
    %c0_20 = arith.constant 0 : index
    %c0_21 = arith.constant 0 : index
    %27 = vector.load %arg3[%c0_19, %26, %c0_20, %c0_21] : memref<1x18x18x4xbf16, #tpu.memory_space<vmem>>, vector<1x16x16x4xbf16>
    %28 = vector.shape_cast %27 : vector<1x16x16x4xbf16> to vector<16x16x4xbf16>
    %c2_i32_22 = arith.constant 2 : i32
    %29 = arith.addi %0, %c2_i32_22 : i32
    %c0_23 = arith.constant 0 : index
    %30 = arith.index_cast %29 : i32 to index
    %c1_24 = arith.constant 1 : index
    %c0_25 = arith.constant 0 : index
    %31 = vector.load %arg3[%c0_23, %30, %c1_24, %c0_25] : memref<1x18x18x4xbf16, #tpu.memory_space<vmem>>, vector<1x16x16x4xbf16>
    %32 = vector.shape_cast %31 : vector<1x16x16x4xbf16> to vector<16x16x4xbf16>
    %c2_i32_26 = arith.constant 2 : i32
    %33 = arith.addi %0, %c2_i32_26 : i32
    %c0_27 = arith.constant 0 : index
    %34 = arith.index_cast %33 : i32 to index
    %c2_28 = arith.constant 2 : index
    %c0_29 = arith.constant 0 : index
    %35 = vector.load %arg3[%c0_27, %34, %c2_28, %c0_29] : memref<1x18x18x4xbf16, #tpu.memory_space<vmem>>, vector<1x16x16x4xbf16>
    %36 = vector.shape_cast %35 : vector<1x16x16x4xbf16> to vector<16x16x4xbf16>
    %37 = tpu.concatenate %4, %8, %12, %16, %20, %24, %28, %32, %36 in 2 : vector<16x16x4xbf16>, vector<16x16x4xbf16>, vector<16x16x4xbf16>, vector<16x16x4xbf16>, vector<16x16x4xbf16>, vector<16x16x4xbf16>, vector<16x16x4xbf16>, vector<16x16x4xbf16>, vector<16x16x4xbf16> -> vector<16x16x36xbf16>
    %38 = vector.shape_cast %37 : vector<16x16x36xbf16> to vector<256x36xbf16>
    %c0_30 = arith.constant 0 : index
    %c0_31 = arith.constant 0 : index
    %39 = vector.load %arg4[%c0_30, %c0_31] : memref<36x128xbf16, #tpu.memory_space<vmem>>, vector<36x128xbf16>
    %cst = arith.constant dense<0.000000e+00> : vector<256x128xf32>
    %40 = tpu.matmul %38, %39, %cst {dimension_numbers = #tpu.dot_dimension_numbers<[1], [0], [0], [1], [0, 0, 1, 1], [], []>} : vector<256x36xbf16>, vector<36x128xbf16>, vector<256x128xf32> -> vector<256x128xf32>
    %c0_32 = arith.constant 0 : index
    %c0_33 = arith.constant 0 : index
    %41 = vector.load %arg5[%c0_32, %c0_33] : memref<1x128xf32, #tpu.memory_space<vmem>>, vector<1x128xf32>
    %42 = vector.broadcast %41 : vector<1x128xf32> to vector<256x128xf32>
    %43 = arith.addf %40, %42 : vector<256x128xf32>
    %44 = arith.negf %43 : vector<256x128xf32>
    %45 = math.exp %44 : vector<256x128xf32>
    %cst_34 = arith.constant 1.000000e+00 : f32
    %46 = vector.broadcast %cst_34 : f32 to vector<256x128xf32>
    %47 = arith.addf %46, %45 : vector<256x128xf32>
    %48 = arith.divf %46, %47 : vector<256x128xf32>
    %49 = arith.mulf %43, %48 : vector<256x128xf32>
    %50 = vector.shape_cast %49 : vector<256x128xf32> to vector<1x16x16x128xf32>
    %51 = arith.truncf %50 : vector<1x16x16x128xf32> to vector<1x16x16x128xbf16>
    %c0_35 = arith.constant 0 : index
    %c0_36 = arith.constant 0 : index
    %c0_37 = arith.constant 0 : index
    %c0_38 = arith.constant 0 : index
    %52 = vector.load %arg6[%c0_35, %c0_36, %c0_37, %c0_38] : memref<1x16x16x128xbf16, #tpu.memory_space<vmem>>, vector<1x16x16x128xbf16>
    tpu.vector_store %arg6[%c0_35, %c0_36, %c0_37, %c0_38], %51 {strides = array<i32>} : memref<1x16x16x128xbf16, #tpu.memory_space<vmem>>, vector<1x16x16x128xbf16>,
    return
  }
  func.func @transform_0(%arg0: i32, %arg1: i32, %arg2: i32) -> (i32, i32, i32, i32) {
    %c0_i32 = arith.constant 0 : i32
    %c0_i32_0 = arith.constant 0 : i32
    %c0_i32_1 = arith.constant 0 : i32
    %c0_i32_2 = arith.constant 0 : i32
    return %arg0, %c0_i32, %c0_i32_0, %c0_i32_1 : i32, i32, i32, i32
  }
  func.func @transform_1(%arg0: i32, %arg1: i32, %arg2: i32) -> (i32, i32) {
    %c0_i32 = arith.constant 0 : i32
    %c0_i32_0 = arith.constant 0 : i32
    return %c0_i32, %arg1 : i32, i32
  }
  func.func @transform_2(%arg0: i32, %arg1: i32, %arg2: i32) -> (i32, i32) {
    %c0_i32 = arith.constant 0 : i32
    %c0_i32_0 = arith.constant 0 : i32
    return %c0_i32, %arg1 : i32, i32
  }
  func.func @transform_3(%arg0: i32, %arg1: i32, %arg2: i32) -> (i32, i32, i32, i32) {
    %c0_i32 = arith.constant 0 : i32
    %c0_i32_0 = arith.constant 0 : i32
    return %arg0, %arg2, %c0_i32, %arg1 : i32, i32, i32, i32
  }
}

module attributes {stable_mosaic.version = 11 : i64} {
  func.func @_conv_kernel_pertap(%arg0: i32, %arg1: i32, %arg2: i32, %arg3: memref<1x18x18x4xbf16, #tpu.memory_space<vmem>>, %arg4: memref<9x4x128xbf16, #tpu.memory_space<vmem>>, %arg5: memref<1x128xf32, #tpu.memory_space<vmem>>, %arg6: memref<1x16x16x128xbf16, #tpu.memory_space<vmem>>) attributes {dimension_semantics = [#tpu.dimension_semantics<parallel>, #tpu.dimension_semantics<parallel>, #tpu.dimension_semantics<parallel>], iteration_bounds = array<i64: 2, 1, 1>, scalar_prefetch = 0 : i64, scratch_operands = 0 : i64, tpu.core_type = #tpu.core_type<tc>, window_params = [{transform_indices = @transform_0, window_bounds = array<i64: 1, 18, 18, 4>}, {transform_indices = @transform_1, window_bounds = array<i64: 9, 4, 128>}, {transform_indices = @transform_2, window_bounds = array<i64: 1, 128>}, {transform_indices = @transform_3, window_bounds = array<i64: 1, 16, 16, 128>}]} {
    %c16_i32 = arith.constant 16 : i32
    %0 = arith.muli %arg2, %c16_i32 : i32
    %c0_i32 = arith.constant 0 : i32
    %1 = arith.addi %0, %c0_i32 : i32
    %c0 = arith.constant 0 : index
    %2 = arith.index_cast %1 : i32 to index
    %c0_0 = arith.constant 0 : index
    %c0_1 = arith.constant 0 : index
    %3 = vector.load %arg3[%c0, %2, %c0_0, %c0_1] : memref<1x18x18x4xbf16, #tpu.memory_space<vmem>>, vector<1x16x16x4xbf16>
    %4 = vector.shape_cast %3 : vector<1x16x16x4xbf16> to vector<16x16x4xbf16>
    %c0_i32_2 = arith.constant 0 : i32
    %5 = arith.addi %0, %c0_i32_2 : i32
    %c0_3 = arith.constant 0 : index
    %6 = arith.index_cast %5 : i32 to index
    %c1 = arith.constant 1 : index
    %c0_4 = arith.constant 0 : index
    %7 = vector.load %arg3[%c0_3, %6, %c1, %c0_4] : memref<1x18x18x4xbf16, #tpu.memory_space<vmem>>, vector<1x16x16x4xbf16>
    %8 = vector.shape_cast %7 : vector<1x16x16x4xbf16> to vector<16x16x4xbf16>
    %c0_i32_5 = arith.constant 0 : i32
    %9 = arith.addi %0, %c0_i32_5 : i32
    %c0_6 = arith.constant 0 : index
    %10 = arith.index_cast %9 : i32 to index
    %c2 = arith.constant 2 : index
    %c0_7 = arith.constant 0 : index
    %11 = vector.load %arg3[%c0_6, %10, %c2, %c0_7] : memref<1x18x18x4xbf16, #tpu.memory_space<vmem>>, vector<1x16x16x4xbf16>
    %12 = vector.shape_cast %11 : vector<1x16x16x4xbf16> to vector<16x16x4xbf16>
    %c1_i32 = arith.constant 1 : i32
    %13 = arith.addi %0, %c1_i32 : i32
    %c0_8 = arith.constant 0 : index
    %14 = arith.index_cast %13 : i32 to index
    %c0_9 = arith.constant 0 : index
    %c0_10 = arith.constant 0 : index
    %15 = vector.load %arg3[%c0_8, %14, %c0_9, %c0_10] : memref<1x18x18x4xbf16, #tpu.memory_space<vmem>>, vector<1x16x16x4xbf16>
    %16 = vector.shape_cast %15 : vector<1x16x16x4xbf16> to vector<16x16x4xbf16>
    %c1_i32_11 = arith.constant 1 : i32
    %17 = arith.addi %0, %c1_i32_11 : i32
    %c0_12 = arith.constant 0 : index
    %18 = arith.index_cast %17 : i32 to index
    %c1_13 = arith.constant 1 : index
    %c0_14 = arith.constant 0 : index
    %19 = vector.load %arg3[%c0_12, %18, %c1_13, %c0_14] : memref<1x18x18x4xbf16, #tpu.memory_space<vmem>>, vector<1x16x16x4xbf16>
    %20 = vector.shape_cast %19 : vector<1x16x16x4xbf16> to vector<16x16x4xbf16>
    %c1_i32_15 = arith.constant 1 : i32
    %21 = arith.addi %0, %c1_i32_15 : i32
    %c0_16 = arith.constant 0 : index
    %22 = arith.index_cast %21 : i32 to index
    %c2_17 = arith.constant 2 : index
    %c0_18 = arith.constant 0 : index
    %23 = vector.load %arg3[%c0_16, %22, %c2_17, %c0_18] : memref<1x18x18x4xbf16, #tpu.memory_space<vmem>>, vector<1x16x16x4xbf16>
    %24 = vector.shape_cast %23 : vector<1x16x16x4xbf16> to vector<16x16x4xbf16>
    %c2_i32 = arith.constant 2 : i32
    %25 = arith.addi %0, %c2_i32 : i32
    %c0_19 = arith.constant 0 : index
    %26 = arith.index_cast %25 : i32 to index
    %c0_20 = arith.constant 0 : index
    %c0_21 = arith.constant 0 : index
    %27 = vector.load %arg3[%c0_19, %26, %c0_20, %c0_21] : memref<1x18x18x4xbf16, #tpu.memory_space<vmem>>, vector<1x16x16x4xbf16>
    %28 = vector.shape_cast %27 : vector<1x16x16x4xbf16> to vector<16x16x4xbf16>
    %c2_i32_22 = arith.constant 2 : i32
    %29 = arith.addi %0, %c2_i32_22 : i32
    %c0_23 = arith.constant 0 : index
    %30 = arith.index_cast %29 : i32 to index
    %c1_24 = arith.constant 1 : index
    %c0_25 = arith.constant 0 : index
    %31 = vector.load %arg3[%c0_23, %30, %c1_24, %c0_25] : memref<1x18x18x4xbf16, #tpu.memory_space<vmem>>, vector<1x16x16x4xbf16>
    %32 = vector.shape_cast %31 : vector<1x16x16x4xbf16> to vector<16x16x4xbf16>
    %c2_i32_26 = arith.constant 2 : i32
    %33 = arith.addi %0, %c2_i32_26 : i32
    %c0_27 = arith.constant 0 : index
    %34 = arith.index_cast %33 : i32 to index
    %c2_28 = arith.constant 2 : index
    %c0_29 = arith.constant 0 : index
    %35 = vector.load %arg3[%c0_27, %34, %c2_28, %c0_29] : memref<1x18x18x4xbf16, #tpu.memory_space<vmem>>, vector<1x16x16x4xbf16>
    %36 = vector.shape_cast %35 : vector<1x16x16x4xbf16> to vector<16x16x4xbf16>
    %37 = vector.shape_cast %4 : vector<16x16x4xbf16> to vector<256x4xbf16>
    %c0_30 = arith.constant 0 : index
    %c0_31 = arith.constant 0 : index
    %c0_32 = arith.constant 0 : index
    %38 = vector.load %arg4[%c0_30, %c0_31, %c0_32] : memref<9x4x128xbf16, #tpu.memory_space<vmem>>, vector<1x4x128xbf16>
    %39 = vector.shape_cast %38 : vector<1x4x128xbf16> to vector<4x128xbf16>
    %cst = arith.constant dense<0.000000e+00> : vector<256x128xf32>
    %40 = tpu.matmul %37, %39, %cst {dimension_numbers = #tpu.dot_dimension_numbers<[1], [0], [0], [1], [0, 0, 1, 1], [], []>} : vector<256x4xbf16>, vector<4x128xbf16>, vector<256x128xf32> -> vector<256x128xf32>
    %41 = vector.shape_cast %8 : vector<16x16x4xbf16> to vector<256x4xbf16>
    %c1_33 = arith.constant 1 : index
    %c0_34 = arith.constant 0 : index
    %c0_35 = arith.constant 0 : index
    %42 = vector.load %arg4[%c1_33, %c0_34, %c0_35] : memref<9x4x128xbf16, #tpu.memory_space<vmem>>, vector<1x4x128xbf16>
    %43 = vector.shape_cast %42 : vector<1x4x128xbf16> to vector<4x128xbf16>
    %cst_36 = arith.constant dense<0.000000e+00> : vector<256x128xf32>
    %44 = tpu.matmul %41, %43, %cst_36 {dimension_numbers = #tpu.dot_dimension_numbers<[1], [0], [0], [1], [0, 0, 1, 1], [], []>} : vector<256x4xbf16>, vector<4x128xbf16>, vector<256x128xf32> -> vector<256x128xf32>
    %45 = arith.addf %40, %44 : vector<256x128xf32>
    %46 = vector.shape_cast %12 : vector<16x16x4xbf16> to vector<256x4xbf16>
    %c2_37 = arith.constant 2 : index
    %c0_38 = arith.constant 0 : index
    %c0_39 = arith.constant 0 : index
    %47 = vector.load %arg4[%c2_37, %c0_38, %c0_39] : memref<9x4x128xbf16, #tpu.memory_space<vmem>>, vector<1x4x128xbf16>
    %48 = vector.shape_cast %47 : vector<1x4x128xbf16> to vector<4x128xbf16>
    %cst_40 = arith.constant dense<0.000000e+00> : vector<256x128xf32>
    %49 = tpu.matmul %46, %48, %cst_40 {dimension_numbers = #tpu.dot_dimension_numbers<[1], [0], [0], [1], [0, 0, 1, 1], [], []>} : vector<256x4xbf16>, vector<4x128xbf16>, vector<256x128xf32> -> vector<256x128xf32>
    %50 = arith.addf %45, %49 : vector<256x128xf32>
    %51 = vector.shape_cast %16 : vector<16x16x4xbf16> to vector<256x4xbf16>
    %c3 = arith.constant 3 : index
    %c0_41 = arith.constant 0 : index
    %c0_42 = arith.constant 0 : index
    %52 = vector.load %arg4[%c3, %c0_41, %c0_42] : memref<9x4x128xbf16, #tpu.memory_space<vmem>>, vector<1x4x128xbf16>
    %53 = vector.shape_cast %52 : vector<1x4x128xbf16> to vector<4x128xbf16>
    %cst_43 = arith.constant dense<0.000000e+00> : vector<256x128xf32>
    %54 = tpu.matmul %51, %53, %cst_43 {dimension_numbers = #tpu.dot_dimension_numbers<[1], [0], [0], [1], [0, 0, 1, 1], [], []>} : vector<256x4xbf16>, vector<4x128xbf16>, vector<256x128xf32> -> vector<256x128xf32>
    %55 = arith.addf %50, %54 : vector<256x128xf32>
    %56 = vector.shape_cast %20 : vector<16x16x4xbf16> to vector<256x4xbf16>
    %c4 = arith.constant 4 : index
    %c0_44 = arith.constant 0 : index
    %c0_45 = arith.constant 0 : index
    %57 = vector.load %arg4[%c4, %c0_44, %c0_45] : memref<9x4x128xbf16, #tpu.memory_space<vmem>>, vector<1x4x128xbf16>
    %58 = vector.shape_cast %57 : vector<1x4x128xbf16> to vector<4x128xbf16>
    %cst_46 = arith.constant dense<0.000000e+00> : vector<256x128xf32>
    %59 = tpu.matmul %56, %58, %cst_46 {dimension_numbers = #tpu.dot_dimension_numbers<[1], [0], [0], [1], [0, 0, 1, 1], [], []>} : vector<256x4xbf16>, vector<4x128xbf16>, vector<256x128xf32> -> vector<256x128xf32>
    %60 = arith.addf %55, %59 : vector<256x128xf32>
    %61 = vector.shape_cast %24 : vector<16x16x4xbf16> to vector<256x4xbf16>
    %c5 = arith.constant 5 : index
    %c0_47 = arith.constant 0 : index
    %c0_48 = arith.constant 0 : index
    %62 = vector.load %arg4[%c5, %c0_47, %c0_48] : memref<9x4x128xbf16, #tpu.memory_space<vmem>>, vector<1x4x128xbf16>
    %63 = vector.shape_cast %62 : vector<1x4x128xbf16> to vector<4x128xbf16>
    %cst_49 = arith.constant dense<0.000000e+00> : vector<256x128xf32>
    %64 = tpu.matmul %61, %63, %cst_49 {dimension_numbers = #tpu.dot_dimension_numbers<[1], [0], [0], [1], [0, 0, 1, 1], [], []>} : vector<256x4xbf16>, vector<4x128xbf16>, vector<256x128xf32> -> vector<256x128xf32>
    %65 = arith.addf %60, %64 : vector<256x128xf32>
    %66 = vector.shape_cast %28 : vector<16x16x4xbf16> to vector<256x4xbf16>
    %c6 = arith.constant 6 : index
    %c0_50 = arith.constant 0 : index
    %c0_51 = arith.constant 0 : index
    %67 = vector.load %arg4[%c6, %c0_50, %c0_51] : memref<9x4x128xbf16, #tpu.memory_space<vmem>>, vector<1x4x128xbf16>
    %68 = vector.shape_cast %67 : vector<1x4x128xbf16> to vector<4x128xbf16>
    %cst_52 = arith.constant dense<0.000000e+00> : vector<256x128xf32>
    %69 = tpu.matmul %66, %68, %cst_52 {dimension_numbers = #tpu.dot_dimension_numbers<[1], [0], [0], [1], [0, 0, 1, 1], [], []>} : vector<256x4xbf16>, vector<4x128xbf16>, vector<256x128xf32> -> vector<256x128xf32>
    %70 = arith.addf %65, %69 : vector<256x128xf32>
    %71 = vector.shape_cast %32 : vector<16x16x4xbf16> to vector<256x4xbf16>
    %c7 = arith.constant 7 : index
    %c0_53 = arith.constant 0 : index
    %c0_54 = arith.constant 0 : index
    %72 = vector.load %arg4[%c7, %c0_53, %c0_54] : memref<9x4x128xbf16, #tpu.memory_space<vmem>>, vector<1x4x128xbf16>
    %73 = vector.shape_cast %72 : vector<1x4x128xbf16> to vector<4x128xbf16>
    %cst_55 = arith.constant dense<0.000000e+00> : vector<256x128xf32>
    %74 = tpu.matmul %71, %73, %cst_55 {dimension_numbers = #tpu.dot_dimension_numbers<[1], [0], [0], [1], [0, 0, 1, 1], [], []>} : vector<256x4xbf16>, vector<4x128xbf16>, vector<256x128xf32> -> vector<256x128xf32>
    %75 = arith.addf %70, %74 : vector<256x128xf32>
    %76 = vector.shape_cast %36 : vector<16x16x4xbf16> to vector<256x4xbf16>
    %c8 = arith.constant 8 : index
    %c0_56 = arith.constant 0 : index
    %c0_57 = arith.constant 0 : index
    %77 = vector.load %arg4[%c8, %c0_56, %c0_57] : memref<9x4x128xbf16, #tpu.memory_space<vmem>>, vector<1x4x128xbf16>
    %78 = vector.shape_cast %77 : vector<1x4x128xbf16> to vector<4x128xbf16>
    %cst_58 = arith.constant dense<0.000000e+00> : vector<256x128xf32>
    %79 = tpu.matmul %76, %78, %cst_58 {dimension_numbers = #tpu.dot_dimension_numbers<[1], [0], [0], [1], [0, 0, 1, 1], [], []>} : vector<256x4xbf16>, vector<4x128xbf16>, vector<256x128xf32> -> vector<256x128xf32>
    %80 = arith.addf %75, %79 : vector<256x128xf32>
    %c0_59 = arith.constant 0 : index
    %c0_60 = arith.constant 0 : index
    %81 = vector.load %arg5[%c0_59, %c0_60] : memref<1x128xf32, #tpu.memory_space<vmem>>, vector<1x128xf32>
    %82 = vector.broadcast %81 : vector<1x128xf32> to vector<256x128xf32>
    %83 = arith.addf %80, %82 : vector<256x128xf32>
    %84 = arith.negf %83 : vector<256x128xf32>
    %85 = math.exp %84 : vector<256x128xf32>
    %cst_61 = arith.constant 1.000000e+00 : f32
    %86 = vector.broadcast %cst_61 : f32 to vector<256x128xf32>
    %87 = arith.addf %86, %85 : vector<256x128xf32>
    %88 = arith.divf %86, %87 : vector<256x128xf32>
    %89 = arith.mulf %83, %88 : vector<256x128xf32>
    %90 = vector.shape_cast %89 : vector<256x128xf32> to vector<1x16x16x128xf32>
    %91 = arith.truncf %90 : vector<1x16x16x128xf32> to vector<1x16x16x128xbf16>
    %c0_62 = arith.constant 0 : index
    %c0_63 = arith.constant 0 : index
    %c0_64 = arith.constant 0 : index
    %c0_65 = arith.constant 0 : index
    %92 = vector.load %arg6[%c0_62, %c0_63, %c0_64, %c0_65] : memref<1x16x16x128xbf16, #tpu.memory_space<vmem>>, vector<1x16x16x128xbf16>
    tpu.vector_store %arg6[%c0_62, %c0_63, %c0_64, %c0_65], %91 {strides = array<i32>} : memref<1x16x16x128xbf16, #tpu.memory_space<vmem>>, vector<1x16x16x128xbf16>,
    return
  }
  func.func @transform_0(%arg0: i32, %arg1: i32, %arg2: i32) -> (i32, i32, i32, i32) {
    %c0_i32 = arith.constant 0 : i32
    %c0_i32_0 = arith.constant 0 : i32
    %c0_i32_1 = arith.constant 0 : i32
    %c0_i32_2 = arith.constant 0 : i32
    return %arg0, %c0_i32, %c0_i32_0, %c0_i32_1 : i32, i32, i32, i32
  }
  func.func @transform_1(%arg0: i32, %arg1: i32, %arg2: i32) -> (i32, i32, i32) {
    %c0_i32 = arith.constant 0 : i32
    %c0_i32_0 = arith.constant 0 : i32
    %c0_i32_1 = arith.constant 0 : i32
    return %c0_i32, %c0_i32_0, %arg1 : i32, i32, i32
  }
  func.func @transform_2(%arg0: i32, %arg1: i32, %arg2: i32) -> (i32, i32) {
    %c0_i32 = arith.constant 0 : i32
    %c0_i32_0 = arith.constant 0 : i32
    return %c0_i32, %arg1 : i32, i32
  }
  func.func @transform_3(%arg0: i32, %arg1: i32, %arg2: i32) -> (i32, i32, i32, i32) {
    %c0_i32 = arith.constant 0 : i32
    %c0_i32_0 = arith.constant 0 : i32
    return %arg0, %arg2, %c0_i32, %arg1 : i32, i32, i32, i32
  }
}

</mosaic_0001>

<bundles_post_ra>
// kernel: tpu_custom_call.1
= control target key start
LH: loop header
LB: loop body
LE: loop exit
PB: predicated region body
PF: predicated region fallthrough
CT: control target
= control target key end

     0   :  { %8 = vsyncpa [#allocation3], 0  ;;  %s5372_s0 = inlined_call_operand.vmem [shape: bf16[2,18,18,4], index: 0, kind: input, shape index: {}]   ;;  %s5373_s1 = inlined_call_operand.vmem [shape: bf16[36,128], index: 1, kind: input, shape index: {}]   ;;  %s5374_s2 = inlined_call_operand.vmem [shape: f32[1,128], index: 2, kind: input, shape index: {}]   ;;  %s5375_s3 = inlined_call_operand.hbm [shape: bf16[2,16,16,128], index: 3, kind: output, shape index: {}]  }
   0x1   :  { %10 = vsyncpa [#allocation3 + $0x1], 0  ;;  %s3955_s12 = smov 0   ;;  %s3957_s13 = smov 0  }
   0x2   :  { %s3959_s14 = smov 0   ;;  %s3961_s15 = smov 0  }
   0x3   :  { %s3963_s16 = smov 0   ;;  %s3965_s17 = smov 0  }
   0x4 LB: > { %s2943_s18 = sadd.s32 4294967295, %s3923_s17   ;;  %s2944_s19 = sadd.s32 4294967294, %s3923_s17   ;;  %s3923_s17 = sphi %s3965_s17, %s16_s17   ;;  %s3919_s16 = sphi %s3963_s16, %s5394_s16   ;;  %s3915_s15 = sphi %s3961_s15, %s5393_s15   ;;  %s3911_s14 = sphi %s3959_s14, %s5392_s14   ;;  %s3907_s13 = sphi %s3957_s13, %s5391_s13   ;;  %s3903_s12 = sphi %s3955_s12, %s5390_s12  }
   0x5   : > { %s35_s20 = sadd.s32 1, %s3919_s16  ;;  %s124_s21 = sadd.s32 1, %s3911_s14 }
   0x6   : > { %p37_p0 = scmp.ge.s32.totalorder %s35_s20, 2  ;;  %p134_p1 = scmp.ne.s32.totalorder %s3911_s14, %s3907_s13 }
   0x7   : > { %p135_p2 = scmp.eq.s32.totalorder %s2943_s18, 1  ;;  %p140_p3 = scmp.ne.s32.totalorder %s3907_s13, %s3903_s12 }
   0x8   : > { %s5396_s20 = smov (%p37_p0, %s35_s20), 0  ;;  %p141_p5 = scmp.eq.s32.totalorder %s2944_s19, 1 }
   0x9   : > { %p3995_p4 = por %p135_p2, %p134_p1  ;;  %s117_s23 = ssub.s32 %s3919_s16, %s5396_s20 }
   0xa   : > { %p2948_p6 = scmp.ge.s32.totalorder %s3923_s17, 1  ;;  %p122_p7 = scmp.eq.s32.totalorder %s117_s23, 0 }
   0xb   : > { %p4002_p8 = por %p141_p5, %p140_p3  ;;  %p180_p9 = scmp.lt.s32.totalorder %s3923_s17, 3 }
   0xc   : > { %s4008_s25 = scalar_select %p122_p7, %s3911_s14, %s124_s21  }
   0xd   : > { %p181_p10 = pnand %p2948_p6, %p180_p9 }
   0xf   : > { %184 = sbr.rel (%p181_p10) target bundleno = 668 (0x29c), region = 32 }
  0x16   : > { %p211_p11 = scmp.lt.s32.totalorder %s3915_s15, 1  ;;  %s3925_s4 = smov 12   ;;  %vm830_vm0 = vcmask 1046528   ;;  %vm557_vm1 = vsmask.f32 7424  ;;  %vm2259_vm2 = vcmask 1041408  }
  0x17   : > { %s3926_s5 = smov 8   ;;  %s3927_s6 = smov 4   ;;  %vm1935_vm3 = vcmask 31744   ;;  %vm1968_vm4 = vcmask 64512   ;;  %vm2001_vm5 = vcmask 97280   ;;  %vm2034_vm6 = vcmask 130048  }
  0x18   : > { %s212_s26 = scalar_select %p211_p11, %s3915_s15, 1  ;;  %vm2067_vm7 = vcmask 162816   ;;  %vm2100_vm8 = vcmask 195584   ;;  %vm2133_vm9 = vcmask 228352   ;;  %vm2166_vm10 = vcmask 261120  }
  0x19   : > { %s3928_s7 = smov 16   ;;  %s3929_s8 = smov 20   ;;  %vm2226_vm11 = vcmask 293888  }
  0x1a   : > { %s3505_s27 = smul.u32 216, %s212_s26  ;;  %s3930_s11 = smov 24  }
  0x1b   : > { %s3931_s21 = smov 28   ;;  %s3932_s23 = smov 32  }
  0x1c   : > { %s4015_s30 = scalar_lea.vmem %s5372_s0, %s3505_s27  ;;  %s3933_s19 = smov [#allocation2]  }
  0x1d   : > { %v2967_v0 = vld [vmem:[%s4015_s30 + $0x6c] sm:$0xf]  ;;  %v4019_v1 = vld [vmem:[%s4015_s30 + $0x70] sm:$0xf]  ;;  %v246_v6 = vld [vmem:[%s4015_s30 + $0x64] sm:$0xf] }
  0x1e   : > { %v4022_v2 = vcombine.low %v2967_v0, %v4019_v1  ;;  %v2951_v3 = vld [vmem:[%s4015_s30 + $0xc] sm:$0xf]  ;;  %v4026_v4 = vld [vmem:[%s4015_s30 + $0x10] sm:$0xf]  ;;  %v285_v7 = vld [vmem:[%s4015_s30 + $0x60] sm:$0xe] }
  0x1f   : > { %v4029_v5 = vcombine.low %v2951_v3, %v4026_v4  ;;  %v4036_v8 = vld [vmem:[%s4015_s30 + $0x68] ss:$0 sps:$4 sm:$0x11]   ;;  %v3119_v9 = vcombine.low %v285_v7, %v246_v6  ;;  %v245_v10 = vld [vmem:[%s4015_s30 + $0x60] sm:$0xf] }
  0x20   : > { %1007 = vrot.lane.b32.xlu1 %v4022_v2, %s3925_s4  ;;  %v1170_v11 = vshll.u32 %v4022_v2, 16  ;;  %v230_v12 = vld [vmem:[%s4015_s30 + $0x4] sm:$0xf]  ;;  %v856_v14 = vrot.slane %v4036_v8, 1  ;;  %v277_v15 = vld [vmem:[%s4015_s30] sm:$0xe]  ;;  %v4047_v18 = vcombine.low %v245_v10, %v246_v6 }
  0x21   : > { %991 = vrot.lane.b32.xlu0 %v4029_v5, %s3925_s4  ;;  %v855_v13 = vrot.slane %v3119_v9, 1  ;;  %v229_v16 = vld [vmem:[%s4015_s30] sm:$0xf]  ;;  %v1074_v17 = vshll.u32 %v4029_v5, 16  ;;  %v3111_v20 = vcombine.low %v277_v15, %v230_v12  ;;  %v247_v21 = vld [vmem:[%s4015_s30 + $0x6c] sm:$0xf] }
  0x22   : > { %v3577_v19 = vld [vmem:[%s4015_s30 + $0x8] ss:$0 sps:$4 sm:$0x11]   ;;  %v4052_v23 = vcombine.low %v229_v16, %v230_v12  ;;  %v248_v24 = vld [vmem:[%s4015_s30 + $0x70] sm:$0xf]  ;;  %v655_v30 = vshrl.u32 %v4047_v18, 16 }
  0x23   : > { %v857_v22 = vsel %vm830_vm0, %v855_v13, %v856_v14  ;;  %v286_v25 = vld [vmem:[%s4015_s30 + $0x6c] sm:$0xe]  ;;  %v831_v26 = vrot.slane %v3111_v20, 1  ;;  %v832_v27 = vrot.slane %v3577_v19, 1  ;;  %v4059_v31 = vcombine.low %v247_v21, %v248_v24  ;;  %v232_v33 = vld [vmem:[%s4015_s30 + $0x10] sm:$0xf] }
  0x24   : > { %895 = vrot.lane.b32.xlu1 %v857_v22, %s3926_s5  ;;  %v3581_v28 = vld [vmem:[%s4015_s30 + $0x74] ss:$0 sps:$4 sm:$0x11]   ;;  %v3120_v29 = vcombine.low %v286_v25, %v248_v24  ;;  %v231_v32 = vld [vmem:[%s4015_s30 + $0xc] sm:$0xf]  ;;  %v559_v41 = vshrl.u32 %v4052_v23, 16 }
  0x25   : > { %v833_v34 = vsel %vm830_vm0, %v831_v26, %v832_v27  ;;  %v859_v36 = vrot.slane %v3581_v28, 1  ;;  %v278_v37 = vld [vmem:[%s4015_s30 + $0xc] sm:$0xe]  ;;  %v4065_v38 = vcombine.low %v231_v32, %v232_v33  ;;  %v3584_v39 = vld [vmem:[%s4015_s30 + $0x14] ss:$0 sps:$4 sm:$0x11]  }
  0x26   : > { %v858_v35 = vrot.slane %v3120_v29, 1  ;;  %879 = vrot.lane.b32.xlu0 %v833_v34, %s3926_s5  ;;  %v3112_v40 = vcombine.low %v278_v37, %v232_v33  ;;  %v561_v42 = vshll.u32 %v4052_v23, 16  ;;  %v566_v43 = vshll.u32 %v3577_v19, 16  ;;  %v2969_v52 = vld [vmem:[%s4015_s30 + $0x78] sm:$0xf] }
  0x27   : > { %v571_v45 = vshrl.u32 %v4065_v38, 16  ;;  %v573_v46 = vshll.u32 %v4065_v38, 16  ;;  %v667_v47 = vshrl.u32 %v4059_v31, 16  ;;  %v835_v49 = vrot.slane %v3584_v39, 1  ;;  %v4079_v57 = vld [vmem:[%s4015_s30 + $0x7c] sm:$0xf] }
  0x28   : > { %v860_v44 = vsel %vm830_vm0, %v858_v35, %v859_v36  ;;  %v834_v48 = vrot.slane %v3112_v40, 1  ;;  %v578_v50 = vshll.u32 %v3584_v39, 16  ;;  %v563_v51 = vrot.slane %v561_v42, 1  ;;  %v2953_v62 = vld [vmem:[%s4015_s30 + $0x18] sm:$0xf] }
  0x29   : > { %897 = vrot.lane.b32.xlu1 %v860_v44, %s3926_s5  ;;  %v575_v53 = vrot.slane %v573_v46, 1  ;;  %v568_v54 = vrot.slane %v566_v43, 1  ;;  %v669_v55 = vshll.u32 %v4059_v31, 16  ;;  %v674_v56 = vshll.u32 %v3581_v28, 16  ;;  %v4085_v63 = vld [vmem:[%s4015_s30 + $0x1c] sm:$0xf] }
  0x2a   : > { %v836_v58 = vsel %vm830_vm0, %v834_v48, %v835_v49  ;;  %v580_v59 = vrot.slane %v578_v50, 1  ;;  %v564_v60 = vor.u32 %v563_v51, %v559_v41  ;;  %v657_v61 = vshll.u32 %v4047_v18, 16  ;;  %v4092_v13 = vld [vmem:[%s4015_s30 + $0x74] ss:$0 sps:$4 sm:$0x11]  }
  0x2b   : > { %881 = vrot.lane.b32.xlu0 %v836_v58, %s3926_s5  ;;  %v576_v0 = vor.u32 %v575_v53, %v571_v45  ;;  %v671_v3 = vrot.slane %v669_v55, 1  ;;  %v676_v6 = vrot.slane %v674_v56, 1  ;;  %v662_v7 = vshll.u32 %v4036_v8, 16  ;;  %v4097_v20 = vld [vmem:[%s4015_s30 + $0x14] ss:$0 sps:$4 sm:$0x11]  }
  0x2c   : > { %v569_v9 = vsel %vm557_vm1, %v564_v60, %v568_v54  ;;  %v659_v10 = vrot.slane %v657_v61, 1  ;;  %v3136_v12 = vcombine.low %v2969_v52, %v4079_v57  ;;  %v3128_v19 = vcombine.low %v2953_v62, %v4085_v63  ;;  %v4104_v24 = vld [vmem:[%s4015_s30 + $0x80] ss:$0 sps:$4 sm:$0x11]   ;;  %v3007_v40 = vld [vmem:[%s4015_s30 + $0x6c] sm:$0xe] }
  0x2d   : > { %v581_v14 = vsel %vm557_vm1, %v576_v0, %v580_v59  ;;  %v672_v15 = vor.u32 %v671_v3, %v667_v47  ;;  %v664_v16 = vrot.slane %v662_v7, 1  ;;  %v1168_v21 = vshrl.u32 %v4022_v2, 16  ;;  %v2999_v43 = vld [vmem:[%s4015_s30 + $0xc] sm:$0xe]  ;;  %v3008_v49 = vld [vmem:[%s4015_s30 + $0x78] sm:$0xe] }
  0x2e   : > { %752 = vrot.lane.b32.xlu1 %v581_v14, %s3927_s6  ;;  %v660_v8 = vor.u32 %v659_v10, %v655_v30  ;;  %v1172_v22 = vrot.slane %v1170_v11, 1  ;;  %v1182_v26 = vshll.u32 %v3136_v12, 16  ;;  %v1175_v27 = vshll.u32 %v4092_v13, 16  ;;  %v4115_v11 = vld [vmem:[%s4015_s30 + $0x20] ss:$0 sps:$4 sm:$0x11]  }
  0x2f   : > { %750 = vrot.lane.b32.xlu0 %v569_v9, %s3927_s6  ;;  %v677_v25 = vsel %vm557_vm1, %v672_v15, %v676_v6  ;;  %v1072_v28 = vshrl.u32 %v4029_v5, 16  ;;  %v1086_v30 = vshll.u32 %v3128_v19, 16  ;;  %v1076_v32 = vrot.slane %v1074_v17, 1  ;;  %v3000_v53 = vld [vmem:[%s4015_s30 + $0x18] sm:$0xe] }
  0x30   : > { %v665_v29 = vsel %vm557_vm1, %v660_v8, %v664_v16  ;;  %v1079_v2 = vshll.u32 %v4097_v20, 16  ;;  %v1173_v33 = vor.u32 %v1172_v22, %v1168_v21  ;;  %v1177_v34 = vrot.slane %v1175_v27, 1  ;;  %v3031_v54 = vld [vmem:[%s4015_s30 + $0x78] sm:$0xf]  ;;  %v4142_v60 = vld [vmem:[%s4015_s30 + $0x1c] sm:$0xf] }
  0x31   : > { %v1077_v35 = vor.u32 %v1076_v32, %v1072_v28  ;;  %v1180_v36 = vshrl.u32 %v3136_v12, 16  ;;  %v1184_v37 = vrot.slane %v1182_v26, 1  ;;  %v1187_v39 = vshll.u32 %v4104_v24, 16  ;;  %v3015_v55 = vld [vmem:[%s4015_s30 + $0x18] sm:$0xf] }
  0x32   : > { %768 = vrot.lane.b32.xlu1 %v677_v25, %s3927_s6  ;;  %v1081_v5 = vrot.slane %v1079_v2, 1  ;;  %v1084_v17 = vshrl.u32 %v3128_v19, 16  ;;  %v1088_v41 = vrot.slane %v1086_v30, 1  ;;  %v1091_v42 = vshll.u32 %v4115_v11, 16  ;;  %v3033_v7 = vld [vmem:[%s4015_s30 + $0x84] sm:$0xf] }
  0x33   : > { %766 = vrot.lane.b32.xlu0 %v665_v29, %s3927_s6  ;;  %v3167_v44 = vcombine.low %v3007_v40, %v4019_v1  ;;  %v1178_v45 = vsel %vm557_vm1, %v1173_v33, %v1177_v34  ;;  %v1185_v46 = vor.u32 %v1184_v37, %v1180_v36  ;;  %v1189_v47 = vrot.slane %v1187_v39, 1  ;;  %v4134_v1 = vld [vmem:[%s4015_s30 + $0x7c] sm:$0xf]  ;;  %v4152_v9 = vld [vmem:[%s4015_s30 + $0x88] sm:$0xf] }
  0x34   : > { %v3159_v48 = vcombine.low %v2999_v43, %v4026_v4  ;;  %v1082_v50 = vsel %vm557_vm1, %v1077_v35, %v1081_v5  ;;  %v1089_v51 = vor.u32 %v1088_v41, %v1084_v17  ;;  %v1093_v52 = vrot.slane %v1091_v42, 1  ;;  %v4159_v14 = vld [vmem:[%s4015_s30 + $0x28] sm:$0xf]  ;;  %v4165_v21 = vld [vmem:[%s4015_s30 + $0x80] ss:$0 sps:$4 sm:$0x11]  }
  0x35   : > { %v3168_v56 = vcombine.low %v3008_v49, %v4079_v57  ;;  %v1190_v4 = vsel %vm557_vm1, %v1185_v46, %v1189_v47  ;;  %v1367_v58 = vrot.slane %v3167_v44, 1  ;;  %v1368_v59 = vrot.slane %v4092_v13, 1  ;;  %v3017_v13 = vld [vmem:[%s4015_s30 + $0x24] sm:$0xf]  ;;  %v249_v37 = vld [vmem:[%s4015_s30 + $0x78] sm:$0xf] }
  0x36   : > { %1009 = vrot.lane.b32.xlu1 %v3136_v12, %s3925_s4  ;;  %v3160_v61 = vcombine.low %v3000_v53, %v4085_v63  ;;  %v1094_v62 = vsel %vm557_vm1, %v1089_v51, %v1093_v52  ;;  %v1343_v0 = vrot.slane %v3159_v48, 1  ;;  %v1344_v3 = vrot.slane %v4097_v20, 1  ;;  %v4172_v26 = vld [vmem:[%s4015_s30 + $0x20] ss:$0 sps:$4 sm:$0x11]  }
  0x37   : > { %993 = vrot.lane.b32.xlu0 %v3128_v19, %s3925_s4  ;;  %v3183_v57 = vcombine.low %v3031_v54, %v4134_v1  ;;  %v3175_v6 = vcombine.low %v3015_v55, %v4142_v60  ;;  %v1369_v10 = vsel %vm830_vm0, %v1367_v58, %v1368_v59  ;;  %v1370_v63 = vrot.slane %v3168_v56, 1  ;;  %v4178_v34 = vld [vmem:[%s4015_s30 + $0x8c] ss:$0 sps:$4 sm:$0x11]   ;;  %v4187_v39 = vld [vmem:[%s4015_s30 + $0x7c] sm:$0xf] }
  0x38   : > { %v1371_v12 = vrot.slane %v4104_v24, 1  ;;  %v1345_v15 = vsel %vm830_vm0, %v1343_v0, %v1344_v3  ;;  %v1346_v16 = vrot.slane %v3160_v61, 1  ;;  %v1347_v19 = vrot.slane %v4115_v11, 1  ;;  %v4183_v36 = vld [vmem:[%s4015_s30 + $0x2c] ss:$0 sps:$4 sm:$0x11]  }
  0x39   : > { %v1682_v20 = vshll.u32 %v3183_v57, 16  ;;  %v3184_v8 = vcombine.low %v3033_v7, %v4152_v9  ;;  %v1586_v22 = vshll.u32 %v3175_v6, 16  ;;  %v3176_v24 = vcombine.low %v3017_v13, %v4159_v14  ;;  %v233_v40 = vld [vmem:[%s4015_s30 + $0x18] sm:$0xf]  ;;  %v4191_v17 = vld [vmem:[%s4015_s30 + $0x1c] sm:$0xf] }
  0x3a   : > { %1279 = vrot.lane.b32.xlu1 %v1178_v45, %s3928_s7  ;;  %v1372_v25 = vsel %vm830_vm0, %v1370_v63, %v1371_v12  ;;  %v1348_v27 = vsel %vm830_vm0, %v1346_v16, %v1347_v19  ;;  %v1680_v29 = vshrl.u32 %v3183_v57, 16  ;;  %v1687_v32 = vshll.u32 %v4165_v21, 16  ;;  %v3666_v41 = vld [vmem:[%s5373_s1] sm:$0xff]   ;;  %v3071_v42 = vld [vmem:[%s4015_s30 + $0x78] sm:$0xe]  ;;  %v3671_v56 = vld [vmem:[%s5373_s1 + $0x8] sm:$0xff]  }
  0x3b   : > { %1263 = vrot.lane.b32.xlu0 %v1082_v50, %s3928_s7  ;;  %v1694_v28 = vshll.u32 %v3184_v8, 16  ;;  %v1684_v30 = vrot.slane %v1682_v20, 1  ;;  %v1598_v2 = vshll.u32 %v3176_v24, 16  ;;  %v1584_v11 = vshrl.u32 %v3175_v6, 16  ;;  %v3063_v47 = vld [vmem:[%s4015_s30 + $0x18] sm:$0xe]  ;;  %3459 = vmatprep.subr.bf16.mxu0 %v3666_v41 }
  0x3c   : > { %v1588_v33 = vrot.slane %v1586_v22, 1  ;;  %v1591_v35 = vshll.u32 %v4172_v26, 16  ;;  %v1689_v43 = vrot.slane %v1687_v32, 1  ;;  %v1692_v44 = vshrl.u32 %v3184_v8, 16  ;;  %3497 = vmatprep.subr.bf16.mxu1 %v3666_v41  ;;  %3460 = vmatpush3.bf16.msra.mxu0 %v3666_v41  ;;  %v251_v7 = vld [vmem:[%s4015_s30 + $0x84] sm:$0xf] }
  0x3d   : > { %v1685_v5 = vor.u32 %v1684_v30, %v1680_v29  ;;  %v1696_v45 = vrot.slane %v1694_v28, 1  ;;  %v1699_v46 = vshll.u32 %v4178_v34, 16  ;;  %v1596_v48 = vshrl.u32 %v3176_v24, 16  ;;  %3500 = vmatpush3.bf16.msra.mxu1 %v3666_v41  ;;  %v4215_v61 = vld [vmem:[%s4015_s30 + $0x80] ss:$0 sps:$4 sm:$0x11]   ;;  %3461 = vmatprep.subr.bf16.mxu0 %v3671_v56 }
  0x3e   : > { %1281 = vrot.lane.b32.xlu1 %v1190_v4, %s3928_s7  ;;  %v1600_v49 = vrot.slane %v1598_v2, 1  ;;  %v1603_v50 = vshll.u32 %v4183_v36, 16  ;;  %v4203_v51 = vcombine.low %v249_v37, %v4187_v39  ;;  %v1589_v52 = vor.u32 %v1588_v33, %v1584_v11  ;;  %3498 = vmatprep.subr.bf16.mxu1 %v3671_v56  ;;  %v235_v13 = vld [vmem:[%s4015_s30 + $0x24] sm:$0xf] }
  0x3f   : > { %1265 = vrot.lane.b32.xlu0 %v1094_v62, %s3928_s7  ;;  %v1593_v53 = vrot.slane %v1591_v35, 1  ;;  %v4206_v54 = vcombine.low %v233_v40, %v4191_v17  ;;  %v3215_v55 = vcombine.low %v3071_v42, %v4134_v1  ;;  %v3207_v4 = vcombine.low %v3063_v47, %v4142_v60  ;;  %v3072_v16 = vld [vmem:[%s4015_s30 + $0x84] sm:$0xe]  ;;  %v4257_v40 = vld [vmem:[%s4015_s30 + $0x8c] ss:$0 sps:$4 sm:$0x11]  }
  0x40   : > { %v1697_v58 = vor.u32 %v1696_v45, %v1692_v44  ;;  %v1701_v59 = vrot.slane %v1699_v46, 1  ;;  %v1690_v1 = vsel %vm557_vm1, %v1685_v5, %v1689_v43  ;;  %v1601_v62 = vor.u32 %v1600_v49, %v1596_v48  ;;  %3462 = vmatpush3.bf16.msra.mxu0 %v3671_v56 }
  0x41   : > { %v1605_v0 = vrot.slane %v1603_v50, 1  ;;  %v681_v3 = vshll.u32 %v4203_v51, 16  ;;  %v1594_v60 = vsel %vm557_vm1, %v1589_v52, %v1593_v53  ;;  %v1879_v63 = vrot.slane %v3215_v55, 1  ;;  %3501 = vmatpush3.bf16.msra.mxu1 %v3671_v56  ;;  %v287_v53 = vld [vmem:[%s4015_s30 + $0x78] sm:$0xe] }
  0x42   : > { %1407 = vrot.lane.b32.xlu1 %v1369_v10, %s3929_s8  ;;  %v4227_v10 = vld [vmem:[%s4015_s30 + $0x88] sm:$0xf]  ;;  %v1880_v12 = vrot.slane %v4165_v21, 1  ;;  %v1702_v19 = vsel %vm557_vm1, %v1697_v58, %v1701_v59  ;;  %v1855_v20 = vrot.slane %v3207_v4, 1  ;;  %v686_v22 = vshll.u32 %v4215_v61, 16 }
  0x43   : > { %1391 = vrot.lane.b32.xlu0 %v1345_v15, %s3929_s8  ;;  %v4232_v15 = vld [vmem:[%s4015_s30 + $0x28] sm:$0xf]  ;;  %v1606_v21 = vsel %vm557_vm1, %v1601_v62, %v1605_v0  ;;  %v4244_v28 = vcombine.low %v251_v7, %v4227_v10  ;;  %v583_v29 = vshrl.u32 %v4206_v54, 16  ;;  %v3216_v2 = vcombine.low %v3072_v16, %v4152_v9  ;;  %v4262_v9 = vld [vmem:[%s4015_s30 + $0x2c] ss:$0 sps:$4 sm:$0x11]  }
  0x44   : > { %v4249_v32 = vcombine.low %v235_v13, %v4232_v15  ;;  %v688_v33 = vrot.slane %v686_v22, 1  ;;  %v1881_v35 = vsel %vm830_vm0, %v1879_v63, %v1880_v12  ;;  %v1883_v45 = vrot.slane %v4178_v34, 1  ;;  %v280_v63 = vld [vmem:[%s4015_s30 + $0x24] sm:$0xe] }
  0x45   : > { %v693_v5 = vshll.u32 %v4244_v28, 16  ;;  %v1882_v44 = vrot.slane %v3216_v2, 1  ;;  %v1859_v47 = vrot.slane %v4183_v36, 1  ;;  %v691_v49 = vshrl.u32 %v4244_v28, 16  ;;  %v279_v36 = vld [vmem:[%s4015_s30 + $0x18] sm:$0xe] }
  0x46   : > { %1409 = vrot.lane.b32.xlu1 %v1372_v25, %s3929_s8  ;;  %v679_v25 = vshrl.u32 %v4203_v51, 16  ;;  %v698_v52 = vshll.u32 %v4257_v40, 16  ;;  %v595_v56 = vshrl.u32 %v4249_v32, 16  ;;  %v602_v4 = vshll.u32 %v4262_v9, 16 }
  0x47   : > { %1393 = vrot.lane.b32.xlu0 %v1348_v27, %s3929_s8  ;;  %v683_v27 = vrot.slane %v681_v3, 1  ;;  %v695_v50 = vrot.slane %v693_v5, 1  ;;  %v1884_v58 = vsel %vm830_vm0, %v1882_v44, %v1883_v45  ;;  %v3121_v62 = vcombine.low %v287_v53, %v4187_v39  ;;  %v288_v3 = vld [vmem:[%s4015_s30 + $0x84] sm:$0xe] }
  0x48   : > { %v3113_v0 = vcombine.low %v279_v36, %v4191_v17  ;;  %v604_v7 = vrot.slane %v602_v4, 1  ;;  %v862_v12 = vrot.slane %v4215_v61, 1  ;;  %v3122_v16 = vcombine.low %v288_v3, %v4227_v10 }
  0x49   : > { %v684_v37 = vor.u32 %v683_v27, %v679_v25  ;;  %v696_v59 = vor.u32 %v695_v50, %v691_v49  ;;  %v861_v17 = vrot.slane %v3121_v62, 1  ;;  %v3114_v61 = vcombine.low %v280_v63, %v4232_v15  ;;  %v4309_v15 = vld [vmem:[%s4015_s30 + $0x94] sm:$0xf]  ;;  %v3001_v62 = vld [vmem:[%s4015_s30 + $0x24] sm:$0xe] }
  0x4a   : > { %1519 = vrot.lane.b32.xlu1 %v3183_v57, %s3930_s11  ;;  %v4221_v57 = vld [vmem:[%s4015_s30 + $0x20] ss:$0 sps:$4 sm:$0x11]   ;;  %v864_v10 = vrot.slane %v3122_v16, 1 }
  0x4b   : > { %1503 = vrot.lane.b32.xlu0 %v3175_v6, %s3930_s11  ;;  %v585_v6 = vshll.u32 %v4206_v54, 16  ;;  %v689_v48 = vsel %vm557_vm1, %v684_v37, %v688_v33  ;;  %v838_v13 = vrot.slane %v4221_v57, 1  ;;  %v863_v27 = vsel %vm830_vm0, %v861_v17, %v862_v12  ;;  %v2957_v33 = vld [vmem:[%s4015_s30 + $0x30] sm:$0xf] }
  0x4c   : > { %v840_v2 = vrot.slane %v3114_v61, 1  ;;  %v3010_v12 = vld [vmem:[%s4015_s30 + $0x90] sm:$0xe] }
  0x4d   : > { %v587_v30 = vrot.slane %v585_v6, 1  ;;  %v3170_v61 = vcombine.low %v3010_v12, %v4309_v15 }
  0x4e   : > { %1521 = vrot.lane.b32.xlu1 %v3184_v8, %s3930_s11  ;;  %v1856_v8 = vrot.slane %v4172_v26, 1  ;;  %v590_v26 = vshll.u32 %v4221_v57, 16  ;;  %v2955_v57 = vld [vmem:[%s4015_s30 + $0x24] sm:$0xf] }
  0x4f   : > { %1505 = vrot.lane.b32.xlu0 %v3176_v24, %s3930_s11  ;;  %v3064_v24 = vld [vmem:[%s4015_s30 + $0x24] sm:$0xe]  ;;  %v588_v42 = vor.u32 %v587_v30, %v583_v29  ;;  %v2973_v30 = vld [vmem:[%s4015_s30 + $0x90] sm:$0xf] }
  0x50   : > { %v3208_v11 = vcombine.low %v3064_v24, %v4159_v14  ;;  %v1857_v41 = vsel %vm830_vm0, %v1855_v20, %v1856_v8  ;;  %v592_v43 = vrot.slane %v590_v26, 1  ;;  %v597_v14 = vshll.u32 %v4249_v32, 16  ;;  %v2971_v20 = vld [vmem:[%s4015_s30 + $0x84] sm:$0xf]  ;;  %v4293_v8 = vld [vmem:[%s4015_s30 + $0x88] sm:$0xf] }
  0x51   : > { %v4299_v24 = vld [vmem:[%s4015_s30 + $0x28] sm:$0xf]  ;;  %v3137_v25 = vcombine.low %v2971_v20, %v4293_v8 }
  0x52   : > { %1791 = vrot.lane.b32.xlu1 %v1690_v1, %s3931_s21  ;;  %v1858_v46 = vrot.slane %v3208_v11, 1  ;;  %v593_v55 = vsel %vm557_vm1, %v588_v42, %v592_v43  ;;  %v599_v34 = vrot.slane %v597_v14, 1  ;;  %v700_v1 = vrot.slane %v698_v52, 1  ;;  %v3626_v43 = vld [vmem:[%s4015_s30 + $0x8c] ss:$0 sps:$4 sm:$0x11]  }
  0x53   : > { %1775 = vrot.lane.b32.xlu0 %v1594_v60, %s3931_s21  ;;  %v3129_v29 = vcombine.low %v2955_v57, %v4299_v24  ;;  %v841_v11 = vrot.slane %v4262_v9, 1  ;;  %v1194_v37 = vshll.u32 %v3137_v25, 16  ;;  %v4325_v14 = vld [vmem:[%s4015_s30 + $0x2c] ss:$0 sps:$4 sm:$0x11]   ;;  %v1192_v45 = vshrl.u32 %v3137_v25, 16 }
  0x54   : > { %v1860_v60 = vsel %vm830_vm0, %v1858_v46, %v1859_v47  ;;  %v600_v6 = vor.u32 %v599_v34, %v595_v56  ;;  %v701_v39 = vsel %vm557_vm1, %v696_v59, %v700_v1  ;;  %v1199_v49 = vshll.u32 %v3626_v43, 16  ;;  %v4330_v52 = vld [vmem:[%s4015_s30 + $0x98] ss:$0 sps:$4 sm:$0x11]   ;;  %v3009_v56 = vld [vmem:[%s4015_s30 + $0x84] sm:$0xe] }
  0x55   : > { %v842_v9 = vsel %vm830_vm0, %v840_v2, %v841_v11  ;;  %v1196_v46 = vrot.slane %v1194_v37, 1  ;;  %v1096_v47 = vshrl.u32 %v3129_v29, 16  ;;  %v1103_v53 = vshll.u32 %v4325_v14, 16  ;;  %v3035_v57 = vld [vmem:[%s4015_s30 + $0x90] sm:$0xf] }
  0x56   : > { %1793 = vrot.lane.b32.xlu1 %v1702_v19, %s3931_s21  ;;  %v837_v19 = vrot.slane %v3113_v0, 1  ;;  %v605_v22 = vsel %vm557_vm1, %v600_v6, %v604_v7  ;;  %v1201_v36 = vrot.slane %v1199_v49, 1  ;;  %v1211_v1 = vshll.u32 %v4330_v52, 16  ;;  %v3037_v11 = vld [vmem:[%s4015_s30 + $0x9c] sm:$0xf] }
  0x57   : > { %1777 = vrot.lane.b32.xlu0 %v1606_v21, %s3931_s21  ;;  %v865_v21 = vrot.slane %v4257_v40, 1  ;;  %v3138_v40 = vcombine.low %v2973_v30, %v4309_v15  ;;  %v1197_v34 = vor.u32 %v1196_v46, %v1192_v45  ;;  %v1105_v0 = vrot.slane %v1103_v53, 1  ;;  %v4363_v15 = vld [vmem:[%s4015_s30 + $0x34] sm:$0xf]  ;;  %v4380_v45 = vld [vmem:[%s4015_s30 + $0x40] sm:$0xf] }
  0x58   : > { %v839_v26 = vsel %vm830_vm0, %v837_v19, %v838_v13  ;;  %v3169_v7 = vcombine.low %v3009_v56, %v4293_v8  ;;  %v3161_v63 = vcombine.low %v3001_v62, %v4299_v24  ;;  %v4354_v24 = vld [vmem:[%s4015_s30 + $0x94] sm:$0xf]  ;;  %v4383_v46 = vld [vmem:[%s4015_s30 + $0x98] ss:$0 sps:$4 sm:$0x11]  }
  0x59   : > { %v866_v5 = vsel %vm830_vm0, %v864_v10, %v865_v21  ;;  %v1206_v44 = vshll.u32 %v3138_v40, 16  ;;  %v1204_v4 = vshrl.u32 %v3138_v40, 16  ;;  %v1202_v13 = vsel %vm557_vm1, %v1197_v34, %v1201_v36  ;;  %v4389_v49 = vld [vmem:[%s4015_s30 + $0x38] ss:$0 sps:$4 sm:$0x11]  }
  0x5a   : > { %1919 = vrot.lane.b32.xlu1 %v1881_v35, %s3932_s23  ;;  %v4315_v35 = vld [vmem:[%s4015_s30 + $0x34] sm:$0xf]  ;;  %v1373_v8 = vrot.slane %v3169_v7, 1  ;;  %v1374_v21 = vrot.slane %v3626_v43, 1  ;;  %v3185_v2 = vcombine.low %v3035_v57, %v4354_v24  ;;  %v1615_v62 = vshll.u32 %v4389_v49, 16 }
  0x5b   : > { %1903 = vrot.lane.b32.xlu0 %v1857_v41, %s3932_s23  ;;  %v1098_v41 = vshll.u32 %v3129_v29, 16  ;;  %v3130_v42 = vcombine.low %v2957_v33, %v4315_v35  ;;  %v1208_v59 = vrot.slane %v1206_v44, 1  ;;  %v4368_v33 = vld [vmem:[%s4015_s30 + $0xa0] sm:$0xf] }
  0x5c   : > { %v1375_v37 = vsel %vm830_vm0, %v1373_v8, %v1374_v21  ;;  %v1706_v44 = vshll.u32 %v3185_v2, 16  ;;  %v1704_v56 = vshrl.u32 %v3185_v2, 16  ;;  %v1617_v8 = vrot.slane %v1615_v62, 1 }
  0x5d   : > { %v1100_v50 = vrot.slane %v1098_v41, 1  ;;  %v1108_v3 = vshrl.u32 %v3130_v42, 16  ;;  %v1209_v16 = vor.u32 %v1208_v59, %v1204_v4  ;;  %v1711_v4 = vshll.u32 %v4383_v46, 16  ;;  %v4400_v59 = vld [vmem:[%s4015_s30 + $0x44] ss:$0 sps:$4 sm:$0x11]  }
  0x5e   : > { %770 = vrot.lane.b32.xlu1 %v689_v48, %s3927_s6  ;;  %v1110_v48 = vshll.u32 %v3130_v42, 16  ;;  %v1708_v34 = vrot.slane %v1706_v44, 1  ;;  %v3074_v44 = vld [vmem:[%s4015_s30 + $0x9c] sm:$0xe] }
  0x5f   : > { %754 = vrot.lane.b32.xlu0 %v593_v55, %s3927_s6  ;;  %v4334_v55 = vld [vmem:[%s4015_s30 + $0x38] ss:$0 sps:$4 sm:$0x11]  }
  0x60   : > { %v1115_v6 = vshll.u32 %v4334_v55, 16  ;;  %v1353_v43 = vrot.slane %v4334_v55, 1  ;;  %v3073_v55 = vld [vmem:[%s4015_s30 + $0x90] sm:$0xe] }
  0x61   : > { %v3217_v7 = vcombine.low %v3073_v55, %v4354_v24  ;;  %v1862_v55 = vrot.slane %v4389_v49, 1 }
  0x62   : > { %1921 = vrot.lane.b32.xlu1 %v1884_v58, %s3932_s23  ;;  %v1101_v58 = vor.u32 %v1100_v50, %v1096_v47  ;;  %v1117_v20 = vrot.slane %v1115_v6, 1  ;;  %v3676_v6 = vld [vmem:[%s5373_s1 + $0x10] ss:$0 sps:$4 sm:$0x33]  }
  0x63   : > { %1905 = vrot.lane.b32.xlu0 %v1860_v60, %s3932_s23  ;;  %v1112_v60 = vrot.slane %v1110_v48, 1  ;;  %3503 = vmatprep.subr.msk.bf16.mxu0 %vm2259_vm2, %v3676_v6 }
  0x64   : > { %v1106_v17 = vsel %vm557_vm1, %v1101_v58, %v1105_v0  ;;  %v4397_v58 = vld [vmem:[%s4015_s30 + $0xa4] ss:$0 sps:$4 sm:$0x11]   ;;  %v253_v0 = vld [vmem:[%s4015_s30 + $0x90] sm:$0xf]  ;;  %3504 = vmatprep.subr.msk.bf16.mxu1 %vm2259_vm2, %v3676_v6 }
  0x65   : > { %v1113_v19 = vor.u32 %v1112_v60, %v1108_v3  ;;  %v4406_v60 = vld [vmem:[%s4015_s30 + $0x94] sm:$0xf] }
  0x66   : > { %772 = vrot.lane.b32.xlu1 %v701_v39, %s3927_s6  ;;  %v1213_v39 = vrot.slane %v1211_v1, 1  ;;  %v4421_v57 = vcombine.low %v253_v0, %v4406_v60 }
  0x67   : > { %756 = vrot.lane.b32.xlu0 %v605_v22, %s3927_s6  ;;  %v3002_v22 = vld [vmem:[%s4015_s30 + $0x30] sm:$0xe]  ;;  %v1118_v30 = vsel %vm557_vm1, %v1113_v19, %v1117_v20  ;;  %v1723_v19 = vshll.u32 %v4397_v58, 16 }
  0x68   : > { %v1214_v10 = vsel %vm557_vm1, %v1209_v16, %v1213_v39  ;;  %v4414_v16 = vld [vmem:[%s4015_s30 + $0x34] sm:$0xf]  ;;  %v1713_v39 = vrot.slane %v1711_v4, 1  ;;  %v3065_v20 = vld [vmem:[%s4015_s30 + $0x30] sm:$0xe]  ;;  %5382 = vst [vmem:[#allocation5_spill] sm:$0xff] %v4421_v57 }
  0x6a   : > { %899 = vrot.lane.b32.xlu1 %v863_v27, %s3926_s5  ;;  %v1350_v27 = vrot.slane %v4325_v14, 1  ;;  %v3021_v14 = vld [vmem:[%s4015_s30 + $0x3c] sm:$0xf] }
  0x6b   : > { %883 = vrot.lane.b32.xlu0 %v839_v26, %s3926_s5  ;;  %v3019_v26 = vld [vmem:[%s4015_s30 + $0x30] sm:$0xf]  ;;  %v3178_v53 = vcombine.low %v3021_v14, %v4380_v45  ;;  %v4445_v14 = vld [vmem:[%s4015_s30 + $0xa0] sm:$0xf] }
  0x6d   : > { %v1622_v3 = vshll.u32 %v3178_v53, 16 }
  0x6e   : > { %901 = vrot.lane.b32.xlu1 %v866_v5, %s3926_s5  ;;  %v3177_v5 = vcombine.low %v3019_v26, %v4363_v15  ;;  %v4430_v26 = vld [vmem:[%s4015_s30 + $0x98] ss:$0 sps:$4 sm:$0x11]  }
  0x6f   : > { %885 = vrot.lane.b32.xlu0 %v842_v9, %s3926_s5  ;;  %v3186_v9 = vcombine.low %v3037_v11, %v4368_v33  ;;  %v1624_v24 = vrot.slane %v1622_v3, 1  ;;  %v1885_v11 = vrot.slane %v3217_v7, 1  ;;  %v710_v4 = vshll.u32 %v4430_v26, 16 }
  0x70   : > { %v1610_v48 = vshll.u32 %v3177_v5, 16  ;;  %v1608_v36 = vshrl.u32 %v3177_v5, 16  ;;  %v3218_v7 = vcombine.low %v3074_v44, %v4368_v33 }
  0x71   : > { %v1716_v12 = vshrl.u32 %v3186_v9, 16 }
  0x72   : > { %1011 = vrot.lane.b32.xlu1 %v3137_v25, %s3925_s4  ;;  %v1349_v25 = vrot.slane %v3161_v63, 1  ;;  %v1612_v1 = vrot.slane %v1610_v48, 1  ;;  %v1709_v63 = vor.u32 %v1708_v34, %v1704_v56  ;;  %v4450_v48 = vld [vmem:[%s4015_s30 + $0x40] sm:$0xf]  ;;  %v703_v56 = vshrl.u32 %v4421_v57, 16 }
  0x73   : > { %995 = vrot.lane.b32.xlu0 %v3129_v29, %s3925_s4  ;;  %v3162_v29 = vcombine.low %v3002_v22, %v4315_v35  ;;  %v1376_v35 = vrot.slane %v3170_v61, 1  ;;  %v1620_v61 = vshrl.u32 %v3178_v53, 16 }
  0x74   : > { %v1351_v41 = vsel %vm830_vm0, %v1349_v25, %v1350_v27  ;;  %v1613_v22 = vor.u32 %v1612_v1, %v1608_v36  ;;  %v2261_v25 = vsel %vm2259_vm2, %v3676_v6, 0  ;;  %v3209_v27 = vcombine.low %v3065_v20, %v4363_v15 }
  0x75   : > { %3464 = vmatpush3.bf16.msra.mxu0 %v2261_v25  ;;  %3502 = vmatpush3.bf16.msra.mxu1 %v2261_v25  ;;  %v705_v15 = vshll.u32 %v4421_v57, 16  ;;  %v1889_v25 = vrot.slane %v4397_v58, 1 }
  0x76   : > { %1013 = vrot.lane.b32.xlu1 %v3138_v40, %s3925_s4  ;;  %v1377_v40 = vrot.slane %v4330_v52, 1  ;;  %v1718_v52 = vshll.u32 %v3186_v9, 16 }
  0x77   : > { %997 = vrot.lane.b32.xlu0 %v3130_v42, %s3925_s4  ;;  %v1352_v42 = vrot.slane %v3162_v29, 1  ;;  %v707_v34 = vrot.slane %v705_v15, 1  ;;  %v289_v15 = vld [vmem:[%s4015_s30 + $0x90] sm:$0xe] }
  0x78   : > { %v1378_v47 = vsel %vm830_vm0, %v1376_v35, %v1377_v40  ;;  %v4437_v35 = vld [vmem:[%s4015_s30 + $0x38] ss:$0 sps:$4 sm:$0x11]   ;;  %v1618_v40 = vsel %vm557_vm1, %v1613_v22, %v1617_v8 }
  0x79   : > { %v1354_v50 = vsel %vm830_vm0, %v1352_v42, %v1353_v43  ;;  %v614_v36 = vshll.u32 %v4437_v35, 16 }
  0x7a   : > { %1283 = vrot.lane.b32.xlu1 %v1202_v13, %s3928_s7  ;;  %v237_v13 = vld [vmem:[%s4015_s30 + $0x30] sm:$0xf] }
  0x7b   : > { %1267 = vrot.lane.b32.xlu0 %v1106_v17, %s3928_s7  ;;  %v1720_v17 = vrot.slane %v1718_v52, 1  ;;  %v4425_v21 = vcombine.low %v237_v13, %v4414_v16  ;;  %v708_v13 = vor.u32 %v707_v34, %v703_v56 }
  0x7d   : > { %5383 = vst [vmem:[#allocation6_spill] sm:$0xff] %v4425_v21  ;;  %v1721_v29 = vor.u32 %v1720_v17, %v1716_v12  ;;  %v609_v43 = vshll.u32 %v4425_v21, 16  ;;  %v607_v0 = vshrl.u32 %v4425_v21, 16  ;;  %v616_v17 = vrot.slane %v614_v36, 1 }
  0x7e   : > { %1285 = vrot.lane.b32.xlu1 %v1214_v10, %s3928_s7  ;;  %v1627_v10 = vshll.u32 %v4400_v59, 16 }
  0x7f   : > { %1269 = vrot.lane.b32.xlu0 %v1118_v30, %s3928_s7  ;;  %v1725_v30 = vrot.slane %v1723_v19, 1  ;;  %v611_v3 = vrot.slane %v609_v43, 1  ;;  %v4478_v19 = vld [vmem:[%s4015_s30 + $0xa4] ss:$0 sps:$4 sm:$0x11]  }
  0x80   : > { %v1629_v42 = vrot.slane %v1627_v10, 1  ;;  %v1888_v10 = vrot.slane %v3218_v7, 1  ;;  %v281_v43 = vld [vmem:[%s4015_s30 + $0x30] sm:$0xe] }
  0x81   : > { %v1726_v52 = vsel %vm557_vm1, %v1721_v29, %v1725_v30  ;;  %v612_v8 = vor.u32 %v611_v3, %v607_v0  ;;  %v1865_v29 = vrot.slane %v4400_v59, 1  ;;  %v3115_v34 = vcombine.low %v281_v43, %v4414_v16  ;;  %v2975_v3 = vld [vmem:[%s4015_s30 + $0x9c] sm:$0xf] }
  0x82   : > { %1411 = vrot.lane.b32.xlu1 %v1375_v37, %s3929_s8  ;;  %v1886_v37 = vrot.slane %v4383_v46, 1  ;;  %v3066_v46 = vld [vmem:[%s4015_s30 + $0x3c] sm:$0xe]  ;;  %v1890_v44 = vsel %vm830_vm0, %v1888_v10, %v1889_v25  ;;  %v868_v0 = vrot.slane %v4430_v26, 1  ;;  %v2977_v25 = vld [vmem:[%s4015_s30 + $0xa8] sm:$0xf] }
  0x83   : > { %1395 = vrot.lane.b32.xlu0 %v1351_v41, %s3929_s8  ;;  %v1625_v41 = vor.u32 %v1624_v24, %v1620_v61 }
  0x84   : > { %v1887_v12 = vsel %vm830_vm0, %v1885_v11, %v1886_v37  ;;  %v722_v37 = vshll.u32 %v4478_v19, 16 }
  0x85   : > { %v1630_v62 = vsel %vm557_vm1, %v1625_v41, %v1629_v42 }
  0x86   : > { %1413 = vrot.lane.b32.xlu1 %v1378_v47, %s3929_s8  ;;  %v239_v47 = vld [vmem:[%s4015_s30 + $0x3c] sm:$0xf] }
  0x87   : > { %1397 = vrot.lane.b32.xlu0 %v1354_v50, %s3929_s8  ;;  %v4468_v49 = vcombine.low %v239_v47, %v4450_v48 }
  0x89   : > { %5385 = vst [vmem:[#allocation8_spill] sm:$0xff] %v4468_v49  ;;  %v621_v61 = vshll.u32 %v4468_v49, 16  ;;  %v619_v41 = vshrl.u32 %v4468_v49, 16 }
  0x8a   : > { %1523 = vrot.lane.b32.xlu1 %v3185_v2, %s3930_s11  ;;  %v1714_v2 = vsel %vm557_vm1, %v1709_v63, %v1713_v39  ;;  %v3210_v63 = vcombine.low %v3066_v46, %v4380_v45  ;;  %v712_v39 = vrot.slane %v710_v4, 1  ;;  %v4485_v45 = vld [vmem:[%s4015_s30 + $0x44] ss:$0 sps:$4 sm:$0x11]   ;;  %v724_v46 = vrot.slane %v722_v37, 1 }
  0x8b   : > { %1507 = vrot.lane.b32.xlu0 %v3177_v5, %s3930_s11  ;;  %v623_v42 = vrot.slane %v621_v61, 1  ;;  %v626_v58 = vshll.u32 %v4485_v45, 16  ;;  %v290_v4 = vld [vmem:[%s4015_s30 + $0x9c] sm:$0xe] }
  0x8c   : > { %v713_v30 = vsel %vm557_vm1, %v708_v13, %v712_v39  ;;  %v843_v39 = vrot.slane %v3115_v34, 1 }
  0x8d   : > { %v628_v56 = vrot.slane %v626_v58, 1 }
  0x8e   : > { %1525 = vrot.lane.b32.xlu1 %v3186_v9, %s3930_s11  ;;  %v255_v9 = vld [vmem:[%s4015_s30 + $0x9c] sm:$0xf] }
  0x8f   : > { %1509 = vrot.lane.b32.xlu0 %v3178_v53, %s3930_s11  ;;  %v1861_v53 = vrot.slane %v3209_v27, 1  ;;  %v4463_v1 = vcombine.low %v255_v9, %v4445_v14  ;;  %v1864_v27 = vrot.slane %v3210_v63, 1  ;;  %v3123_v9 = vcombine.low %v289_v15, %v4406_v60  ;;  %v282_v60 = vld [vmem:[%s4015_s30 + $0x3c] sm:$0xe]  ;;  %v2961_v15 = vld [vmem:[%s4015_s30 + $0x48] sm:$0xf] }
  0x90   : > { %v3124_v63 = vcombine.low %v290_v4, %v4445_v14  ;;  %v3116_v26 = vcombine.low %v282_v60, %v4450_v48 }
  0x91   : > { %5384 = vst [vmem:[#allocation7_spill] sm:$0xff] %v4463_v1  ;;  %v717_v20 = vshll.u32 %v4463_v1, 16  ;;  %v1863_v33 = vsel %vm830_vm0, %v1861_v53, %v1862_v55  ;;  %v1866_v53 = vsel %vm830_vm0, %v1864_v27, %v1865_v29  ;;  %v624_v55 = vor.u32 %v623_v42, %v619_v41  ;;  %v4544_v27 = vld [vmem:[%s4015_s30 + $0xac] sm:$0xf] }
  0x92   : > { %v4440_v5 = vpop.permute.xlu1 %1007  ;;  %1795 = vrot.lane.b32.xlu1 %v1714_v2, %s3931_s21  ;;  %v715_v2 = vshrl.u32 %v4463_v1, 16  ;;  %v870_v10 = vrot.slane %v3124_v63, 1  ;;  %v3140_v41 = vcombine.low %v2977_v25, %v4544_v27  ;;  %v4559_v42 = vld [vmem:[%s4015_s30 + $0xa4] ss:$0 sps:$4 sm:$0x11]  }
  0x93   : > { %v4454_v50 = vpop.permute.xlu0 %991  ;;  %1779 = vrot.lane.b32.xlu0 %v1618_v40, %s3931_s21  ;;  %v719_v11 = vrot.slane %v717_v20, 1  ;;  %v617_v40 = vsel %vm557_vm1, %v612_v8, %v616_v17  ;;  %v629_v13 = vsel %vm557_vm1, %v624_v55, %v628_v56  ;;  %v844_v17 = vrot.slane %v4437_v35, 1  ;;  %v2959_v20 = vld [vmem:[%s4015_s30 + $0x3c] sm:$0xf] }
  0x94   : > { %v871_v35 = vrot.slane %v4478_v19, 1  ;;  %v1230_v55 = vshll.u32 %v3140_v41, 16  ;;  %v1223_v34 = vshll.u32 %v4559_v42, 16  ;;  %v4582_v63 = vld [vmem:[%s4015_s30 + $0x50] ss:$0 sps:$4 sm:$0x11]  }
  0x95   : > { %v720_v47 = vor.u32 %v719_v11, %v715_v2  ;;  %v846_v2 = vrot.slane %v3116_v26, 1  ;;  %v847_v11 = vrot.slane %v4485_v45, 1  ;;  %v3011_v26 = vld [vmem:[%s4015_s30 + $0x9c] sm:$0xe] }
  0x96   : > { %v4470_v6 = vpop.permute.xlu1 %895  ;;  %1797 = vrot.lane.b32.xlu1 %v1726_v52, %s3931_s21  ;;  %v872_v58 = vsel %vm830_vm0, %v870_v10, %v871_v35  ;;  %v1232_v10 = vrot.slane %v1230_v55, 1  ;;  %v3003_v25 = vld [vmem:[%s4015_s30 + $0x3c] sm:$0xe] }
  0x97   : > { %1781 = vrot.lane.b32.xlu0 %v1630_v62, %s3931_s21  ;;  %v867_v62 = vrot.slane %v3123_v9, 1  ;;  %v725_v7 = vsel %vm557_vm1, %v720_v47, %v724_v46  ;;  %v4564_v9 = vld [vmem:[%s4015_s30 + $0x44] ss:$0 sps:$4 sm:$0x11]  }
  0x98   : > { %v4481_v22 = vpop.permute.xlu0 %879 }
  0x99   : > { %v869_v61 = vsel %vm830_vm0, %v867_v62, %v868_v0  ;;  %v4576_v62 = vld [vmem:[%s4015_s30 + $0xb0] ss:$0 sps:$4 sm:$0x11]  }
  0x9a   : > { %1923 = vrot.lane.b32.xlu1 %v1887_v12, %s3932_s23  ;;  %v4523_v12 = vld [vmem:[%s4015_s30 + $0xa0] sm:$0xf]  ;;  %v1235_v35 = vshll.u32 %v4576_v62, 16 }
  0x9b   : > { %v4489_v24 = vpop.permute.xlu1 %897  ;;  %1907 = vrot.lane.b32.xlu0 %v1863_v33, %s3932_s23  ;;  %v4532_v33 = vld [vmem:[%s4015_s30 + $0x40] sm:$0xf]  ;;  %v3139_v14 = vcombine.low %v2975_v3, %v4523_v12 }
  0x9c   : > { %v3131_v48 = vcombine.low %v2959_v20, %v4532_v33  ;;  %v1225_v20 = vrot.slane %v1223_v34, 1  ;;  %v1237_v34 = vrot.slane %v1235_v35, 1 }
  0x9d   : > { %v4501_v59 = vpop.permute.xlu0 %881  ;;  %v1218_v19 = vshll.u32 %v3139_v14, 16 }
  0x9e   : > { %774 = vrot.lane.b32.xlu1 %v713_v30, %s3927_s6  ;;  %v845_v30 = vsel %vm830_vm0, %v843_v39, %v844_v17  ;;  %v1122_v43 = vshll.u32 %v3131_v48, 16  ;;  %v1120_v4 = vshrl.u32 %v3131_v48, 16  ;;  %v1228_v17 = vshrl.u32 %v3140_v41, 16 }
  0x9f   : > { %758 = vrot.lane.b32.xlu0 %v617_v40, %s3927_s6  ;;  %v4554_v40 = vld [vmem:[%s4015_s30 + $0x4c] sm:$0xf]  ;;  %v1220_v56 = vrot.slane %v1218_v19, 1 }
  0xa0   : > { %v4508_v52 = vpop.permute.xlu1 %752  ;;  %v3132_v47 = vcombine.low %v2961_v15, %v4554_v40  ;;  %v1124_v60 = vrot.slane %v1122_v43, 1  ;;  %v1139_v15 = vshll.u32 %v4582_v63, 16  ;;  %v4598_v43 = vld [vmem:[%s4015_s30 + $0xac] sm:$0xf] }
  0xa1   : > { %v4513_v36 = vpop.permute.xlu0 %750 }
  0xa2   : > { %1925 = vrot.lane.b32.xlu1 %v1890_v44, %s3932_s23  ;;  %v848_v44 = vsel %vm830_vm0, %v846_v2, %v847_v11  ;;  %v1134_v3 = vshll.u32 %v3132_v47, 16  ;;  %v1132_v11 = vshrl.u32 %v3132_v47, 16 }
  0xa3   : > { %1909 = vrot.lane.b32.xlu0 %v1866_v53, %s3932_s23  ;;  %v1216_v53 = vshrl.u32 %v3139_v14, 16 }
  0xa4   : > { %v4525_v16 = vpop.permute.xlu1 %768 }
  0xa5   : > { %v4534_v8 = vpop.permute.xlu0 %766  ;;  %v1221_v39 = vor.u32 %v1220_v56, %v1216_v53  ;;  %v3012_v53 = vld [vmem:[%s4015_s30 + $0xa8] sm:$0xe]  ;;  %v1233_v56 = vor.u32 %v1232_v10, %v1228_v17  ;;  %v4624_v10 = vld [vmem:[%s4015_s30 + $0xb8] sm:$0xf] }
  0xa6   : > { %776 = vrot.lane.b32.xlu1 %v725_v7, %s3927_s6  ;;  %v1127_v7 = vshll.u32 %v4564_v9, 16  ;;  %v3172_v17 = vcombine.low %v3012_v53, %v4544_v27  ;;  %v4632_v27 = vld [vmem:[%s4015_s30 + $0x58] sm:$0xf] }
  0xa7   : > { %760 = vrot.lane.b32.xlu0 %v629_v13, %s3927_s6  ;;  %v1226_v55 = vsel %vm557_vm1, %v1221_v39, %v1225_v20  ;;  %v4617_v39 = vld [vmem:[%s4015_s30 + $0x4c] sm:$0xf]  ;;  %v1380_v20 = vrot.slane %v4559_v42, 1 }
  0xa8   : > { %v4546_v29 = vpop.permute.xlu1 %1009  ;;  %v1129_v2 = vrot.slane %v1127_v7, 1  ;;  %v1141_v7 = vrot.slane %v1139_v15, 1 }
  0xa9   : > { %v4550_v37 = vpop.permute.xlu0 %993 }
  0xaa   : > { %903 = vrot.lane.b32.xlu1 %v869_v61, %s3926_s5  ;;  %v1125_v61 = vor.u32 %v1124_v60, %v1120_v4  ;;  %v3004_v4 = vld [vmem:[%s4015_s30 + $0x48] sm:$0xe] }
  0xab   : > { %887 = vrot.lane.b32.xlu0 %v845_v30, %s3926_s5  ;;  %v3164_v35 = vcombine.low %v3004_v4, %v4554_v40  ;;  %v4642_v40 = vld [vmem:[%s4015_s30 + $0xb0] ss:$0 sps:$4 sm:$0x11]   ;;  %v1383_v4 = vrot.slane %v4576_v62, 1 }
  0xac   : > { %v4566_v45 = vpop.permute.xlu1 %1279 }
  0xad   : > { %v4570_v46 = vpop.permute.xlu0 %1263 }
  0xae   : > { %905 = vrot.lane.b32.xlu1 %v872_v58, %s3926_s5  ;;  %v3039_v58 = vld [vmem:[%s4015_s30 + $0xa8] sm:$0xf] }
  0xaf   : > { %889 = vrot.lane.b32.xlu0 %v848_v44, %s3926_s5  ;;  %v3163_v44 = vcombine.low %v3003_v25, %v4532_v33  ;;  %v1238_v25 = vsel %vm557_vm1, %v1233_v56, %v1237_v34 }
  0xb0   : > { %v4578_v0 = vpop.permute.xlu1 %1281 }
  0xb1   : > { %v4584_v13 = vpop.permute.xlu0 %1265 }
  0xb2   : > { %1015 = vrot.lane.b32.xlu1 %v3139_v14, %s3925_s4  ;;  %v1136_v14 = vrot.slane %v1134_v3, 1  ;;  %v1130_v3 = vsel %vm557_vm1, %v1125_v61, %v1129_v2  ;;  %v3041_v61 = vld [vmem:[%s4015_s30 + $0xb4] sm:$0xf]  ;;  %v1355_v2 = vrot.slane %v3163_v44, 1 }
  0xb3   : > { %999 = vrot.lane.b32.xlu0 %v3131_v48, %s3925_s4  ;;  %v3171_v48 = vcombine.low %v3011_v26, %v4523_v12  ;;  %v4647_v44 = vcombine.low %v3041_v61, %v4624_v10 }
  0xb4   : > { %v4591_v30 = vpop.permute.xlu1 %1407  ;;  %v1137_v12 = vor.u32 %v1136_v14, %v1132_v11  ;;  %v1356_v11 = vrot.slane %v4564_v9, 1  ;;  %v3025_v14 = vld [vmem:[%s4015_s30 + $0x54] sm:$0xf] }
  0xb5   : > { %v4594_v19 = vpop.permute.xlu0 %1391  ;;  %v1379_v26 = vrot.slane %v3171_v48, 1  ;;  %v4652_v56 = vcombine.low %v3025_v14, %v4632_v27  ;;  %v1742_v62 = vshll.u32 %v4647_v44, 16 }
  0xb6   : > { %1017 = vrot.lane.b32.xlu1 %v3140_v41, %s3925_s4  ;;  %v4611_v41 = vcombine.low %v3039_v58, %v4598_v43  ;;  %v1142_v58 = vsel %vm557_vm1, %v1137_v12, %v1141_v7  ;;  %v1357_v34 = vsel %vm830_vm0, %v1355_v2, %v1356_v11  ;;  %v1359_v12 = vrot.slane %v4582_v63, 1  ;;  %v4667_v63 = vld [vmem:[%s4015_s30 + $0x50] ss:$0 sps:$4 sm:$0x11]  }
  0xb7   : > { %1001 = vrot.lane.b32.xlu0 %v3132_v47, %s3925_s4  ;;  %v3023_v47 = vld [vmem:[%s4015_s30 + $0x48] sm:$0xf]  ;;  %v1381_v9 = vsel %vm830_vm0, %v1379_v26, %v1380_v20  ;;  %v1735_v20 = vshll.u32 %v4642_v40, 16  ;;  %v4675_v2 = vld [vmem:[%s4015_s30 + $0xbc] ss:$0 sps:$4 sm:$0x11]   ;;  %v1937_v11 = vsel %vm1935_vm3, %v4052_v23, %v4513_v36 }
  0xb8   : > { %v4607_v60 = vpop.permute.xlu1 %1409  ;;  %v1730_v42 = vshll.u32 %v4611_v41, 16  ;;  %v4639_v48 = vcombine.low %v3023_v47, %v4617_v39 }
  0xb9   : > { %v4613_v33 = vpop.permute.xlu0 %1393  ;;  %v1737_v1 = vrot.slane %v1735_v20, 1 }
  0xba   : > { %1287 = vrot.lane.b32.xlu1 %v1226_v55, %s3928_s7  ;;  %v1382_v55 = vrot.slane %v3172_v17, 1  ;;  %v1634_v47 = vshll.u32 %v4639_v48, 16  ;;  %v1728_v17 = vshrl.u32 %v4611_v41, 16  ;;  %v1732_v26 = vrot.slane %v1730_v42, 1 }
  0xbb   : > { %1271 = vrot.lane.b32.xlu0 %v1130_v3, %s3928_s7  ;;  %v1358_v3 = vrot.slane %v3164_v35, 1  ;;  %v1953_v35 = vsel %vm1935_vm3, %v4047_v18, %v4534_v8  ;;  %v3075_v18 = vld [vmem:[%s4015_s30 + $0xa8] sm:$0xe]  ;;  %v4685_v8 = vld [vmem:[%s4015_s30 + $0x5c] ss:$0 sps:$4 sm:$0x11]  }
  0xbc   : > { %v4634_v15 = vpop.permute.xlu1 %1519  ;;  %v1384_v14 = vsel %vm830_vm0, %v1382_v55, %v1383_v4  ;;  %v1733_v49 = vor.u32 %v1732_v26, %v1728_v17  ;;  %v1632_v21 = vshrl.u32 %v4639_v48, 16  ;;  %v1636_v57 = vrot.slane %v1634_v47, 1 }
  0xbd   : > { %v4644_v53 = vpop.permute.xlu0 %1503  ;;  %v1986_v23 = vsel %vm1968_vm4, %v1953_v35, %v4470_v6  ;;  %v1740_v55 = vshrl.u32 %v4647_v44, 16  ;;  %v1744_v4 = vrot.slane %v1742_v62, 1  ;;  %v1644_v47 = vshrl.u32 %v4652_v56, 16 }
  0xbe   : > { %1289 = vrot.lane.b32.xlu1 %v1238_v25, %s3928_s7  ;;  %v1646_v25 = vshll.u32 %v4652_v56, 16  ;;  %v3219_v6 = vcombine.low %v3075_v18, %v4598_v43  ;;  %v1651_v20 = vshll.u32 %v4685_v8, 16  ;;  %v1738_v35 = vsel %vm557_vm1, %v1733_v49, %v1737_v1 }
  0xbf   : > { %1273 = vrot.lane.b32.xlu0 %v1142_v58, %s3928_s7  ;;  %v1360_v58 = vsel %vm830_vm0, %v1358_v3, %v1359_v12  ;;  %v1970_v3 = vsel %vm1968_vm4, %v1937_v11, %v4481_v22  ;;  %v1747_v12 = vshll.u32 %v4675_v2, 16  ;;  %v2019_v22 = vsel %vm2001_vm5, %v1986_v23, %v4440_v5  ;;  %v257_v11 = vld [vmem:[%s4015_s30 + $0xa8] sm:$0xf]  ;;  %v4719_v23 = vld [vmem:[%s4015_s30 + $0x4c] sm:$0xf] }
  0xc0   : > { %v4658_v7 = vpop.permute.xlu1 %1521  ;;  %v1648_v17 = vrot.slane %v1646_v25, 1  ;;  %v1637_v25 = vor.u32 %v1636_v57, %v1632_v21  ;;  %v2052_v43 = vsel %vm2034_vm6, %v2019_v22, %v4566_v45  ;;  %v241_v5 = vld [vmem:[%s4015_s30 + $0x48] sm:$0xf]  ;;  %v259_v22 = vld [vmem:[%s4015_s30 + $0xb4] sm:$0xf] }
  0xc1   : > { %v4663_v61 = vpop.permute.xlu0 %1505  ;;  %v2085_v57 = vsel %vm2067_vm7, %v2052_v43, %v4591_v30  ;;  %v1749_v21 = vrot.slane %v1747_v12, 1  ;;  %v1955_v30 = vsel %vm1935_vm3, %v4059_v31, %v4525_v16  ;;  %v1891_v31 = vrot.slane %v3219_v6, 1  ;;  %v4751_v16 = vld [vmem:[%s4015_s30 + $0xb0] ss:$0 sps:$4 sm:$0x11]  }
  0xc2   : > { %1415 = vrot.lane.b32.xlu1 %v1381_v9, %s3929_s8  ;;  %v3067_v9 = vld [vmem:[%s4015_s30 + $0x48] sm:$0xe]  ;;  %v1649_v49 = vor.u32 %v1648_v17, %v1644_v47  ;;  %v2118_v45 = vsel %vm2100_vm8, %v2085_v57, %v4634_v15  ;;  %v4743_v15 = vcombine.low %v241_v5, %v4719_v23  ;;  %v1988_v47 = vsel %vm1968_vm4, %v1955_v30, %v4489_v24 }
  0xc3   : > { %1399 = vrot.lane.b32.xlu0 %v1357_v34, %s3929_s8  ;;  %v1639_v34 = vshll.u32 %v4667_v63, 16  ;;  %v3211_v26 = vcombine.low %v3067_v9, %v4617_v39  ;;  %v2003_v39 = vsel %vm2001_vm5, %v1970_v3, %v4454_v50  ;;  %v1745_v9 = vor.u32 %v1744_v4, %v1740_v55 }
  0xc4   : > { %v1792_v42 = vpop.permute.xlu1 %1791  ;;  %v2036_v1 = vsel %vm2034_vm6, %v2003_v39, %v4570_v46  ;;  %v1868_v17 = vrot.slane %v4667_v63, 1  ;;  %v734_v43 = vshll.u32 %v4751_v16, 16  ;;  %v243_v39 = vld [vmem:[%s4015_s30 + $0x54] sm:$0xf] }
  0xc5   : > { %v1776_v36 = vpop.permute.xlu0 %1775  ;;  %v1641_v18 = vrot.slane %v1639_v34, 1  ;;  %v2069_v50 = vsel %vm2067_vm7, %v2036_v1, %v4594_v19  ;;  %v1653_v34 = vrot.slane %v1651_v20, 1  ;;  %v2151_v19 = vsel %vm2133_vm9, %v2118_v45, %v1792_v42 }
  0xc6   : > { %1417 = vrot.lane.b32.xlu1 %v1384_v14, %s3929_s8  ;;  %v4709_v14 = vld [vmem:[%s4015_s30 + $0xac] sm:$0xf]  ;;  %v633_v20 = vshll.u32 %v4743_v15, 16 }
  0xc7   : > { %1401 = vrot.lane.b32.xlu0 %v1360_v58, %s3929_s8  ;;  %v4734_v46 = vcombine.low %v257_v11, %v4709_v14  ;;  %v1642_v42 = vsel %vm557_vm1, %v1637_v25, %v1641_v18  ;;  %v4780_v25 = vld [vmem:[%s4015_s30 + $0xb8] sm:$0xf] }
  0xc8   : > { %v4704_v62 = vpop.permute.xlu1 %1793  ;;  %v4792_v18 = vld [vmem:[%s4015_s30 + $0x58] sm:$0xf] }
  0xc9   : > { %v4715_v58 = vpop.permute.xlu0 %1777  ;;  %v729_v6 = vshll.u32 %v4734_v46, 16 }
  0xca   : > { %1527 = vrot.lane.b32.xlu1 %v4611_v41, %s3930_s11  ;;  %v2102_v41 = vsel %vm2100_vm8, %v2069_v50, %v4644_v53  ;;  %v4809_v50 = vcombine.low %v259_v22, %v4780_v25 }
  0xcb   : > { %1511 = vrot.lane.b32.xlu0 %v4639_v48, %s3930_s11  ;;  %v1939_v48 = vsel %vm1935_vm3, %v4065_v38, %v4508_v52  ;;  %v2135_v4 = vsel %vm2133_vm9, %v2102_v41, %v1776_v36  ;;  %v1892_v38 = vrot.slane %v4642_v40, 1  ;;  %v1867_v52 = vrot.slane %v3211_v26, 1  ;;  %v4760_v36 = vld [vmem:[%s4015_s30 + $0x50] ss:$0 sps:$4 sm:$0x11]  }
  0xcc   : > { %v1920_v55 = vpop.permute.xlu1 %1919  ;;  %v2021_v40 = vsel %vm2001_vm5, %v1988_v47, %v4546_v29  ;;  %v1972_v26 = vsel %vm1968_vm4, %v1939_v48, %v4501_v59  ;;  %v727_v59 = vshrl.u32 %v4734_v46, 16  ;;  %v736_v48 = vrot.slane %v734_v43, 1  ;;  %v283_v43 = vld [vmem:[%s4015_s30 + $0x48] sm:$0xe] }
  0xcd   : > { %v1904_v3 = vpop.permute.xlu0 %1903  ;;  %v2184_v12 = vsel %vm2166_vm10, %v2151_v19, %v1920_v55  ;;  %v2005_v63 = vsel %vm2001_vm5, %v1972_v26, %v4550_v37  ;;  %v2054_v29 = vsel %vm2034_vm6, %v2021_v40, %v4578_v0  ;;  %v631_v37 = vshrl.u32 %v4743_v15, 16 }
  0xce   : > { %1529 = vrot.lane.b32.xlu1 %v4647_v44, %s3930_s11  ;;  %v2168_v53 = vsel %vm2166_vm10, %v2135_v4, %v1904_v3  ;;  %3481 = vmatprep.mubr.msk.bf16.mxu1 %vm2226_vm11, %v2184_v12  ;;  %v1750_v44 = vsel %vm557_vm1, %v1745_v9, %v1749_v21  ;;  %v2038_v9 = vsel %vm2034_vm6, %v2005_v63, %v4584_v13  ;;  %v638_v0 = vshll.u32 %v4760_v36, 16  ;;  %v3076_v21 = vld [vmem:[%s4015_s30 + $0xb4] sm:$0xe]  ;;  %v4830_v4 = vld [vmem:[%s4015_s30 + $0xbc] ss:$0 sps:$4 sm:$0x11]  }
  0xcf   : > { %1513 = vrot.lane.b32.xlu0 %v4652_v56, %s3930_s11  ;;  %3465 = vmatprep.mubr.msk.bf16.mxu0 %vm2226_vm11, %v2168_v53  ;;  %v1654_v56 = vsel %vm557_vm1, %v1649_v49, %v1653_v34  ;;  %v2087_v5 = vsel %vm2067_vm7, %v2054_v29, %v4607_v60  ;;  %v2071_v1 = vsel %vm2067_vm7, %v2038_v9, %v4613_v33  ;;  %v3068_v49 = vld [vmem:[%s4015_s30 + $0x54] sm:$0xe]  ;;  %v731_v13 = vrot.slane %v729_v6, 1 }
  0xd0   : > { %v4774_v24 = vpop.permute.xlu1 %770  ;;  %v2120_v57 = vsel %vm2100_vm8, %v2087_v5, %v4658_v7  ;;  %v2104_v60 = vsel %vm2100_vm8, %v2071_v1, %v4663_v61  ;;  %v635_v33 = vrot.slane %v633_v20, 1  ;;  %v4816_v34 = vcombine.low %v243_v39, %v4792_v18 }
  0xd1   : > { %v4786_v11 = vpop.permute.xlu0 %754  ;;  %v2137_v7 = vsel %vm2133_vm9, %v2104_v60, %v4715_v58  ;;  %v3220_v19 = vcombine.low %v3076_v21, %v4624_v10  ;;  %v3212_v61 = vcombine.low %v3068_v49, %v4632_v27  ;;  %v732_v58 = vor.u32 %v731_v13, %v727_v59  ;;  %v292_v13 = vld [vmem:[%s4015_s30 + $0xb4] sm:$0xe] }
  0xd2   : > { %1799 = vrot.lane.b32.xlu1 %v1738_v35, %s3931_s21  ;;  %v2153_v35 = vsel %vm2133_vm9, %v2120_v57, %v4704_v62  ;;  %v1893_v62 = vsel %vm830_vm0, %v1891_v31, %v1892_v38  ;;  %v741_v10 = vshll.u32 %v4809_v50, 16  ;;  %v1869_v27 = vsel %vm830_vm0, %v1867_v52, %v1868_v17 }
  0xd3   : > { %1783 = vrot.lane.b32.xlu0 %v1642_v42, %s3931_s21  ;;  %v636_v12 = vor.u32 %v635_v33, %v631_v37  ;;  %v640_v53 = vrot.slane %v638_v0, 1  ;;  %v4837_v42 = vld [vmem:[%s4015_s30 + $0x5c] ss:$0 sps:$4 sm:$0x11]   ;;  %v645_v47 = vshll.u32 %v4816_v34, 16  ;;  %v1894_v31 = vrot.slane %v3220_v19, 1 }
  0xd4   : > { %v1922_v45 = vpop.permute.xlu1 %1921  ;;  %v1895_v38 = vrot.slane %v4675_v2, 1  ;;  %v1870_v6 = vrot.slane %v3212_v61, 1  ;;  %v1871_v40 = vrot.slane %v4685_v8, 1  ;;  %v737_v52 = vsel %vm557_vm1, %v732_v58, %v736_v48  ;;  %v291_v8 = vld [vmem:[%s4015_s30 + $0xa8] sm:$0xe] }
  0xd5   : > { %v2186_v30 = vsel %vm2166_vm10, %v2153_v35, %v1922_v45  ;;  %v1906_v41 = vpop.permute.xlu0 %1905  ;;  %v739_v17 = vshrl.u32 %v4809_v50, 16  ;;  %v743_v26 = vrot.slane %v741_v10, 1  ;;  %v641_v22 = vsel %vm557_vm1, %v636_v12, %v640_v53  ;;  %v284_v35 = vld [vmem:[%s4015_s30 + $0x54] sm:$0xe] }
  0xd6   : > { %v2170_v55 = vsel %vm2166_vm10, %v2137_v7, %v1906_v41  ;;  %1801 = vrot.lane.b32.xlu1 %v1750_v44, %s3931_s21  ;;  %3482 = vmatmul.mubr.msk.bf16.vlgmr.msra.gmra.mrb[0].mxu1 %vm2226_vm11, %v2186_v30  ;;  %v643_v63 = vshrl.u32 %v4816_v34, 16  ;;  %v647_v29 = vrot.slane %v645_v47, 1  ;;  %v650_v2 = vshll.u32 %v4837_v42, 16  ;;  %v2963_v48 = vld [vmem:[%s4015_s30 + $0x54] sm:$0xf] }
  0xd7   : > { %1785 = vrot.lane.b32.xlu0 %v1654_v56, %s3931_s21  ;;  %3466 = vmatmul.mubr.msk.bf16.vlgmr.msra.gmra.mrb[0].mxu0 %vm2226_vm11, %v2170_v55  ;;  %v746_v56 = vshll.u32 %v4830_v4, 16  ;;  %v1896_v39 = vsel %vm830_vm0, %v1894_v31, %v1895_v38  ;;  %v744_v9 = vor.u32 %v743_v26, %v739_v17  ;;  %v3125_v37 = vcombine.low %v291_v8, %v4709_v14  ;;  %v2979_v55 = vld [vmem:[%s4015_s30 + $0xb4] sm:$0xf]  ;;  %v2981_v38 = vld [vmem:[%s4015_s30 + $0xc0] sm:$0xf] }
  0xd8   : > { %v4833_v3 = vpop.permute.xlu1 %772  ;;  %v1872_v1 = vsel %vm830_vm0, %v1870_v6, %v1871_v40  ;;  %v648_v57 = vor.u32 %v647_v29, %v643_v63  ;;  %v652_v21 = vrot.slane %v650_v2, 1  ;;  %v3117_v49 = vcombine.low %v283_v43, %v4719_v23  ;;  %v4902_v6 = vld [vmem:[%s4015_s30 + $0xc4] sm:$0xf] }
  0xd9   : > { %v4840_v44 = vpop.permute.xlu0 %756  ;;  %v748_v5 = vrot.slane %v746_v56, 1  ;;  %v873_v45 = vrot.slane %v3125_v37, 1  ;;  %v874_v33 = vrot.slane %v4751_v16, 1  ;;  %v3126_v7 = vcombine.low %v292_v13, %v4780_v25  ;;  %v4888_v16 = vld [vmem:[%s4015_s30 + $0x58] sm:$0xf] }
  0xda   : > { %1927 = vrot.lane.b32.xlu1 %v1893_v62, %s3932_s23  ;;  %v653_v23 = vsel %vm557_vm1, %v648_v57, %v652_v21  ;;  %v849_v41 = vrot.slane %v3117_v49, 1  ;;  %v850_v19 = vrot.slane %v4760_v36, 1  ;;  %v3118_v61 = vcombine.low %v284_v35, %v4792_v18  ;;  %v4882_v62 = vld [vmem:[%s4015_s30 + $0xb8] sm:$0xf]  ;;  %v4908_v17 = vld [vmem:[%s4015_s30 + $0x64] sm:$0xf] }
  0xdb   : > { %1911 = vrot.lane.b32.xlu0 %v1869_v27, %s3932_s23  ;;  %v749_v14 = vsel %vm557_vm1, %v744_v9, %v748_v5  ;;  %v875_v36 = vsel %vm830_vm0, %v873_v45, %v874_v33  ;;  %v876_v25 = vrot.slane %v3126_v7, 1  ;;  %v877_v18 = vrot.slane %v4830_v4, 1  ;;  %v4912_v4 = vld [vmem:[%s4015_s30 + $0xbc] ss:$0 sps:$4 sm:$0x11]  }
  0xdc   : > { %v4849_v20 = vpop.permute.xlu1 %899  ;;  %v3141_v10 = vcombine.low %v2979_v55, %v4882_v62  ;;  %v851_v12 = vsel %vm830_vm0, %v849_v41, %v850_v19  ;;  %v852_v53 = vrot.slane %v3118_v61, 1  ;;  %v853_v47 = vrot.slane %v4837_v42, 1  ;;  %v4936_v35 = vld [vmem:[%s4015_s30 + $0x68] ss:$0 sps:$4 sm:$0x11]  }
  0xdd   : > { %v4855_v59 = vpop.permute.xlu0 %883  ;;  %v3133_v31 = vcombine.low %v2963_v48, %v4888_v16  ;;  %v878_v26 = vsel %vm830_vm0, %v876_v25, %v877_v18  ;;  %v3142_v42 = vcombine.low %v2981_v38, %v4902_v6  ;;  %v1247_v9 = vshll.u32 %v4912_v4, 16 }
  0xde   : > { %778 = vrot.lane.b32.xlu1 %v737_v52, %s3927_s6  ;;  %v2965_v52 = vld [vmem:[%s4015_s30 + $0x60] sm:$0xf]  ;;  %v1242_v56 = vshll.u32 %v3141_v10, 16  ;;  %v854_v29 = vsel %vm830_vm0, %v852_v53, %v853_v47  ;;  %v1163_v18 = vshll.u32 %v4936_v35, 16  ;;  %v3005_v53 = vld [vmem:[%s4015_s30 + $0x54] sm:$0xe] }
  0xdf   : > { %762 = vrot.lane.b32.xlu0 %v641_v22, %s3927_s6  ;;  %v4918_v22 = vld [vmem:[%s4015_s30 + $0x5c] ss:$0 sps:$4 sm:$0x11]   ;;  %v3134_v2 = vcombine.low %v2965_v52, %v4908_v17  ;;  %v1146_v8 = vshll.u32 %v3133_v31, 16  ;;  %v1254_v57 = vshll.u32 %v3142_v42, 16  ;;  %v1144_v49 = vshrl.u32 %v3133_v31, 16 }
  0xe0   : > { %v4862_v0 = vpop.permute.xlu1 %901  ;;  %v1244_v5 = vrot.slane %v1242_v56, 1  ;;  %v1151_v37 = vshll.u32 %v4918_v22, 16  ;;  %v1249_v33 = vrot.slane %v1247_v9, 1  ;;  %v1252_v7 = vshrl.u32 %v3142_v42, 16  ;;  %v3014_v9 = vld [vmem:[%s4015_s30 + $0xc0] sm:$0xe] }
  0xe1   : > { %v4867_v60 = vpop.permute.xlu0 %885  ;;  %v1148_v13 = vrot.slane %v1146_v8, 1  ;;  %v1256_v19 = vrot.slane %v1254_v57, 1  ;;  %v1165_v8 = vrot.slane %v1163_v18, 1 }
  0xe2   : > { %1929 = vrot.lane.b32.xlu1 %v1896_v39, %s3932_s23  ;;  %v1240_v39 = vshrl.u32 %v3141_v10, 16  ;;  %v1153_v41 = vrot.slane %v1151_v37, 1  ;;  %v4964_v37 = vld [vmem:[%s4015_s30 + $0xc4] sm:$0xf] }
  0xe3   : > { %1913 = vrot.lane.b32.xlu0 %v1872_v1, %s3932_s23  ;;  %v4931_v1 = vld [vmem:[%s4015_s30 + $0xc8] ss:$0 sps:$4 sm:$0x11]   ;;  %v1149_v48 = vor.u32 %v1148_v13, %v1144_v49  ;;  %v3174_v13 = vcombine.low %v3014_v9, %v4902_v6 }
  0xe4   : > { %v4875_v30 = vpop.permute.xlu1 %1011  ;;  %v1259_v61 = vshll.u32 %v4931_v1, 16  ;;  %v1389_v18 = vrot.slane %v4931_v1, 1 }
  0xe5   : > { %v4884_v58 = vpop.permute.xlu0 %995  ;;  %v1154_v56 = vsel %vm557_vm1, %v1149_v48, %v1153_v41  ;;  %v3045_v48 = vld [vmem:[%s4015_s30 + $0xcc] sm:$0xf] }
  0xe6   : > { %780 = vrot.lane.b32.xlu1 %v749_v14, %s3927_s6  ;;  %v1158_v14 = vshll.u32 %v3134_v2, 16  ;;  %v1261_v38 = vrot.slane %v1259_v61, 1 }
  0xe7   : > { %764 = vrot.lane.b32.xlu0 %v653_v23, %s3927_s6  ;;  %v1245_v23 = vor.u32 %v1244_v5, %v1240_v39  ;;  %v3165_v39 = vcombine.low %v3005_v53, %v4888_v16  ;;  %v3043_v5 = vld [vmem:[%s4015_s30 + $0xc0] sm:$0xf]  ;;  %v1362_v16 = vrot.slane %v4918_v22, 1  ;;  %v4987_v22 = vld [vmem:[%s4015_s30 + $0xd0] sm:$0xf] }
  0xe8   : > { %v4895_v27 = vpop.permute.xlu1 %1013  ;;  %v1160_v25 = vrot.slane %v1158_v14, 1  ;;  %v3027_v14 = vld [vmem:[%s4015_s30 + $0x60] sm:$0xf] }
  0xe9   : > { %v4904_v40 = vpop.permute.xlu0 %997  ;;  %v1250_v47 = vsel %vm557_vm1, %v1245_v23, %v1249_v33  ;;  %v4974_v33 = vld [vmem:[%s4015_s30 + $0x64] sm:$0xf]  ;;  %v1361_v41 = vrot.slane %v3165_v39, 1  ;;  %v5009_v39 = vld [vmem:[%s4015_s30 + $0x68] ss:$0 sps:$4 sm:$0x11]  }
  0xea   : > { %907 = vrot.lane.b32.xlu1 %v875_v36, %s3926_s5  ;;  %v1156_v36 = vshrl.u32 %v3134_v2, 16  ;;  %v3181_v6 = vcombine.low %v3027_v14, %v4974_v33  ;;  %v1663_v14 = vshll.u32 %v5009_v39, 16 }
  0xeb   : > { %891 = vrot.lane.b32.xlu0 %v851_v12, %s3926_s5  ;;  %v3013_v12 = vld [vmem:[%s4015_s30 + $0xb4] sm:$0xe]  ;;  %v1363_v53 = vsel %vm830_vm0, %v1361_v41, %v1362_v16  ;;  %v1957_v41 = vsel %vm1935_vm3, %v4203_v51, %v4774_v24 }
  0xec   : > { %v4920_v63 = vpop.permute.xlu1 %1283  ;;  %v3173_v52 = vcombine.low %v3013_v12, %v4882_v62  ;;  %v1386_v62 = vrot.slane %v4912_v4, 1  ;;  %v1658_v9 = vshll.u32 %v3181_v6, 16 }
  0xed   : > { %v4924_v43 = vpop.permute.xlu0 %1267 }
  0xee   : > { %909 = vrot.lane.b32.xlu1 %v878_v26, %s3926_s5  ;;  %v1385_v49 = vrot.slane %v3173_v52, 1 }
  0xef   : > { %893 = vrot.lane.b32.xlu0 %v854_v29, %s3926_s5  ;;  %v1161_v29 = vor.u32 %v1160_v25, %v1156_v36  ;;  %v4990_v36 = vld [vmem:[%s4015_s30 + $0xc8] ss:$0 sps:$4 sm:$0x11]   ;;  %v1388_v25 = vrot.slane %v3174_v13, 1 }
  0xf0   : > { %v4933_v21 = vpop.permute.xlu1 %1285  ;;  %v1759_v1 = vshll.u32 %v4990_v36, 16 }
  0xf1   : > { %v4938_v45 = vpop.permute.xlu0 %1269  ;;  %v1166_v23 = vsel %vm557_vm1, %v1161_v29, %v1165_v8  ;;  %v5003_v29 = vcombine.low %v3045_v48, %v4987_v22  ;;  %v5006_v8 = vld [vmem:[%s4015_s30 + $0x70] sm:$0xf]  ;;  %v1656_v48 = vshrl.u32 %v3181_v6, 16 }
  0xf2   : > { %1019 = vrot.lane.b32.xlu1 %v3141_v10, %s3925_s4 }
  0xf3   : > { %1003 = vrot.lane.b32.xlu0 %v3133_v31, %s3925_s4  ;;  %v1257_v31 = vor.u32 %v1256_v19, %v1252_v7  ;;  %v3189_v19 = vcombine.low %v3043_v5, %v4964_v37 }
  0xf4   : > { %v4943_v55 = vpop.permute.xlu1 %1411 }
  0xf5   : > { %v4947_v10 = vpop.permute.xlu0 %1395  ;;  %v1262_v57 = vsel %vm557_vm1, %v1257_v31, %v1261_v38  ;;  %v1365_v31 = vrot.slane %v4936_v35, 1  ;;  %v3029_v38 = vld [vmem:[%s4015_s30 + $0x6c] sm:$0xf]  ;;  %v1754_v52 = vshll.u32 %v3189_v19, 16  ;;  %v1390_v35 = vsel %vm830_vm0, %v1388_v25, %v1389_v18 }
  0xf6   : > { %1021 = vrot.lane.b32.xlu1 %v3142_v42, %s3925_s4  ;;  %v1941_v25 = vsel %vm1935_vm3, %v4206_v54, %v4786_v11  ;;  %v1990_v18 = vsel %vm1968_vm4, %v1957_v41, %v4849_v20 }
  0xf7   : > { %1005 = vrot.lane.b32.xlu0 %v3134_v2, %s3925_s4  ;;  %v3006_v2 = vld [vmem:[%s4015_s30 + $0x60] sm:$0xe]  ;;  %v1756_v16 = vrot.slane %v1754_v52, 1  ;;  %v1974_v51 = vsel %vm1968_vm4, %v1941_v25, %v4855_v59  ;;  %v2023_v24 = vsel %vm2001_vm5, %v1990_v18, %v4875_v30 }
  0xf8   : > { %v4954_v26 = vpop.permute.xlu1 %1413  ;;  %v3166_v4 = vcombine.low %v3006_v2, %v4908_v17  ;;  %v1387_v17 = vsel %vm830_vm0, %v1385_v49, %v1386_v62  ;;  %v5016_v2 = vld [vmem:[%s4015_s30 + $0xd4] ss:$0 sps:$4 sm:$0x11]   ;;  %v1752_v49 = vshrl.u32 %v3189_v19, 16  ;;  %v2007_v20 = vsel %vm2001_vm5, %v1974_v51, %v4884_v58  ;;  %v3077_v58 = vld [vmem:[%s4015_s30 + $0xc0] sm:$0xe] }
  0xf9   : > { %v4959_v42 = vpop.permute.xlu0 %1397  ;;  %v2056_v52 = vsel %vm2034_vm6, %v2023_v24, %v4920_v63  ;;  %v2040_v59 = vsel %vm2034_vm6, %v2007_v20, %v4924_v43  ;;  %v3070_v24 = vld [vmem:[%s4015_s30 + $0x6c] sm:$0xe] }
  0xfa   : > { %1291 = vrot.lane.b32.xlu1 %v1250_v47, %s3928_s7  ;;  %v1364_v47 = vrot.slane %v3166_v4, 1  ;;  %v1761_v4 = vrot.slane %v1759_v1, 1  ;;  %v1757_v54 = vor.u32 %v1756_v16, %v1752_v49  ;;  %v2089_v30 = vsel %vm2067_vm7, %v2056_v52, %v4943_v55 }
  0xfb   : > { %1275 = vrot.lane.b32.xlu0 %v1154_v56, %s3928_s7  ;;  %v2073_v63 = vsel %vm2067_vm7, %v2040_v59, %v4947_v10 }
  0xfc   : > { %v4976_v7 = vpop.permute.xlu1 %1523  ;;  %v1366_v62 = vsel %vm830_vm0, %v1364_v47, %v1365_v31  ;;  %v1771_v47 = vshll.u32 %v5016_v2, 16  ;;  %v5037_v31 = vld [vmem:[%s4015_s30 + $0x74] ss:$0 sps:$4 sm:$0x11]   ;;  %v1762_v41 = vsel %vm557_vm1, %v1757_v54, %v1761_v4  ;;  %v1943_v4 = vsel %vm1935_vm3, %v4249_v32, %v4840_v44 }
  0xfd   : > { %v4981_v61 = vpop.permute.xlu0 %1507  ;;  %v2122_v16 = vsel %vm2100_vm8, %v2089_v30, %v4976_v7  ;;  %v1675_v43 = vshll.u32 %v5037_v31, 16 }
  0xfe   : > { %1293 = vrot.lane.b32.xlu1 %v1262_v57, %s3928_s7  ;;  %v5020_v57 = vcombine.low %v3029_v38, %v5006_v8  ;;  %v2106_v55 = vsel %vm2100_vm8, %v2073_v63, %v4981_v61  ;;  %v1959_v61 = vsel %vm1935_vm3, %v4244_v28, %v4833_v3  ;;  %v1976_v3 = vsel %vm1968_vm4, %v1943_v4, %v4867_v60 }
  0xff   : > { %1277 = vrot.lane.b32.xlu0 %v1166_v23, %s3928_s7  ;;  %v1766_v23 = vshll.u32 %v5003_v29, 16  ;;  %v1677_v44 = vrot.slane %v1675_v43, 1  ;;  %v1898_v60 = vrot.slane %v4990_v36, 1  ;;  %s3344_s7 = sshll.u32 %s3915_s15, 11 }
 0x100   : > { %v4995_v12 = vpop.permute.xlu1 %1525  ;;  %v1670_v11 = vshll.u32 %v5020_v57, 16  ;;  %v1668_v49 = vshrl.u32 %v5020_v57, 16 }
 0x101   : > { %v5000_v56 = vpop.permute.xlu0 %1509 }
 0x102   : > { %1419 = vrot.lane.b32.xlu1 %v1387_v17, %s3929_s8  ;;  %v1660_v17 = vrot.slane %v1658_v9, 1  ;;  %v1665_v9 = vrot.slane %v1663_v14, 1  ;;  %v1773_v14 = vrot.slane %v1771_v47, 1  ;;  %v3078_v47 = vld [vmem:[%s4015_s30 + $0xcc] sm:$0xe] }
 0x103   : > { %1403 = vrot.lane.b32.xlu0 %v1363_v53, %s3929_s8  ;;  %v1764_v53 = vshrl.u32 %v5003_v29, 16  ;;  %v3222_v52 = vcombine.low %v3078_v47, %v4987_v22 }
 0x104   : > { %v1796_v5 = vpop.permute.xlu1 %1795 }
 0x105   : > { %v1780_v13 = vpop.permute.xlu0 %1779 }
 0x106   : > { %1421 = vrot.lane.b32.xlu1 %v1390_v35, %s3929_s8  ;;  %v1768_v35 = vrot.slane %v1766_v23, 1  ;;  %v2139_v10 = vsel %vm2133_vm9, %v2106_v55, %v1780_v13 }
 0x107   : > { %1405 = vrot.lane.b32.xlu0 %v1366_v62, %s3929_s8  ;;  %v1661_v62 = vor.u32 %v1660_v17, %v1656_v48  ;;  %v1672_v48 = vrot.slane %v1670_v11, 1  ;;  %v3069_v17 = vld [vmem:[%s4015_s30 + $0x60] sm:$0xe]  ;;  %s208_s30 = sand.u32 1, %s3907_s13  }
 0x108   : > { %v5043_v38 = vpop.permute.xlu1 %1797  ;;  %v1769_v18 = vor.u32 %v1768_v35, %v1764_v53  ;;  %v3213_v28 = vcombine.low %v3069_v17, %v4974_v33  ;;  %v3214_v35 = vcombine.low %v3070_v24, %v5006_v8  ;;  %v1901_v8 = vrot.slane %v5016_v2, 1  ;;  %s2949_s4 = sshll.u32 %s208_s30, 7  ;;  %s5325_s15 = scalar_lea.sflag [#allocation3], %s208_s30 }
 0x109   : > { %v5050_v1 = vpop.permute.xlu0 %1781  ;;  %v1666_v13 = vsel %vm557_vm1, %v1661_v62, %v1665_v9  ;;  %v1673_v32 = vor.u32 %v1672_v48, %v1668_v49  ;;  %v1877_v49 = vrot.slane %v5037_v31, 1  ;;  %s5248_s5 = scalar_lea.vmem [#allocation2], %s2949_s4 }
 0x10a   : > { %1531 = vrot.lane.b32.xlu1 %v3189_v19, %s3930_s11  ;;  %v2155_v19 = vsel %vm2133_vm9, %v2122_v16, %v1796_v5  ;;  %v1774_v33 = vsel %vm557_vm1, %v1769_v18, %v1773_v14  ;;  %v1873_v36 = vrot.slane %v3213_v28, 1  ;;  %v1876_v62 = vrot.slane %v3214_v35, 1  ;;  %s2826_s8 = sshll.u32 %s5248_s5, 4  ;;  %s5319_s8 = int_to_ptr.vmem [resolvable:$true] %s2826_s8 }
 0x10b   : > { %1515 = vrot.lane.b32.xlu0 %v3181_v6, %s3930_s11  ;;  %v3221_v6 = vcombine.low %v3077_v58, %v4964_v37  ;;  %v1992_v37 = vsel %vm1968_vm4, %v1959_v61, %v4862_v0  ;;  %v2009_v0 = vsel %vm2001_vm5, %v1976_v3, %v4904_v40  ;;  %v1874_v40 = vrot.slane %v5009_v39, 1  ;;  %s3845_s18 = scalar_lea.vmem %s5319_s8, 2048 }
 0x10c   : > { %v1924_v23 = vpop.permute.xlu1 %1923  ;;  %v1678_v39 = vsel %vm557_vm1, %v1673_v32, %v1677_v44  ;;  %v1878_v14 = vsel %vm830_vm0, %v1876_v62, %v1877_v49  ;;  %v5387_v44 = vld [vmem:[#allocation6_spill] sm:$0xff]  ;;  %p3846_p12 = scmp.ne.s32.totalorder %s5319_s8, %s3845_s18 }
 0x10d   : > { %v2188_v25 = vsel %vm2166_vm10, %v2155_v19, %v1924_v23  ;;  %v1908_v7 = vpop.permute.xlu0 %1907  ;;  %v1897_v11 = vrot.slane %v3221_v6, 1 }
 0x10e   : > { %v2172_v5 = vsel %vm2166_vm10, %v2139_v10, %v1908_v7  ;;  %1533 = vrot.lane.b32.xlu1 %v5003_v29, %s3930_s11  ;;  %3485 = vmatprep.mubr.msk.bf16.mxu1 %vm2226_vm11, %v2188_v25  ;;  %v2025_v29 = vsel %vm2001_vm5, %v1992_v37, %v4895_v27  ;;  %v2042_v27 = vsel %vm2034_vm6, %v2009_v0, %v4938_v45  ;;  %p3847_p13 = pnand %p3846_p12, %p3995_p4 }
 0x10f   : > { %1517 = vrot.lane.b32.xlu0 %v5020_v57, %s3930_s11  ;;  %3469 = vmatprep.mubr.msk.bf16.mxu0 %vm2226_vm11, %v2172_v5  ;;  %v2058_v57 = vsel %vm2034_vm6, %v2025_v29, %v4933_v21  ;;  %v2075_v21 = vsel %vm2067_vm7, %v2042_v27, %v4959_v42  ;;  %v1899_v22 = vsel %vm830_vm0, %v1897_v11, %v1898_v60  ;;  %v5386_v29 = vld [vmem:[#allocation5_spill] sm:$0xff]  ;;  %s5316_s11 = scalar_lea.hbm %s5375_s3, %s3344_s7 }
 0x110   : > { %v5094_v53 = vpop.permute.xlu1 %774  ;;  %v2091_v54 = vsel %vm2067_vm7, %v2058_v57, %v4954_v26  ;;  %v2108_v45 = vsel %vm2100_vm8, %v2075_v21, %v5000_v56  ;;  %v1900_v56 = vrot.slane %v3222_v52, 1  ;;  %p3848_p0 = pneg %p3847_p13 }
 0x111   : > { %v5101_v51 = vpop.permute.xlu0 %758  ;;  %v2124_v20 = vsel %vm2100_vm8, %v2091_v54, %v4995_v12  ;;  %v2141_v42 = vsel %vm2133_vm9, %v2108_v45, %v5050_v1  ;;  %v1875_v1 = vsel %vm830_vm0, %v1873_v36, %v1874_v40  ;;  %v1961_v32 = vsel %vm1935_vm3, %v5386_v29, %v5094_v53 }
 0x112   : > { %1803 = vrot.lane.b32.xlu1 %v1762_v41, %s3931_s21  ;;  %v2157_v26 = vsel %vm2133_vm9, %v2124_v20, %v5043_v38  ;;  %v1902_v63 = vsel %vm830_vm0, %v1900_v56, %v1901_v8  ;;  %v1945_v47 = vsel %vm1935_vm3, %v5387_v44, %v5101_v51 }
 0x113   : > { %1787 = vrot.lane.b32.xlu0 %v1666_v13, %s3931_s21 }
 0x114   : > { %v1926_v9 = vpop.permute.xlu1 %1925 }
 0x115   : > { %v2190_v12 = vsel %vm2166_vm10, %v2157_v26, %v1926_v9  ;;  %v1910_v59 = vpop.permute.xlu0 %1909  ;;  %v5388_v9 = vld [vmem:[#allocation7_spill] sm:$0xff] }
 0x116   : > { %v2174_v30 = vsel %vm2166_vm10, %v2141_v42, %v1910_v59  ;;  %1805 = vrot.lane.b32.xlu1 %v1774_v33, %s3931_s21  ;;  %3486 = vmatmul.mubr.msk.bf16.gmra.mrb[4].mxu1 %vm2226_vm11, %v2190_v12  ;;  %v5389_v42 = vld [vmem:[#allocation8_spill] sm:$0xff] }
 0x117   : > { %1789 = vrot.lane.b32.xlu0 %v1678_v39, %s3931_s21  ;;  %3470 = vmatmul.mubr.msk.bf16.gmra.mrb[4].mxu0 %vm2226_vm11, %v2174_v30  ;;  %s3849_s21 = sshll.u32 %s3933_s19, 4  ;;  %s3850_s21 = int_to_ptr.vmem [resolvable:$false] %s3849_s21 }
 0x118   : > { %v777_v38 = vpop.permute.xlu1 %776  ;;  %p3852_p1 = scmp.lt.s32.totalorder %s5319_s8, %s3850_s21 }
 0x119   : > { %v761_v58 = vpop.permute.xlu0 %760  ;;  %v1963_v39 = vsel %vm1935_vm3, %v5388_v9, %v777_v38 }
 0x11a   : > { %1931 = vrot.lane.b32.xlu1 %v1899_v22, %s3932_s23  ;;  %v1947_v12 = vsel %vm1935_vm3, %v5389_v42, %v761_v58 }
 0x11b   : > { %1915 = vrot.lane.b32.xlu0 %v1875_v1, %s3932_s23 }
 0x11c   : > { %v904_v16 = vpop.permute.xlu1 %903 }
 0x11d   : > { %v888_v43 = vpop.permute.xlu0 %887  ;;  %v1994_v0 = vsel %vm1968_vm4, %v1961_v32, %v904_v16 }
 0x11e   : > { %1933 = vrot.lane.b32.xlu1 %v1902_v63, %s3932_s23  ;;  %v1978_v57 = vsel %vm1968_vm4, %v1945_v47, %v888_v43 }
 0x11f   : > { %1917 = vrot.lane.b32.xlu0 %v1878_v14, %s3932_s23  ;;  %s3851_s23 = scalar_lea.vmem %s3850_s21, 4096 }
 0x120   : > { %v906_v2 = vpop.permute.xlu1 %905  ;;  %p3853_p2 = scmp.lt.s32.totalorder %s3851_s23, %s3845_s18 }
 0x121   : > { %v890_v55 = vpop.permute.xlu0 %889  ;;  %v1996_v59 = vsel %vm1968_vm4, %v1963_v39, %v906_v2 }
 0x122   : > { %v1980_v30 = vsel %vm1968_vm4, %v1947_v12, %v890_v55  ;;  %p3854_p3 = por %p3853_p2, %p3852_p1 }
 0x124   : > { %v1016_v19 = vpop.permute.xlu1 %1015  ;;  %p3855_p5 = pnand %p3854_p3, %p3848_p0 }
 0x125   : > { %v1000_v23 = vpop.permute.xlu0 %999  ;;  %v2027_v33 = vsel %vm2001_vm5, %v1994_v0, %v1016_v19 }
 0x126   : > { %v2011_v24 = vsel %vm2001_vm5, %v1978_v57, %v1000_v23 }
 0x128   : > { %v1018_v31 = vpop.permute.xlu1 %1017 }
 0x129   : > { %v1002_v41 = vpop.permute.xlu0 %1001  ;;  %v2029_v22 = vsel %vm2001_vm5, %v1996_v59, %v1018_v31 }
 0x12a   : > { %v2013_v8 = vsel %vm2001_vm5, %v1980_v30, %v1002_v41 }
 0x12c   : > { %v1288_v48 = vpop.permute.xlu1 %1287 }
 0x12d   : > { %v1272_v17 = vpop.permute.xlu0 %1271  ;;  %v2060_v27 = vsel %vm2034_vm6, %v2027_v33, %v1288_v48 }
 0x12e   : > { %v2044_v11 = vsel %vm2034_vm6, %v2011_v24, %v1272_v17 }
 0x130   : > { %v1290_v10 = vpop.permute.xlu1 %1289 }
 0x131   : > { %v1274_v25 = vpop.permute.xlu0 %1273  ;;  %v2062_v38 = vsel %vm2034_vm6, %v2029_v22, %v1290_v10 }
 0x132   : > { %v2046_v62 = vsel %vm2034_vm6, %v2013_v8, %v1274_v25 }
 0x134   : > { %v1416_v7 = vpop.permute.xlu1 %1415 }
 0x135   : > { %v1400_v18 = vpop.permute.xlu0 %1399  ;;  %v2093_v53 = vsel %vm2067_vm7, %v2060_v27, %v1416_v7 }
 0x136   : > { %v2077_v40 = vsel %vm2067_vm7, %v2044_v11, %v1400_v18 }
 0x138   : > { %v1418_v6 = vpop.permute.xlu1 %1417 }
 0x139   : > { %v1402_v61 = vpop.permute.xlu0 %1401  ;;  %v2095_v49 = vsel %vm2067_vm7, %v2062_v38, %v1418_v6 }
 0x13a   : > { %v2079_v58 = vsel %vm2067_vm7, %v2046_v62, %v1402_v61 }
 0x13c   : > { %v1528_v5 = vpop.permute.xlu1 %1527 }
 0x13d   : > { %v1512_v13 = vpop.permute.xlu0 %1511  ;;  %v2126_v51 = vsel %vm2100_vm8, %v2093_v53, %v1528_v5 }
 0x13e   : > { %v2110_v21 = vsel %vm2100_vm8, %v2077_v40, %v1512_v13 }
 0x140   : > { %v1530_v4 = vpop.permute.xlu1 %1529 }
 0x141   : > { %v1514_v37 = vpop.permute.xlu0 %1513  ;;  %v2128_v63 = vsel %vm2100_vm8, %v2095_v49, %v1530_v4 }
 0x142   : > { %v2112_v16 = vsel %vm2100_vm8, %v2079_v58, %v1514_v37 }
 0x144   : > { %v1800_v28 = vpop.permute.xlu1 %1799 }
 0x145   : > { %v1784_v3 = vpop.permute.xlu0 %1783  ;;  %v2159_v20 = vsel %vm2133_vm9, %v2126_v51, %v1800_v28 }
 0x146   : > { %v2143_v52 = vsel %vm2133_vm9, %v2110_v21, %v1784_v3 }
 0x148   : > { %v1802_v60 = vpop.permute.xlu1 %1801 }
 0x149   : > { %v1786_v54 = vpop.permute.xlu0 %1785  ;;  %v2161_v14 = vsel %vm2133_vm9, %v2128_v63, %v1802_v60 }
 0x14a   : > { %v2145_v2 = vsel %vm2133_vm9, %v2112_v16, %v1786_v54 }
 0x14c   : > { %v1928_v36 = vpop.permute.xlu1 %1927 }
 0x14d   : > { %v2192_v45 = vsel %vm2166_vm10, %v2159_v20, %v1928_v36  ;;  %v1912_v26 = vpop.permute.xlu0 %1911 }
 0x14e   : > { %v2176_v35 = vsel %vm2166_vm10, %v2143_v52, %v1912_v26  ;;  %3489 = vmatprep.mubr.msk.bf16.mxu1 %vm2226_vm11, %v2192_v45 }
 0x14f   : > { %3473 = vmatprep.mubr.msk.bf16.mxu0 %vm2226_vm11, %v2176_v35 }
 0x150   : > { %v779_v56 = vpop.permute.xlu1 %778 }
 0x151   : > { %v763_v1 = vpop.permute.xlu0 %762  ;;  %v1965_v24 = vsel %vm1935_vm3, %v4734_v46, %v779_v56 }
 0x152   : > { %v1949_v27 = vsel %vm1935_vm3, %v4743_v15, %v763_v1 }
 0x154   : > { %v1930_v43 = vpop.permute.xlu1 %1929 }
 0x155   : > { %v2194_v55 = vsel %vm2166_vm10, %v2161_v14, %v1930_v43  ;;  %v1914_v19 = vpop.permute.xlu0 %1913 }
 0x156   : > { %v2178_v23 = vsel %vm2166_vm10, %v2145_v2, %v1914_v19  ;;  %3490 = vmatmul.mubr.msk.bf16.gmra.mrb[8].mxu1 %vm2226_vm11, %v2194_v55  ;;  %v5227_v19 = vld [vmem:[%s5374_s2] ss:$0 sm:$0xff] }
 0x157   : > { %3474 = vmatmul.mubr.msk.bf16.gmra.mrb[8].mxu0 %vm2226_vm11, %v2178_v23 }
 0x158   : > { %v781_v31 = vpop.permute.xlu1 %780 }
 0x159   : > { %v765_v41 = vpop.permute.xlu0 %764  ;;  %v1967_v36 = vsel %vm1935_vm3, %v4809_v50, %v781_v31 }
 0x15a   : > { %v1951_v15 = vsel %vm1935_vm3, %v4816_v34, %v765_v41 }
 0x15c   : > { %v908_v48 = vpop.permute.xlu1 %907 }
 0x15d   : > { %v892_v17 = vpop.permute.xlu0 %891  ;;  %v1998_v54 = vsel %vm1968_vm4, %v1965_v24, %v908_v48 }
 0x15e   : > { %v1982_v11 = vsel %vm1968_vm4, %v1949_v27, %v892_v17 }
 0x160   : > { %v910_v10 = vpop.permute.xlu1 %909 }
 0x161   : > { %v894_v25 = vpop.permute.xlu0 %893  ;;  %v2000_v45 = vsel %vm1968_vm4, %v1967_v36, %v910_v10 }
 0x162   : > { %v1984_v39 = vsel %vm1968_vm4, %v1951_v15, %v894_v25 }
 0x164   : > { %v1020_v7 = vpop.permute.xlu1 %1019 }
 0x165   : > { %v1004_v18 = vpop.permute.xlu0 %1003  ;;  %v2031_v53 = vsel %vm2001_vm5, %v1998_v54, %v1020_v7 }
 0x166   : > { %v2015_v51 = vsel %vm2001_vm5, %v1982_v11, %v1004_v18 }
 0x168   : > { %v1022_v6 = vpop.permute.xlu1 %1021 }
 0x169   : > { %v1006_v61 = vpop.permute.xlu0 %1005  ;;  %v2033_v35 = vsel %vm2001_vm5, %v2000_v45, %v1022_v6 }
 0x16a   : > { %v2017_v59 = vsel %vm2001_vm5, %v1984_v39, %v1006_v61 }
 0x16c   : > { %v1292_v5 = vpop.permute.xlu1 %1291 }
 0x16d   : > { %v1276_v13 = vpop.permute.xlu0 %1275  ;;  %v2064_v21 = vsel %vm2034_vm6, %v2031_v53, %v1292_v5 }
 0x16e   : > { %v2048_v46 = vsel %vm2034_vm6, %v2015_v51, %v1276_v13 }
 0x170   : > { %v1294_v4 = vpop.permute.xlu1 %1293 }
 0x171   : > { %v1278_v37 = vpop.permute.xlu0 %1277  ;;  %v2066_v30 = vsel %vm2034_vm6, %v2033_v35, %v1294_v4 }
 0x172   : > { %v2050_v8 = vsel %vm2034_vm6, %v2017_v59, %v1278_v37 }
 0x174   : > { %v1420_v28 = vpop.permute.xlu1 %1419 }
 0x175   : > { %v1404_v3 = vpop.permute.xlu0 %1403  ;;  %v2097_v52 = vsel %vm2067_vm7, %v2064_v21, %v1420_v28 }
 0x176   : > { %v2081_v26 = vsel %vm2067_vm7, %v2048_v46, %v1404_v3 }
 0x178   : > { %v1422_v29 = vpop.permute.xlu1 %1421 }
 0x179   : > { %v1406_v32 = vpop.permute.xlu0 %1405  ;;  %v2099_v38 = vsel %vm2067_vm7, %v2066_v30, %v1422_v29 }
 0x17a   : > { %v2083_v62 = vsel %vm2067_vm7, %v2050_v8, %v1406_v32 }
 0x17c   : > { %v1532_v44 = vpop.permute.xlu1 %1531 }
 0x17d   : > { %v1516_v47 = vpop.permute.xlu0 %1515  ;;  %v2130_v9 = vsel %vm2100_vm8, %v2097_v52, %v1532_v44 }
 0x17e   : > { %v2114_v42 = vsel %vm2100_vm8, %v2081_v26, %v1516_v47 }
 0x180   : > { %v1534_v0 = vpop.permute.xlu1 %1533 }
 0x181   : > { %v1518_v57 = vpop.permute.xlu0 %1517  ;;  %v2132_v49 = vsel %vm2100_vm8, %v2099_v38, %v1534_v0 }
 0x182   : > { %v2116_v58 = vsel %vm2100_vm8, %v2083_v62, %v1518_v57 }
 0x184   : > { %v1804_v33 = vpop.permute.xlu1 %1803 }
 0x185   : > { %v1788_v60 = vpop.permute.xlu0 %1787  ;;  %v2163_v50 = vsel %vm2133_vm9, %v2130_v9, %v1804_v33 }
 0x186   : > { %v2147_v34 = vsel %vm2133_vm9, %v2114_v42, %v1788_v60 }
 0x188   : > { %v1806_v40 = vpop.permute.xlu1 %1805 }
 0x189   : > { %v1790_v20 = vpop.permute.xlu0 %1789  ;;  %v2165_v63 = vsel %vm2133_vm9, %v2132_v49, %v1806_v40 }
 0x18a   : > { %v2149_v14 = vsel %vm2133_vm9, %v2116_v58, %v1790_v20 }
 0x18c   : > { %v1932_v12 = vpop.permute.xlu1 %1931 }
 0x18d   : > { %v2196_v22 = vsel %vm2166_vm10, %v2163_v50, %v1932_v12  ;;  %v1916_v56 = vpop.permute.xlu0 %1915 }
 0x18e   : > { %v2180_v1 = vsel %vm2166_vm10, %v2147_v34, %v1916_v56  ;;  %3493 = vmatprep.mubr.msk.bf16.mxu1 %vm2226_vm11, %v2196_v22 }
 0x18f   : > { %3477 = vmatprep.mubr.msk.bf16.mxu0 %vm2226_vm11, %v2180_v1 }
 0x190   : > { %v1934_v16 = vpop.permute.xlu1 %1933 }
 0x191   : > { %v2198_v43 = vsel %vm2166_vm10, %v2165_v63, %v1934_v16  ;;  %v1918_v2 = vpop.permute.xlu0 %1917 }
 0x192   : > { %v2182_v55 = vsel %vm2166_vm10, %v2149_v14, %v1918_v2  ;;  %3494 = vmatmul.mubr.msk.bf16.gmra.mrb[12].mxu1 %vm2226_vm11, %v2198_v43 }
 0x193   : > { %3478 = vmatmul.mubr.msk.bf16.gmra.mrb[12].mxu0 %vm2226_vm11, %v2182_v55 }
 0x1a9   : > { %v3483_v23 = vpop.f32.mrb[0].mxu1 }
 0x1aa   : > { %v3467_v31 = vpop.f32.mrb[0].mxu0  ;;  %v5230_v41 = vadd.f32 %v3483_v23, %v5227_v19  ;;  %v2361_v48 = vpop.f32.mrb[1].mxu1 }
 0x1ab   : > { %v2306_v17 = vadd.f32 %v3467_v31, %v5227_v19  ;;  %v2297_v10 = vpop.f32.mrb[1].mxu0  ;;  %v5234_v25 = vadd.f32 %v5227_v19, %v2361_v48  ;;  %v3484_v7 = vpop.f32.mrb[2].mxu1 }
 0x1ac   : > { %v3261_v18 = vmul.f32 -1.442695, %v5230_v41  ;;  %v2298_v6 = vadd.f32 %v5227_v19, %v2297_v10  ;;  %v3468_v61 = vpop.f32.mrb[2].mxu0  ;;  %v2373_v5 = vadd.f32 %v3484_v7, %v5227_v19  ;;  %v2364_v13 = vpop.f32.mrb[3].mxu1 }
 0x1ad   : > { %v3245_v4 = vmul.f32 -1.442695, %v2306_v17  ;;  %v3259_v37 = vmul.f32 -1.442695, %v5234_v25  ;;  %v2309_v28 = vadd.f32 %v3468_v61, %v5227_v19  ;;  %v2300_v3 = vpop.f32.mrb[3].mxu0  ;;  %v2365_v29 = vadd.f32 %v5227_v19, %v2364_v13 }
 0x1ae   : > { %3717 = vpow2.f32 %v3261_v18  ;;  %v3243_v32 = vmul.f32 -1.442695, %v2298_v6  ;;  %v2301_v44 = vadd.f32 %v5227_v19, %v2300_v3  ;;  %v3262_v0 = vmul.f32 -1.442695, %v2373_v5 }
 0x1af   : > { %3719 = vpow2.f32 %v3245_v4  ;;  %v3246_v47 = vmul.f32 -1.442695, %v2309_v28  ;;  %v3260_v33 = vmul.f32 -1.442695, %v2365_v29 }
 0x1b0   : > { %3721 = vpow2.f32 %v3243_v32  ;;  %v3244_v57 = vmul.f32 -1.442695, %v2301_v44 }
 0x1b1   : > { %3723 = vpow2.f32 %v3259_v37 }
 0x1b2   : > { %3725 = vpow2.f32 %v3246_v47 }
 0x1b3   : > { %3727 = vpow2.f32 %v3262_v0 }
 0x1b4   : > { %3729 = vpow2.f32 %v3244_v57 }
 0x1b5   : > { %3731 = vpow2.f32 %v3260_v33 }
 0x1b8   : > { %v3718_v60 = vpop.eup %3717 }
 0x1b9   : > { %v3720_v24 = vpop.eup %3719  ;;  %v2538_v27 = vadd.f32 1.0, %v3718_v60 }
 0x1ba   : > { %v3722_v54 = vpop.eup %3721  ;;  %v2522_v11 = vadd.f32 1.0, %v3720_v24 }
 0x1bb   : > { %v3724_v53 = vpop.eup %3723  ;;  %3733 = vrcp.f32 %v2538_v27  ;;  %v2520_v40 = vadd.f32 1.0, %v3722_v54 }
 0x1bc   : > { %v3726_v51 = vpop.eup %3725  ;;  %3735 = vrcp.f32 %v2522_v11  ;;  %v2536_v21 = vadd.f32 1.0, %v3724_v53 }
 0x1bd   : > { %v3728_v20 = vpop.eup %3727  ;;  %3737 = vrcp.f32 %v2520_v40  ;;  %v2523_v36 = vadd.f32 1.0, %v3726_v51 }
 0x1be   : > { %v3730_v46 = vpop.eup %3729  ;;  %3739 = vrcp.f32 %v2536_v21  ;;  %v2539_v52 = vadd.f32 1.0, %v3728_v20 }
 0x1bf   : > { %v3732_v15 = vpop.eup %3731  ;;  %3741 = vrcp.f32 %v2523_v36  ;;  %v2521_v45 = vadd.f32 1.0, %v3730_v46 }
 0x1c0   : > { %3743 = vrcp.f32 %v2539_v52  ;;  %v2537_v26 = vadd.f32 1.0, %v3732_v15 }
 0x1c1   : > { %3745 = vrcp.f32 %v2521_v45 }
 0x1c2   : > { %3747 = vrcp.f32 %v2537_v26 }
 0x1c5   : > { %v3734_v9 = vpop.eup %3733 }
 0x1c6   : > { %v3736_v39 = vpop.eup %3735  ;;  %v2634_v22 = vmul.f32 %v3734_v9, %v5230_v41 }
 0x1c7   : > { %v3738_v35 = vpop.eup %3737  ;;  %v2618_v59 = vmul.f32 %v3736_v39, %v2306_v17 }
 0x1c8   : > { %v3740_v42 = vpop.eup %3739  ;;  %v2616_v38 = vmul.f32 %v3738_v35, %v2298_v6 }
 0x1c9   : > { %v3742_v50 = vpop.eup %3741  ;;  %v2632_v49 = vmul.f32 %v3740_v42, %v5234_v25 }
 0x1ca   : > { %v3744_v12 = vpop.eup %3743  ;;  %v2619_v30 = vmul.f32 %v3742_v50, %v2309_v28 }
 0x1cb   : > { %v3746_v34 = vpop.eup %3745  ;;  %v2635_v56 = vmul.f32 %v3744_v12, %v2373_v5 }
 0x1cc   : > { %v3748_v8 = vpop.eup %3747  ;;  %v3353_v1 = vpack.c.bf16 %v2619_v30, %v2618_v59  ;;  %v2617_v62 = vmul.f32 %v3746_v34, %v2301_v44 }
 0x1cd   : > { %v3393_v58 = vpack.c.bf16 %v2635_v56, %v2634_v22  ;;  %v2633_v63 = vmul.f32 %v3748_v8, %v2365_v29 }
 0x1ce   : > { %3425 = vst [vmem:[%s5248_s5 + $0x8] sm:$0xff] %v3353_v1   ;;  %v3348_v16 = vpack.c.bf16 %v2617_v62, %v2616_v38 }
 0x1cf   : > { %3433 = vst [vmem:[%s5248_s5 + $0x48] sm:$0xff] %v3393_v58   ;;  %v3388_v14 = vpack.c.bf16 %v2633_v63, %v2632_v49 }
 0x1d0   : > { %3349 = vst [vmem:[%s5248_s5] sm:$0xff] %v3348_v16  }
 0x1d1   : > { %3432 = vst [vmem:[%s5248_s5 + $0x40] sm:$0xff] %v3388_v14  }
 0x1e9   : > { %v3487_v43 = vpop.f32.mrb[4].mxu1 }
 0x1ea   : > { %v3471_v2 = vpop.f32.mrb[4].mxu0  ;;  %v5255_v55 = vadd.f32 %v3487_v43, %v5227_v19  ;;  %v2377_v23 = vpop.f32.mrb[5].mxu1 }
 0x1eb   : > { %v2322_v31 = vadd.f32 %v3471_v2, %v5227_v19  ;;  %v2313_v41 = vpop.f32.mrb[5].mxu0  ;;  %v5259_v48 = vadd.f32 %v5227_v19, %v2377_v23  ;;  %v3488_v17 = vpop.f32.mrb[6].mxu1 }
 0x1ec   : > { %v3265_v10 = vmul.f32 -1.442695, %v5255_v55  ;;  %v2314_v25 = vadd.f32 %v5227_v19, %v2313_v41  ;;  %v3472_v7 = vpop.f32.mrb[6].mxu0  ;;  %v2389_v18 = vadd.f32 %v3488_v17, %v5227_v19  ;;  %v2380_v6 = vpop.f32.mrb[7].mxu1 }
 0x1ed   : > { %v3249_v61 = vmul.f32 -1.442695, %v2322_v31  ;;  %v3263_v5 = vmul.f32 -1.442695, %v5259_v48  ;;  %v2325_v13 = vadd.f32 %v3472_v7, %v5227_v19  ;;  %v2316_v4 = vpop.f32.mrb[7].mxu0  ;;  %v2381_v37 = vadd.f32 %v5227_v19, %v2380_v6 }
 0x1ee   : > { %3749 = vpow2.f32 %v3265_v10  ;;  %v3247_v28 = vmul.f32 -1.442695, %v2314_v25  ;;  %v2317_v3 = vadd.f32 %v5227_v19, %v2316_v4  ;;  %v3266_v32 = vmul.f32 -1.442695, %v2389_v18 }
 0x1ef   : > { %3751 = vpow2.f32 %v3249_v61  ;;  %v3250_v29 = vmul.f32 -1.442695, %v2325_v13  ;;  %v3264_v47 = vmul.f32 -1.442695, %v2381_v37 }
 0x1f0   : > { %3753 = vpow2.f32 %v3247_v28  ;;  %v3248_v44 = vmul.f32 -1.442695, %v2317_v3 }
 0x1f1   : > { %3755 = vpow2.f32 %v3263_v5 }
 0x1f2   : > { %3757 = vpow2.f32 %v3250_v29 }
 0x1f3   : > { %3759 = vpow2.f32 %v3266_v32 }
 0x1f4   : > { %3761 = vpow2.f32 %v3248_v44 }
 0x1f5   : > { %3763 = vpow2.f32 %v3264_v47 }
 0x1f8   : > { %v3750_v0 = vpop.eup %3749 }
 0x1f9   : > { %v3752_v57 = vpop.eup %3751  ;;  %v2542_v33 = vadd.f32 1.0, %v3750_v0 }
 0x1fa   : > { %v3754_v60 = vpop.eup %3753  ;;  %v2526_v24 = vadd.f32 1.0, %v3752_v57 }
 0x1fb   : > { %v3756_v27 = vpop.eup %3755  ;;  %3765 = vrcp.f32 %v2542_v33  ;;  %v2524_v54 = vadd.f32 1.0, %v3754_v60 }
 0x1fc   : > { %v3758_v11 = vpop.eup %3757  ;;  %3767 = vrcp.f32 %v2526_v24  ;;  %v2540_v53 = vadd.f32 1.0, %v3756_v27 }
 0x1fd   : > { %v3760_v40 = vpop.eup %3759  ;;  %3769 = vrcp.f32 %v2524_v54  ;;  %v2527_v51 = vadd.f32 1.0, %v3758_v11 }
 0x1fe   : > { %v3762_v21 = vpop.eup %3761  ;;  %3771 = vrcp.f32 %v2540_v53  ;;  %v2543_v20 = vadd.f32 1.0, %v3760_v40 }
 0x1ff   : > { %v3764_v36 = vpop.eup %3763  ;;  %3773 = vrcp.f32 %v2527_v51  ;;  %v2525_v46 = vadd.f32 1.0, %v3762_v21 }
 0x200   : > { %3775 = vrcp.f32 %v2543_v20  ;;  %v2541_v52 = vadd.f32 1.0, %v3764_v36 }
 0x201   : > { %3777 = vrcp.f32 %v2525_v46 }
 0x202   : > { %3779 = vrcp.f32 %v2541_v52 }
 0x205   : > { %v3766_v15 = vpop.eup %3765 }
 0x206   : > { %v3768_v45 = vpop.eup %3767  ;;  %v2638_v59 = vmul.f32 %v3766_v15, %v5255_v55 }
 0x207   : > { %v3770_v26 = vpop.eup %3769  ;;  %v2622_v42 = vmul.f32 %v3768_v45, %v2322_v31 }
 0x208   : > { %v3772_v9 = vpop.eup %3771  ;;  %v2620_v22 = vmul.f32 %v3770_v26, %v2314_v25 }
 0x209   : > { %v3774_v39 = vpop.eup %3773  ;;  %v2636_v38 = vmul.f32 %v3772_v9, %v5259_v48 }
 0x20a   : > { %v3776_v35 = vpop.eup %3775  ;;  %v2623_v50 = vmul.f32 %v3774_v39, %v2325_v13 }
 0x20b   : > { %v3778_v12 = vpop.eup %3777  ;;  %v2639_v30 = vmul.f32 %v3776_v35, %v2389_v18 }
 0x20c   : > { %v3780_v34 = vpop.eup %3779  ;;  %v3363_v56 = vpack.c.bf16 %v2623_v50, %v2622_v42  ;;  %v2621_v8 = vmul.f32 %v3778_v12, %v2317_v3 }
 0x20d   : > { %v3403_v1 = vpack.c.bf16 %v2639_v30, %v2638_v59  ;;  %v2637_v62 = vmul.f32 %v3780_v34, %v2381_v37 }
 0x20e   : > { %3427 = vst [vmem:[%s5248_s5 + $0x18] sm:$0xff] %v3363_v56   ;;  %v3358_v49 = vpack.c.bf16 %v2621_v8, %v2620_v22 }
 0x20f   : > { %3435 = vst [vmem:[%s5248_s5 + $0x58] sm:$0xff] %v3403_v1   ;;  %v3398_v58 = vpack.c.bf16 %v2637_v62, %v2636_v38 }
 0x210   : > { %3426 = vst [vmem:[%s5248_s5 + $0x10] sm:$0xff] %v3358_v49  }
 0x211   : > { %3434 = vst [vmem:[%s5248_s5 + $0x50] sm:$0xff] %v3398_v58  }
 0x229   : > { %v3491_v63 = vpop.f32.mrb[8].mxu1 }
 0x22a   : > { %v3475_v16 = vpop.f32.mrb[8].mxu0  ;;  %v5275_v14 = vadd.f32 %v3491_v63, %v5227_v19  ;;  %v2393_v43 = vpop.f32.mrb[9].mxu1 }
 0x22b   : > { %v2338_v2 = vadd.f32 %v3475_v16, %v5227_v19  ;;  %v2329_v55 = vpop.f32.mrb[9].mxu0  ;;  %v5279_v23 = vadd.f32 %v5227_v19, %v2393_v43  ;;  %v3492_v31 = vpop.f32.mrb[10].mxu1 }
 0x22c   : > { %v3269_v41 = vmul.f32 -1.442695, %v5275_v14  ;;  %v2330_v48 = vadd.f32 %v5227_v19, %v2329_v55  ;;  %v3476_v17 = vpop.f32.mrb[10].mxu0  ;;  %v2405_v10 = vadd.f32 %v3492_v31, %v5227_v19  ;;  %v2396_v25 = vpop.f32.mrb[11].mxu1 }
 0x22d   : > { %v3253_v7 = vmul.f32 -1.442695, %v2338_v2  ;;  %v3267_v18 = vmul.f32 -1.442695, %v5279_v23  ;;  %v2341_v6 = vadd.f32 %v3476_v17, %v5227_v19  ;;  %v2332_v61 = vpop.f32.mrb[11].mxu0  ;;  %v2397_v5 = vadd.f32 %v5227_v19, %v2396_v25 }
 0x22e   : > { %3781 = vpow2.f32 %v3269_v41  ;;  %v3251_v13 = vmul.f32 -1.442695, %v2330_v48  ;;  %v2333_v4 = vadd.f32 %v5227_v19, %v2332_v61  ;;  %v3270_v28 = vmul.f32 -1.442695, %v2405_v10 }
 0x22f   : > { %3783 = vpow2.f32 %v3253_v7  ;;  %v3254_v37 = vmul.f32 -1.442695, %v2341_v6  ;;  %v3268_v29 = vmul.f32 -1.442695, %v2397_v5 }
 0x230   : > { %3785 = vpow2.f32 %v3251_v13  ;;  %v3252_v3 = vmul.f32 -1.442695, %v2333_v4 }
 0x231   : > { %3787 = vpow2.f32 %v3267_v18 }
 0x232   : > { %3789 = vpow2.f32 %v3254_v37 }
 0x233   : > { %3791 = vpow2.f32 %v3270_v28 }
 0x234   : > { %3793 = vpow2.f32 %v3252_v3 }
 0x235   : > { %3795 = vpow2.f32 %v3268_v29 }
 0x238   : > { %v3782_v32 = vpop.eup %3781 }
 0x239   : > { %v3784_v44 = vpop.eup %3783  ;;  %v2546_v47 = vadd.f32 1.0, %v3782_v32 }
 0x23a   : > { %v3786_v0 = vpop.eup %3785  ;;  %v2530_v57 = vadd.f32 1.0, %v3784_v44 }
 0x23b   : > { %v3788_v33 = vpop.eup %3787  ;;  %3797 = vrcp.f32 %v2546_v47  ;;  %v2528_v60 = vadd.f32 1.0, %v3786_v0 }
 0x23c   : > { %v3790_v24 = vpop.eup %3789  ;;  %3799 = vrcp.f32 %v2530_v57  ;;  %v2544_v27 = vadd.f32 1.0, %v3788_v33 }
 0x23d   : > { %v3792_v54 = vpop.eup %3791  ;;  %3801 = vrcp.f32 %v2528_v60  ;;  %v2531_v11 = vadd.f32 1.0, %v3790_v24 }
 0x23e   : > { %v3794_v53 = vpop.eup %3793  ;;  %3803 = vrcp.f32 %v2544_v27  ;;  %v2547_v40 = vadd.f32 1.0, %v3792_v54 }
 0x23f   : > { %v3796_v51 = vpop.eup %3795  ;;  %3805 = vrcp.f32 %v2531_v11  ;;  %v2529_v21 = vadd.f32 1.0, %v3794_v53 }
 0x240   : > { %3807 = vrcp.f32 %v2547_v40  ;;  %v2545_v20 = vadd.f32 1.0, %v3796_v51 }
 0x241   : > { %3809 = vrcp.f32 %v2529_v21 }
 0x242   : > { %3811 = vrcp.f32 %v2545_v20 }
 0x245   : > { %v3798_v36 = vpop.eup %3797 }
 0x246   : > { %v3800_v46 = vpop.eup %3799  ;;  %v2642_v42 = vmul.f32 %v3798_v36, %v5275_v14 }
 0x247   : > { %v3802_v52 = vpop.eup %3801  ;;  %v2626_v9 = vmul.f32 %v3800_v46, %v2338_v2 }
 0x248   : > { %v3804_v15 = vpop.eup %3803  ;;  %v2624_v59 = vmul.f32 %v3802_v52, %v2330_v48 }
 0x249   : > { %v3806_v45 = vpop.eup %3805  ;;  %v2640_v22 = vmul.f32 %v3804_v15, %v5279_v23 }
 0x24a   : > { %v3808_v26 = vpop.eup %3807  ;;  %v2627_v39 = vmul.f32 %v3806_v45, %v2341_v6 }
 0x24b   : > { %v3810_v35 = vpop.eup %3809  ;;  %v2643_v50 = vmul.f32 %v3808_v26, %v2405_v10 }
 0x24c   : > { %v3812_v12 = vpop.eup %3811  ;;  %v3373_v30 = vpack.c.bf16 %v2627_v39, %v2626_v9  ;;  %v2625_v34 = vmul.f32 %v3810_v35, %v2333_v4 }
 0x24d   : > { %v3413_v56 = vpack.c.bf16 %v2643_v50, %v2642_v42  ;;  %v2641_v8 = vmul.f32 %v3812_v12, %v2397_v5 }
 0x24e   : > { %3429 = vst [vmem:[%s5248_s5 + $0x28] sm:$0xff] %v3373_v30   ;;  %v3368_v38 = vpack.c.bf16 %v2625_v34, %v2624_v59 }
 0x24f   : > { %3437 = vst [vmem:[%s5248_s5 + $0x68] sm:$0xff] %v3413_v56   ;;  %v3408_v1 = vpack.c.bf16 %v2641_v8, %v2640_v22 }
 0x250   : > { %3428 = vst [vmem:[%s5248_s5 + $0x20] sm:$0xff] %v3368_v38  }
 0x251   : > { %3436 = vst [vmem:[%s5248_s5 + $0x60] sm:$0xff] %v3408_v1  }
 0x265   : > { %v3495_v62 = vpop.f32.mrb[12].mxu1 }
 0x266   : > { %v3479_v49 = vpop.f32.mrb[12].mxu0  ;;  %v5295_v58 = vadd.f32 %v3495_v62, %v5227_v19  ;;  %v2409_v63 = vpop.f32.mrb[13].mxu1 }
 0x267   : > { %v2354_v16 = vadd.f32 %v3479_v49, %v5227_v19  ;;  %v2345_v14 = vpop.f32.mrb[13].mxu0  ;;  %v5299_v43 = vadd.f32 %v5227_v19, %v2409_v63  ;;  %v3496_v2 = vpop.f32.mrb[14].mxu1 }
 0x268   : > { %v3273_v55 = vmul.f32 -1.442695, %v5295_v58  ;;  %v2346_v23 = vadd.f32 %v5227_v19, %v2345_v14  ;;  %v3480_v31 = vpop.f32.mrb[14].mxu0  ;;  %v2421_v41 = vadd.f32 %v3496_v2, %v5227_v19  ;;  %v2412_v48 = vpop.f32.mrb[15].mxu1 }
 0x269   : > { %v3257_v17 = vmul.f32 -1.442695, %v2354_v16  ;;  %v3271_v10 = vmul.f32 -1.442695, %v5299_v43  ;;  %v2357_v25 = vadd.f32 %v3480_v31, %v5227_v19  ;;  %v2348_v7 = vpop.f32.mrb[15].mxu0  ;;  %v2413_v18 = vadd.f32 %v5227_v19, %v2412_v48 }
 0x26a   : > { %3813 = vpow2.f32 %v3273_v55  ;;  %v3255_v6 = vmul.f32 -1.442695, %v2346_v23  ;;  %v2349_v61 = vadd.f32 %v5227_v19, %v2348_v7  ;;  %v3274_v13 = vmul.f32 -1.442695, %v2421_v41 }
 0x26b   : > { %3815 = vpow2.f32 %v3257_v17  ;;  %v3258_v5 = vmul.f32 -1.442695, %v2357_v25  ;;  %v3272_v37 = vmul.f32 -1.442695, %v2413_v18 }
 0x26c   : > { %3817 = vpow2.f32 %v3255_v6  ;;  %v3256_v4 = vmul.f32 -1.442695, %v2349_v61 }
 0x26d   : > { %3819 = vpow2.f32 %v3271_v10 }
 0x26e   : > { %3821 = vpow2.f32 %v3258_v5 }
 0x26f   : > { %3823 = vpow2.f32 %v3274_v13 }
 0x270   : > { %3825 = vpow2.f32 %v3256_v4 }
 0x271   : > { %3827 = vpow2.f32 %v3272_v37 }
 0x274   : > { %v3814_v28 = vpop.eup %3813 }
 0x275   : > { %v3816_v3 = vpop.eup %3815  ;;  %v2550_v29 = vadd.f32 1.0, %v3814_v28 }
 0x276   : > { %v3818_v32 = vpop.eup %3817  ;;  %v2534_v44 = vadd.f32 1.0, %v3816_v3 }
 0x277   : > { %v3820_v47 = vpop.eup %3819  ;;  %3829 = vrcp.f32 %v2550_v29  ;;  %v2532_v0 = vadd.f32 1.0, %v3818_v32 }
 0x278   : > { %v3822_v19 = vpop.eup %3821  ;;  %3831 = vrcp.f32 %v2534_v44  ;;  %v2548_v57 = vadd.f32 1.0, %v3820_v47 }
 0x279   : > { %v3824_v33 = vpop.eup %3823  ;;  %3833 = vrcp.f32 %v2532_v0  ;;  %v2535_v60 = vadd.f32 1.0, %v3822_v19 }
 0x27a   : > { %v3826_v24 = vpop.eup %3825  ;;  %3835 = vrcp.f32 %v2548_v57  ;;  %v2551_v27 = vadd.f32 1.0, %v3824_v33 }
 0x27b   : > { %v3828_v54 = vpop.eup %3827  ;;  %3837 = vrcp.f32 %v2535_v60  ;;  %v2533_v11 = vadd.f32 1.0, %v3826_v24 }
 0x27c   : > { %3839 = vrcp.f32 %v2551_v27  ;;  %v2549_v53 = vadd.f32 1.0, %v3828_v54 }
 0x27d   : > { %3841 = vrcp.f32 %v2533_v11 }
 0x27e   : > { %3843 = vrcp.f32 %v2549_v53 }
 0x281   : > { %v3830_v40 = vpop.eup %3829 }
 0x282   : > { %v3832_v51 = vpop.eup %3831  ;;  %v2646_v26 = vmul.f32 %v3830_v40, %v5295_v58 }
 0x283   : > { %v3834_v21 = vpop.eup %3833  ;;  %v2630_v52 = vmul.f32 %v3832_v51, %v2354_v16 }
 0x284   : > { %v3836_v20 = vpop.eup %3835  ;;  %v2628_v35 = vmul.f32 %v3834_v21, %v2346_v23 }
 0x285   : > { %v3838_v36 = vpop.eup %3837  ;;  %v2644_v12 = vmul.f32 %v3836_v20, %v5299_v43 }
 0x286   : > { %v3840_v46 = vpop.eup %3839  ;;  %v2631_v15 = vmul.f32 %v3838_v36, %v2357_v25 }
 0x287   : > { %v3842_v45 = vpop.eup %3841  ;;  %v2647_v9 = vmul.f32 %v3840_v46, %v2421_v41 }
 0x288   : > { %v3844_v39 = vpop.eup %3843  ;;  %v3383_v42 = vpack.c.bf16 %v2631_v15, %v2630_v52  ;;  %v2629_v50 = vmul.f32 %v3842_v45, %v2349_v61 }
 0x289   : > { %v3423_v59 = vpack.c.bf16 %v2647_v9, %v2646_v26  ;;  %v2645_v30 = vmul.f32 %v3844_v39, %v2413_v18 }
 0x28a   : > { %3431 = vst [vmem:[%s5248_s5 + $0x38] sm:$0xff] %v3383_v42   ;;  %v3378_v34 = vpack.c.bf16 %v2629_v50, %v2628_v35 }
 0x28b   : > { %3439 = vst [vmem:[%s5248_s5 + $0x78] sm:$0xff] %v3423_v59   ;;  %v3418_v22 = vpack.c.bf16 %v2645_v30, %v2644_v12 }
 0x28c   : > { %3430 = vst [vmem:[%s5248_s5 + $0x30] sm:$0xff] %v3378_v34  }
 0x28d   : > { %3438 = vst [vmem:[%s5248_s5 + $0x70] sm:$0xff] %v3418_v22  }
 0x28e   : > { %3858 = shalt.err (!%p3855_p5)
}
 0x28f   : > { %s3859_s26 = scalar_lea.hbm %s5316_s11, 2048  ;;  %s3863_s29 = scalar_lea.hbm %s5375_s3, 4096 }
 0x290   : > { %p3860_p6 = scmp.ne.s32.totalorder %s5316_s11, %s3859_s26  ;;  %p3864_p10 = scmp.lt.u32.totalorder %s5316_s11, %s5375_s3 }
 0x291   : > { %p3865_p11 = scmp.lt.u32.totalorder %s3863_s29, %s3859_s26  ;;  %p3867_p13 = scmp.lt.u32.totalorder %s3859_s26, %s5316_s11 }
 0x292   : > { %p3861_p7 = pnand %p3860_p6, %p3995_p4 }
 0x293   : > { %p3866_p12 = por %p3865_p11, %p3864_p10 }
 0x294   : > { %p3862_p9 = pneg %p3861_p7 }
 0x295   : > { %p3868_p0 = por %p3867_p13, %p3866_p12 }
 0x297   : > { %p3869_p1 = pnand %p3868_p0, %p3862_p9 }
 0x299   : > { %3872 = shalt.err (!%p3869_p1)
}
 0x29a   : > { %s3934_s5 = smov 64  }
 0x29b   : > { %3506 = dma.vmem_to_hbm [thread:$0]  (%p3995_p4), %s5319_s8, 2048, %s5316_s11, %s5325_s15, %s3934_s5, %s3934_s5, %s3927_s6  }
 0x29c PF: > { %p3512_p2 = scmp.ge.s32.totalorder %s3923_s17, 2  ;;  %s2841_s7 = sand.u32 1, %s3903_s12  }
 0x29d   : > { %s2842_s9 = scalar_lea.sflag [#allocation3], %s2841_s7 }
 0x29e   : > { %p3509_p3 = pnand %p3512_p2, %p4002_p8 }
 0x2a0   : > { %3898 = dma.done.wait (!%p3509_p3), %s2842_s9, 2048  }
 0x2a1   : > { %3900 = vsyncadd (!%p3509_p3), %s2842_s9, 4294965248  ;;  %s16_s17 = sadd.s32 1, %s3923_s17   ;;  %s5390_s12 = smov %s3907_s13 }
 0x2a2   : > { %p13_p5 = scmp.ge.s32.totalorder %s16_s17, 4   ;;  %s5391_s13 = smov %s3911_s14 }
 0x2a3   : > { %s5392_s14 = smov %s4008_s25  ;;  %s5393_s15 = smov %s3919_s16 }
 0x2a4   : > { %s5394_s16 = smov %s5396_s20  ;;  %15 = sbr.rel (!%p13_p5) target bundleno = 4 (0x4), region = 76 }
 0x2ab   :  { %2847 = vsyncpa [#allocation3], 1 }
 0x2ac   :  { %2849 = vsyncpa [#allocation3 + $0x1], 1 }

// kernel: tpu_custom_call.1
= control target key start
LH: loop header
LB: loop body
LE: loop exit
PB: predicated region body
PF: predicated region fallthrough
CT: control target
= control target key end

     0   :  { %8 = vsyncpa [#allocation3], 0  ;;  %s9155_s0 = inlined_call_operand.vmem [shape: bf16[2,18,18,4], index: 0, kind: input, shape index: {}]   ;;  %s9156_s1 = inlined_call_operand.vmem [shape: bf16[9,4,128], index: 1, kind: input, shape index: {}]   ;;  %s9157_s2 = inlined_call_operand.vmem [shape: f32[1,128], index: 2, kind: input, shape index: {}]   ;;  %s9158_s3 = inlined_call_operand.hbm [shape: bf16[2,16,16,128], index: 3, kind: output, shape index: {}]  }
   0x1   :  { %10 = vsyncpa [#allocation3 + $0x1], 0  ;;  %s7082_s12 = smov 0   ;;  %s7084_s13 = smov 0  }
   0x2   :  { %s7086_s14 = smov 0   ;;  %s7088_s15 = smov 0  }
   0x3   :  { %s7090_s16 = smov 0   ;;  %s7092_s17 = smov 0  }
   0x4 LB: > { %s5253_s18 = sadd.s32 4294967295, %s7057_s17   ;;  %s5254_s19 = sadd.s32 4294967294, %s7057_s17   ;;  %s7057_s17 = sphi %s7092_s17, %s16_s17   ;;  %s7053_s16 = sphi %s7090_s16, %s9229_s16   ;;  %s7049_s15 = sphi %s7088_s15, %s9228_s15   ;;  %s7045_s14 = sphi %s7086_s14, %s9227_s14   ;;  %s7041_s13 = sphi %s7084_s13, %s9226_s13   ;;  %s7037_s12 = sphi %s7082_s12, %s9225_s12  }
   0x5   : > { %s35_s20 = sadd.s32 1, %s7053_s16  ;;  %s124_s21 = sadd.s32 1, %s7045_s14 }
   0x6   : > { %p37_p0 = scmp.ge.s32.totalorder %s35_s20, 2  ;;  %p134_p1 = scmp.ne.s32.totalorder %s7045_s14, %s7041_s13 }
   0x7   : > { %p135_p2 = scmp.eq.s32.totalorder %s5253_s18, 1  ;;  %p140_p3 = scmp.ne.s32.totalorder %s7041_s13, %s7037_s12 }
   0x8   : > { %s9231_s20 = smov (%p37_p0, %s35_s20), 0  ;;  %p141_p5 = scmp.eq.s32.totalorder %s5254_s19, 1 }
   0x9   : > { %p7122_p4 = por %p135_p2, %p134_p1  ;;  %s117_s23 = ssub.s32 %s7053_s16, %s9231_s20 }
   0xa   : > { %p5259_p6 = scmp.ge.s32.totalorder %s7057_s17, 1  ;;  %p122_p7 = scmp.eq.s32.totalorder %s117_s23, 0 }
   0xb   : > { %p7129_p8 = por %p141_p5, %p140_p3  ;;  %p180_p9 = scmp.lt.s32.totalorder %s7057_s17, 3 }
   0xc   : > { %s7135_s25 = scalar_select %p122_p7, %s7045_s14, %s124_s21  }
   0xd   : > { %p181_p10 = pnand %p5259_p6, %p180_p9 }
   0xf   : > { %184 = sbr.rel (%p181_p10) target bundleno = 644 (0x284), region = 32 }
  0x16   : > { %v5390_v0 = vld [vmem:[%s9156_s1 + $0x2] sm:$0x3]  ;;  %vm916_vm0 = vcmask 1041408   ;;  %v5537_v1 = vld [vmem:[%s9156_s1 + $0x8] sm:$0x3]  ;;  %p211_p11 = scmp.lt.s32.totalorder %s7049_s15, 1 }
  0x17   : > { %6649 = vmatprep.subr.msk.bf16.mxu1 %vm916_vm0, %v5390_v0  ;;  %6653 = vmatprep.subr.msk.bf16.mxu0 %vm916_vm0, %v5537_v1  ;;  %v918_v2 = vsel %vm916_vm0, %v5390_v0, 0  ;;  %v7148_v3 = vsel %vm916_vm0, %v5537_v1, 0  ;;  %v429_v4 = vld [vmem:[%s9156_s1] sm:$0x3]  ;;  %v5586_v5 = vld [vmem:[%s9156_s1 + $0xa] sm:$0x3] }
  0x18   : > { %9168 = vst [vmem:[#allocation5_spill] sm:$0xff] %v7148_v3  ;;  %6086 = vmatpush3.bf16.msra.mxu1 %v918_v2  ;;  %6222 = vmatpush3.bf16.msra.mxu0 %v7148_v3  ;;  %s212_s30 = scalar_select %p211_p11, %s7049_s15, 1  ;;  %vm430_vm1 = vsmask.f32 3328  ;;  %vm431_vm2 = vsmask.f32 7440 }
  0x19   : > { %6650 = vmatprep.subr.msk.bf16.mxu1 %vm916_vm0, %v429_v4  ;;  %6655 = vmatprep.subr.msk.bf16.mxu0 %vm916_vm0, %v5586_v5  ;;  %vm867_vm3 = vcmask 31744   ;;  %v7176_v17 = vsel %vm916_vm0, %v429_v4, 0  ;;  %vm7185_vm4 = vmor %vm430_vm1, %vm431_vm2  ;;  %v7190_v36 = vsel %vm916_vm0, %v5586_v5, 0  ;;  %v7200_v50 = vld [vmem:[%s9156_s1 + $0xc] sm:$0x3]  ;;  %vm1405_vm5 = vcmask 1042432  }
  0x1a   : > { %s6659_s8 = smul.u32 216, %s212_s30  ;;  %v7215_v1 = vsel %vm916_vm0, %v7200_v50, 0  ;;  %vm1406_vm6 = vcmask 1046532   ;;  %s5836_s21 = sshll.u32 %s7049_s15, 11 }
  0x1b   : > { %vm7424_vm7 = vmor %vm1405_vm5, %vm1406_vm6  ;;  %s9101_s28 = scalar_lea.hbm %s9158_s3, %s5836_s21  ;;  %s7059_s30 = smov [#allocation2]  }
  0x1c   : > { %s7163_s11 = scalar_lea.vmem %s9155_s0, %s6659_s8  ;;  %s6983_s4 = sshll.u32 %s7059_s30, 4  ;;  %s6984_s4 = int_to_ptr.vmem [resolvable:$false] %s6983_s4 }
  0x1d   : > { %v229_v6 = vld [vmem:[%s7163_s11] sm:$0xf]  ;;  %v230_v7 = vld [vmem:[%s7163_s11 + $0x4] sm:$0xf]  ;;  %v261_v8 = vld [vmem:[%s7163_s11 + $0x8] sm:$0x1] }
  0x1e   : > { %v434_v9 = vshrl.u32 %v229_v6, 16  ;;  %v437_v10 = vshll.u32 %v229_v6, 16  ;;  %v443_v11 = vshll.u32 %v230_v7, 16  ;;  %v447_v12 = vshrl.u32 %v230_v7, 16  ;;  %v5262_v13 = vld [vmem:[%s7163_s11 + $0xc] sm:$0xf] }
  0x1f   : > { %v453_v14 = vshll.u32 %v261_v8, 16  ;;  %v7170_v15 = vld [vmem:[%s7163_s11 + $0x10] sm:$0xf]  ;;  %v7173_v16 = vld [vmem:[%s7163_s11 + $0x14] sm:$0x1]  ;;  %v2141_v23 = vshrl.u32 %v5262_v13, 16 }
  0x20   : > { %v436_v18 = vrot.slane %v434_v9, 4  ;;  %v439_v19 = vrot.slane %v437_v10, 5  ;;  %v445_v20 = vrot.slane %v443_v11, 5  ;;  %v449_v21 = vrot.slane %v447_v12, 4  ;;  %v231_v30 = vld [vmem:[%s7163_s11 + $0xc] sm:$0xf] }
  0x21   : > { %v455_v22 = vrot.slane %v453_v14, 5  ;;  %v2144_v24 = vshll.u32 %v5262_v13, 16  ;;  %v2150_v25 = vshll.u32 %v7170_v15, 16  ;;  %v2154_v28 = vshrl.u32 %v7170_v15, 16  ;;  %v232_v31 = vld [vmem:[%s7163_s11 + $0x10] sm:$0xf] }
  0x22   : > { %v440_v26 = vor.u32 %v439_v19, %v436_v18  ;;  %v450_v27 = vor.u32 %v449_v21, %v445_v20  ;;  %v2160_v29 = vshll.u32 %v7173_v16, 16  ;;  %v2143_v33 = vrot.slane %v2141_v23, 4  ;;  %v262_v42 = vld [vmem:[%s7163_s11 + $0x14] sm:$0x1]  ;;  %v5264_v55 = vld [vmem:[%s7163_s11 + $0x18] sm:$0xf] }
  0x23   : > { %v2146_v34 = vrot.slane %v2144_v24, 5  ;;  %v2152_v35 = vrot.slane %v2150_v25, 5  ;;  %v2156_v39 = vrot.slane %v2154_v28, 4  ;;  %v458_v43 = vshrl.u32 %v231_v30, 16  ;;  %v7204_v60 = vld [vmem:[%s7163_s11 + $0x1c] sm:$0xf] }
  0x24   : > { %v441_v37 = vrot.slane %v440_v26, 4  ;;  %v451_v38 = vrot.slane %v450_v27, 4  ;;  %v2162_v40 = vrot.slane %v2160_v29, 5  ;;  %v461_v44 = vshll.u32 %v231_v30, 16  ;;  %v7211_v0 = vld [vmem:[%s7163_s11 + $0x20] sm:$0x1] }
  0x25   : > { %v2147_v41 = vor.u32 %v2146_v34, %v2143_v33  ;;  %v467_v45 = vshll.u32 %v232_v31, 16  ;;  %v2157_v48 = vor.u32 %v2156_v39, %v2152_v35  ;;  %v471_v49 = vshrl.u32 %v232_v31, 16  ;;  %v233_v11 = vld [vmem:[%s7163_s11 + $0x18] sm:$0xf]  ;;  %v234_v19 = vld [vmem:[%s7163_s11 + $0x1c] sm:$0xf] }
  0x26   : > { %v446_v46 = vsel %vm7185_vm4, %v441_v37, %v445_v20  ;;  %v456_v47 = vsel %vm7185_vm4, %v451_v38, %v455_v22  ;;  %v460_v53 = vrot.slane %v458_v43, 4  ;;  %v463_v54 = vrot.slane %v461_v44, 5  ;;  %v263_v24 = vld [vmem:[%s7163_s11 + $0x20] sm:$0x1]  ;;  %v5266_v29 = vld [vmem:[%s7163_s11 + $0x24] sm:$0xf] }
  0x27   : > { %v5391_v51 = vcombine.low %v446_v46, %v456_v47  ;;  %v2148_v52 = vrot.slane %v2147_v41, 4  ;;  %v2158_v56 = vrot.slane %v2157_v48, 4  ;;  %v469_v57 = vrot.slane %v467_v45, 5  ;;  %v7238_v44 = vld [vmem:[%s7163_s11 + $0x28] sm:$0xf]  ;;  %s6985_s5 = scalar_lea.vmem %s6984_s4, 4096 }
  0x28   : > { %v473_v58 = vrot.slane %v471_v49, 4  ;;  %v477_v59 = vshll.u32 %v262_v42, 16  ;;  %v2855_v62 = vrot.slane %v7173_v16, 5  ;;  %v464_v63 = vor.u32 %v463_v54, %v460_v53 }
  0x29   : > { %6087 = vmatprep.mubr.msk.bf16.mxu1 %vm867_vm3, %v5391_v51  ;;  %v2153_v61 = vsel %vm7185_vm4, %v2148_v52, %v2152_v35  ;;  %v2163_v2 = vsel %vm7185_vm4, %v2158_v56, %v2162_v40  ;;  %v2165_v6 = vshrl.u32 %v5264_v55, 16  ;;  %v2168_v9 = vshll.u32 %v5264_v55, 16  ;;  %v5471_v40 = vld [vmem:[%s9156_s1 + $0x4] sm:$0x3]  ;;  %v7242_v51 = vld [vmem:[%s7163_s11 + $0x2c] sm:$0x1] }
  0x2a   : > { %v474_v4 = vor.u32 %v473_v58, %v469_v57  ;;  %v479_v5 = vrot.slane %v477_v59, 5  ;;  %v5538_v7 = vcombine.low %v2153_v61, %v2163_v2  ;;  %v465_v8 = vrot.slane %v464_v63, 4  ;;  %v235_v56 = vld [vmem:[%s7163_s11 + $0x24] sm:$0xf] }
  0x2b   : > { %v2174_v10 = vshll.u32 %v7204_v60, 16  ;;  %v2167_v13 = vrot.slane %v2165_v6, 4  ;;  %v2178_v14 = vshrl.u32 %v7204_v60, 16  ;;  %v2184_v18 = vshll.u32 %v7211_v0, 16 }
  0x2c   : > { %v475_v12 = vrot.slane %v474_v4, 4  ;;  %6223 = vmatprep.mubr.msk.bf16.mxu0 %vm867_vm3, %v5538_v7  ;;  %v470_v20 = vsel %vm7185_vm4, %v465_v8, %v469_v57  ;;  %v2170_v21 = vrot.slane %v2168_v9, 5  ;;  %v2859_v23 = vrot.slane %v7204_v60, 5 }
  0x2d   : > { %v2176_v22 = vrot.slane %v2174_v10, 5  ;;  %v2180_v26 = vrot.slane %v2178_v14, 4  ;;  %v2186_v27 = vrot.slane %v2184_v18, 5  ;;  %v2862_v28 = vrot.slane %v7211_v0, 5  ;;  %v5268_v18 = vld [vmem:[%s7163_s11 + $0x30] sm:$0xf] }
  0x2e   : > { %v480_v25 = vsel %vm7185_vm4, %v475_v12, %v479_v5  ;;  %v2171_v31 = vor.u32 %v2170_v21, %v2167_v13  ;;  %v482_v33 = vshrl.u32 %v233_v11, 16  ;;  %v485_v34 = vshll.u32 %v233_v11, 16  ;;  %v236_v5 = vld [vmem:[%s7163_s11 + $0x28] sm:$0xf]  ;;  %v264_v13 = vld [vmem:[%s7163_s11 + $0x2c] sm:$0x1] }
  0x2f   : > { %v5392_v30 = vcombine.low %v470_v20, %v480_v25  ;;  %v2181_v35 = vor.u32 %v2180_v26, %v2176_v22  ;;  %v491_v37 = vshll.u32 %v234_v19, 16  ;;  %v495_v38 = vshrl.u32 %v234_v19, 16 }
  0x30   : > { %v501_v39 = vshll.u32 %v263_v24, 16  ;;  %v2172_v41 = vrot.slane %v2171_v31, 4  ;;  %v484_v42 = vrot.slane %v482_v33, 4  ;;  %v487_v43 = vrot.slane %v485_v34, 5 }
  0x31   : > { %6088 = vmatmul.mubr.msk.bf16.vlgmr.msra.gmra.mrb[0].mxu1 %vm867_vm3, %v5392_v30  ;;  %v2189_v45 = vshrl.u32 %v5266_v29, 16  ;;  %v2182_v46 = vrot.slane %v2181_v35, 4  ;;  %v493_v47 = vrot.slane %v491_v37, 5  ;;  %v497_v48 = vrot.slane %v495_v38, 4  ;;  %v7271_v38 = vld [vmem:[%s7163_s11 + $0x38] sm:$0x1] }
  0x32   : > { %6120 = vmatpush3.bf16.msra.mxu1 %v7176_v17  ;;  %v503_v49 = vrot.slane %v501_v39, 5  ;;  %v2177_v52 = vsel %vm7185_vm4, %v2172_v41, %v2176_v22  ;;  %v488_v53 = vor.u32 %v487_v43, %v484_v42  ;;  %v2192_v55 = vshll.u32 %v5266_v29, 16  ;;  %v7263_v29 = vld [vmem:[%s7163_s11 + $0x34] sm:$0xf] }
  0x33   : > { %v2191_v54 = vrot.slane %v2189_v45, 4  ;;  %6651 = vmatprep.subr.msk.bf16.mxu1 %vm916_vm0, %v5471_v40  ;;  %v2187_v57 = vsel %vm7185_vm4, %v2182_v46, %v2186_v27  ;;  %v498_v17 = vor.u32 %v497_v48, %v493_v47  ;;  %v2198_v58 = vshll.u32 %v7238_v44, 16  ;;  %v7274_v40 = vld [vmem:[%s7163_s11 + $0x30] sm:$0xf] }
  0x34   : > { %v2202_v59 = vshrl.u32 %v7238_v44, 16  ;;  %v5539_v61 = vcombine.low %v2177_v52, %v2187_v57  ;;  %v489_v63 = vrot.slane %v488_v53, 4  ;;  %v2194_v2 = vrot.slane %v2192_v55, 5 }
  0x35   : > { %v2208_v4 = vshll.u32 %v7242_v51, 16  ;;  %v499_v6 = vrot.slane %v498_v17, 4  ;;  %v2200_v7 = vrot.slane %v2198_v58, 5  ;;  %v506_v9 = vshrl.u32 %v235_v56, 16  ;;  %v265_v58 = vld [vmem:[%s7163_s11 + $0x38] sm:$0x1] }
  0x36   : > { %v2204_v8 = vrot.slane %v2202_v59, 4  ;;  %6224 = vmatmul.mubr.msk.bf16.vlgmr.msra.gmra.mrb[0].mxu0 %vm867_vm3, %v5539_v61  ;;  %v494_v10 = vsel %vm7185_vm4, %v489_v63, %v493_v47  ;;  %v2195_v11 = vor.u32 %v2194_v2, %v2191_v54  ;;  %v509_v14 = vshll.u32 %v235_v56, 16 }
  0x37   : > { %v2210_v12 = vrot.slane %v2208_v4, 5  ;;  %6256 = vmatpush3.bf16.msra.mxu0 %v7190_v36  ;;  %v504_v19 = vsel %vm7185_vm4, %v499_v6, %v503_v49  ;;  %v508_v21 = vrot.slane %v506_v9, 4  ;;  %v515_v22 = vshll.u32 %v236_v5, 16  ;;  %v7280_v49 = vld [vmem:[%s7163_s11 + $0x34] sm:$0xf] }
  0x38   : > { %v2205_v20 = vor.u32 %v2204_v8, %v2200_v7  ;;  %v5393_v24 = vcombine.low %v494_v10, %v504_v19  ;;  %v2196_v25 = vrot.slane %v2195_v11, 4  ;;  %v511_v26 = vrot.slane %v509_v14, 5  ;;  %6656 = vmatprep.subr.msk.bf16.mxu0 %vm916_vm0, %v7200_v50  ;;  %v7296_v10 = vld [vmem:[%s7163_s11 + $0x40] sm:$0xf] }
  0x39   : > { %v519_v27 = vshrl.u32 %v236_v5, 16  ;;  %v517_v31 = vrot.slane %v515_v22, 5  ;;  %v525_v36 = vshll.u32 %v264_v13, 16  ;;  %v2213_v33 = vshrl.u32 %v5268_v18, 16  ;;  %v5270_v5 = vld [vmem:[%s7163_s11 + $0x3c] sm:$0xf] }
  0x3a   : > { %v2206_v30 = vrot.slane %v2205_v20, 4  ;;  %6091 = vmatprep.mubr.msk.bf16.mxu1 %vm867_vm3, %v5393_v24  ;;  %v2201_v34 = vsel %vm7185_vm4, %v2196_v25, %v2200_v7  ;;  %v512_v35 = vor.u32 %v511_v26, %v508_v21  ;;  %v2216_v39 = vshll.u32 %v5268_v18, 16  ;;  %v7301_v21 = vld [vmem:[%s7163_s11 + $0x44] sm:$0x1] }
  0x3b   : > { %v521_v37 = vrot.slane %v519_v27, 4  ;;  %v527_v41 = vrot.slane %v525_v36, 5  ;;  %v2215_v42 = vrot.slane %v2213_v33, 4  ;;  %v2222_v43 = vshll.u32 %v7263_v29, 16 }
  0x3c   : > { %v2211_v50 = vsel %vm7185_vm4, %v2206_v30, %v2210_v12  ;;  %v513_v46 = vrot.slane %v512_v35, 4  ;;  %v2218_v48 = vrot.slane %v2216_v39, 5  ;;  %v2226_v53 = vshrl.u32 %v7263_v29, 16 }
  0x3d   : > { %v5540_v45 = vcombine.low %v2201_v34, %v2211_v50  ;;  %v522_v47 = vor.u32 %v521_v37, %v517_v31  ;;  %v2224_v52 = vrot.slane %v2222_v43, 5  ;;  %v2232_v54 = vshll.u32 %v7271_v38, 16  ;;  %v7307_v34 = vld [vmem:[%s7163_s11 + $0x3c] sm:$0xf] }
  0x3e   : > { %v530_v55 = vshrl.u32 %v7274_v40, 16  ;;  %v518_v56 = vsel %vm7185_vm4, %v513_v46, %v517_v31  ;;  %v2219_v17 = vor.u32 %v2218_v48, %v2215_v42  ;;  %v533_v59 = vshll.u32 %v7274_v40, 16 }
  0x3f   : > { %6227 = vmatprep.mubr.msk.bf16.mxu0 %vm867_vm3, %v5540_v45  ;;  %v523_v57 = vrot.slane %v522_v47, 4  ;;  %v2228_v61 = vrot.slane %v2226_v53, 4  ;;  %v2234_v63 = vrot.slane %v2232_v54, 5  ;;  %v539_v4 = vshll.u32 %v7280_v49, 16 }
  0x40   : > { %v532_v2 = vrot.slane %v530_v55, 4  ;;  %v2220_v7 = vrot.slane %v2219_v17, 4  ;;  %v535_v8 = vrot.slane %v533_v59, 5  ;;  %v543_v9 = vshrl.u32 %v7280_v49, 16 }
  0x41   : > { %v528_v6 = vsel %vm7185_vm4, %v523_v57, %v527_v41  ;;  %v2229_v12 = vor.u32 %v2228_v61, %v2224_v52  ;;  %v541_v13 = vrot.slane %v539_v4, 5  ;;  %v549_v14 = vshll.u32 %v265_v58, 16  ;;  %v7313_v41 = vld [vmem:[%s7163_s11 + $0x40] sm:$0xf]  ;;  %v5272_v58 = vld [vmem:[%s7163_s11 + $0x48] sm:$0xf] }
  0x42   : > { %v5394_v11 = vcombine.low %v518_v56, %v528_v6  ;;  %v2225_v18 = vsel %vm7185_vm4, %v2220_v7, %v2224_v52  ;;  %v536_v19 = vor.u32 %v535_v8, %v532_v2  ;;  %v545_v20 = vrot.slane %v543_v9, 4  ;;  %v266_v52 = vld [vmem:[%s7163_s11 + $0x44] sm:$0x1]  ;;  %v7327_v4 = vld [vmem:[%s7163_s11 + $0x4c] sm:$0xf] }
  0x43   : > { %v2237_v22 = vshrl.u32 %v5270_v5, 16  ;;  %v2230_v24 = vrot.slane %v2229_v12, 4  ;;  %v551_v25 = vrot.slane %v549_v14, 5  ;;  %v2240_v26 = vshll.u32 %v5270_v5, 16  ;;  %v7333_v12 = vld [vmem:[%s7163_s11 + $0x50] sm:$0x1] }
  0x44   : > { %6092 = vmatmul.mubr.msk.bf16.gmra.mrb[4].mxu1 %vm867_vm3, %v5394_v11  ;;  %v2246_v27 = vshll.u32 %v7296_v10, 16  ;;  %v537_v30 = vrot.slane %v536_v19, 4  ;;  %v546_v31 = vor.u32 %v545_v20, %v541_v13  ;;  %v2250_v33 = vshrl.u32 %v7296_v10, 16 }
  0x45   : > { %v2239_v36 = vrot.slane %v2237_v22, 4  ;;  %v2235_v35 = vsel %vm7185_vm4, %v2230_v24, %v2234_v63  ;;  %v2242_v37 = vrot.slane %v2240_v26, 5  ;;  %v2256_v50 = vshll.u32 %v7301_v21, 16  ;;  %v7339_v24 = vld [vmem:[%s7163_s11 + $0x48] sm:$0xf] }
  0x46   : > { %v2248_v39 = vrot.slane %v2246_v27, 5  ;;  %v5541_v42 = vcombine.low %v2225_v18, %v2235_v35  ;;  %v542_v43 = vsel %vm7185_vm4, %v537_v30, %v541_v13  ;;  %v547_v45 = vrot.slane %v546_v31, 4  ;;  %v7342_v31 = vld [vmem:[%s7163_s11 + $0x4c] sm:$0xf] }
  0x47   : > { %v2252_v46 = vrot.slane %v2250_v33, 4  ;;  %v2243_v47 = vor.u32 %v2242_v37, %v2239_v36  ;;  %v2258_v48 = vrot.slane %v2256_v50, 5  ;;  %v554_v53 = vshrl.u32 %v7307_v34, 16 }
  0x48   : > { %v557_v54 = vshll.u32 %v7307_v34, 16  ;;  %6228 = vmatmul.mubr.msk.bf16.gmra.mrb[4].mxu0 %vm867_vm3, %v5541_v42  ;;  %v552_v55 = vsel %vm7185_vm4, %v547_v45, %v551_v25  ;;  %v563_v57 = vshll.u32 %v7313_v41, 16  ;;  %v567_v17 = vshrl.u32 %v7313_v41, 16  ;;  %v267_v42 = vld [vmem:[%s7163_s11 + $0x50] sm:$0x1] }
  0x49   : > { %v2253_v56 = vor.u32 %v2252_v46, %v2248_v39  ;;  %v5395_v59 = vcombine.low %v542_v43, %v552_v55  ;;  %v2244_v61 = vrot.slane %v2243_v47, 4  ;;  %v556_v63 = vrot.slane %v554_v53, 4  ;;  %v5274_v53 = vld [vmem:[%s7163_s11 + $0x54] sm:$0xf] }
  0x4a   : > { %v559_v2 = vrot.slane %v557_v54, 5  ;;  %v565_v6 = vrot.slane %v563_v57, 5  ;;  %v569_v7 = vrot.slane %v567_v17, 4  ;;  %v573_v8 = vshll.u32 %v266_v52, 16  ;;  %v7357_v17 = vld [vmem:[%s7163_s11 + $0x58] sm:$0xf] }
  0x4b   : > { %v2254_v5 = vrot.slane %v2253_v56, 4  ;;  %6095 = vmatprep.mubr.msk.bf16.mxu1 %vm867_vm3, %v5395_v59  ;;  %v2249_v9 = vsel %vm7185_vm4, %v2244_v61, %v2248_v39  ;;  %v2261_v13 = vshrl.u32 %v5272_v58, 16  ;;  %v2264_v14 = vshll.u32 %v5272_v58, 16 }
  0x4c   : > { %v560_v11 = vor.u32 %v559_v2, %v556_v63  ;;  %v570_v19 = vor.u32 %v569_v7, %v565_v6  ;;  %v575_v20 = vrot.slane %v573_v8, 5  ;;  %v2270_v22 = vshll.u32 %v7327_v4, 16 }
  0x4d   : > { %v2259_v18 = vsel %vm7185_vm4, %v2254_v5, %v2258_v48  ;;  %v2263_v27 = vrot.slane %v2261_v13, 4  ;;  %v2266_v30 = vrot.slane %v2264_v14, 5  ;;  %v2274_v35 = vshrl.u32 %v7327_v4, 16 }
  0x4e   : > { %v5542_v25 = vcombine.low %v2249_v9, %v2259_v18  ;;  %v561_v26 = vrot.slane %v560_v11, 4  ;;  %v571_v36 = vrot.slane %v570_v19, 4  ;;  %v2272_v33 = vrot.slane %v2270_v22, 5 }
  0x4f   : > { %v2280_v37 = vshll.u32 %v7333_v12, 16  ;;  %v2267_v50 = vor.u32 %v2266_v30, %v2263_v27  ;;  %v578_v43 = vshrl.u32 %v7339_v24, 16  ;;  %v581_v45 = vshll.u32 %v7339_v24, 16 }
  0x50   : > { %6231 = vmatprep.mubr.msk.bf16.mxu0 %vm867_vm3, %v5542_v25  ;;  %v566_v39 = vsel %vm7185_vm4, %v561_v26, %v565_v6  ;;  %v576_v46 = vsel %vm7185_vm4, %v571_v36, %v575_v20  ;;  %v2276_v47 = vrot.slane %v2274_v35, 4  ;;  %v587_v52 = vshll.u32 %v7342_v31, 16  ;;  %v7364_v6 = vld [vmem:[%s7163_s11 + $0x5c] sm:$0x1]  ;;  %v7369_v25 = vld [vmem:[%s7163_s11 + $0x54] sm:$0xf] }
  0x51   : > { %v2282_v48 = vrot.slane %v2280_v37, 5  ;;  %v5396_v54 = vcombine.low %v566_v39, %v576_v46  ;;  %v2268_v55 = vrot.slane %v2267_v50, 4  ;;  %v580_v56 = vrot.slane %v578_v43, 4 }
  0x52   : > { %v583_v57 = vrot.slane %v581_v45, 5  ;;  %v2277_v58 = vor.u32 %v2276_v47, %v2272_v33  ;;  %v589_v59 = vrot.slane %v587_v52, 5  ;;  %v591_v61 = vshrl.u32 %v7342_v31, 16 }
  0x53   : > { %v597_v63 = vshll.u32 %v267_v42, 16  ;;  %6096 = vmatmul.mubr.msk.bf16.gmra.mrb[8].mxu1 %vm867_vm3, %v5396_v54  ;;  %v2273_v2 = vsel %vm7185_vm4, %v2268_v55, %v2272_v33  ;;  %v2285_v7 = vshrl.u32 %v5274_v53, 16  ;;  %v2288_v8 = vshll.u32 %v5274_v53, 16  ;;  %v7375_v33 = vld [vmem:[%s7163_s11 + $0x58] sm:$0xf] }
  0x54   : > { %v584_v5 = vor.u32 %v583_v57, %v580_v56  ;;  %v2278_v9 = vrot.slane %v2277_v58, 4  ;;  %v593_v11 = vrot.slane %v591_v61, 4  ;;  %v2294_v14 = vshll.u32 %v7357_v17, 16  ;;  %v268_v42 = vld [vmem:[%s7163_s11 + $0x5c] sm:$0x1] }
  0x55   : > { %v599_v13 = vrot.slane %v597_v63, 5  ;;  %v2287_v19 = vrot.slane %v2285_v7, 4  ;;  %v2290_v20 = vrot.slane %v2288_v8, 5  ;;  %v2298_v22 = vshrl.u32 %v7357_v17, 16  ;;  %v5276_v55 = vld [vmem:[%s7163_s11 + $0x60] sm:$0xf] }
  0x56   : > { %v585_v18 = vrot.slane %v584_v5, 4  ;;  %v2283_v26 = vsel %vm7185_vm4, %v2278_v9, %v2282_v48  ;;  %v594_v27 = vor.u32 %v593_v11, %v589_v59  ;;  %v2296_v30 = vrot.slane %v2294_v14, 5  ;;  %v7389_v61 = vld [vmem:[%s7163_s11 + $0x64] sm:$0xf]  ;;  %v7394_v14 = vld [vmem:[%s7163_s11 + $0x68] sm:$0x1] }
  0x57   : > { %v2304_v36 = vshll.u32 %v7364_v6, 16  ;;  %v5543_v35 = vcombine.low %v2273_v2, %v2283_v26  ;;  %v2291_v39 = vor.u32 %v2290_v20, %v2287_v19  ;;  %v2300_v50 = vrot.slane %v2298_v22, 4  ;;  %v7402_v26 = vld [vmem:[%s7163_s11 + $0x60] sm:$0xf] }
  0x58   : > { %v590_v37 = vsel %vm7185_vm4, %v585_v18, %v589_v59  ;;  %v595_v43 = vrot.slane %v594_v27, 4  ;;  %v602_v46 = vshrl.u32 %v7369_v25, 16  ;;  %v605_v47 = vshll.u32 %v7369_v25, 16 }
  0x59   : > { %v2306_v45 = vrot.slane %v2304_v36, 5  ;;  %6232 = vmatmul.mubr.msk.bf16.gmra.mrb[8].mxu0 %vm867_vm3, %v5543_v35  ;;  %v2292_v48 = vrot.slane %v2291_v39, 4  ;;  %v2301_v52 = vor.u32 %v2300_v50, %v2296_v30  ;;  %v611_v53 = vshll.u32 %v7375_v33, 16 }
  0x5a   : > { %v615_v54 = vshrl.u32 %v7375_v33, 16  ;;  %v600_v56 = vsel %vm7185_vm4, %v595_v43, %v599_v13  ;;  %v604_v57 = vrot.slane %v602_v46, 4  ;;  %v607_v58 = vrot.slane %v605_v47, 5 }
  0x5b   : > { %v621_v59 = vshll.u32 %v268_v42, 16  ;;  %v5397_v63 = vcombine.low %v590_v37, %v600_v56  ;;  %v2297_v2 = vsel %vm7185_vm4, %v2292_v48, %v2296_v30  ;;  %v2302_v5 = vrot.slane %v2301_v52, 4  ;;  %v7405_v37 = vld [vmem:[%s7163_s11 + $0x64] sm:$0xf] }
  0x5c   : > { %v613_v7 = vrot.slane %v611_v53, 5  ;;  %v608_v8 = vor.u32 %v607_v58, %v604_v57  ;;  %v617_v9 = vrot.slane %v615_v54, 4  ;;  %v2309_v18 = vshrl.u32 %v5276_v55, 16  ;;  %v5310_v57 = vld [vmem:[%s7163_s11 + $0xc] sm:$0xe] }
  0x5d   : > { %v623_v11 = vrot.slane %v621_v59, 5  ;;  %6099 = vmatprep.mubr.msk.bf16.mxu1 %vm867_vm3, %v5397_v63  ;;  %v2307_v13 = vsel %vm7185_vm4, %v2302_v5, %v2306_v45  ;;  %v2312_v19 = vshll.u32 %v5276_v55, 16  ;;  %v2318_v20 = vshll.u32 %v7389_v61, 16  ;;  %v269_v55 = vld [vmem:[%s7163_s11 + $0x68] sm:$0x1] }
  0x5e   : > { %v2322_v22 = vshrl.u32 %v7389_v61, 16  ;;  %v5544_v27 = vcombine.low %v2297_v2, %v2307_v13  ;;  %v609_v30 = vrot.slane %v608_v8, 4  ;;  %v618_v36 = vor.u32 %v617_v9, %v613_v7  ;;  %v7420_v5 = vld [vmem:[%s7163_s11 + $0x6c] sm:$0xf] }
  0x5f   : > { %v2311_v35 = vrot.slane %v2309_v18, 4  ;;  %v2314_v39 = vrot.slane %v2312_v19, 5  ;;  %v2320_v50 = vrot.slane %v2318_v20, 5  ;;  %v2328_v43 = vshll.u32 %v7394_v14, 16 }
  0x60   : > { %v2324_v42 = vrot.slane %v2322_v22, 4  ;;  %6235 = vmatprep.mubr.msk.bf16.mxu0 %vm867_vm3, %v5544_v27  ;;  %v614_v45 = vsel %vm7185_vm4, %v609_v30, %v613_v7  ;;  %v619_v46 = vrot.slane %v618_v36, 4  ;;  %v626_v47 = vshrl.u32 %v7402_v26, 16 }
  0x61   : > { %v629_v48 = vshll.u32 %v7402_v26, 16  ;;  %v2315_v52 = vor.u32 %v2314_v39, %v2311_v35  ;;  %v2330_v54 = vrot.slane %v2328_v43, 5  ;;  %v635_v56 = vshll.u32 %v7405_v37, 16  ;;  %v7435_v35 = vld [vmem:[%s7163_s11 + $0x70] sm:$0xf] }
  0x62   : > { %v2325_v53 = vor.u32 %v2324_v42, %v2320_v50  ;;  %v624_v58 = vsel %vm7185_vm4, %v619_v46, %v623_v11  ;;  %v628_v59 = vrot.slane %v626_v47, 4  ;;  %v639_v2 = vshrl.u32 %v7405_v37, 16  ;;  %v270_v47 = vld [vmem:[%s7163_s11 + $0x74] sm:$0x1] }
  0x63   : > { %v631_v63 = vrot.slane %v629_v48, 5  ;;  %v5398_v7 = vcombine.low %v614_v45, %v624_v58  ;;  %v2316_v8 = vrot.slane %v2315_v52, 4  ;;  %v637_v18 = vrot.slane %v635_v56, 5  ;;  %v5311_v48 = vld [vmem:[%s7163_s11 + $0x18] sm:$0xe] }
  0x64   : > { %v2326_v9 = vrot.slane %v2325_v53, 4  ;;  %v641_v19 = vrot.slane %v639_v2, 4  ;;  %v645_v20 = vshll.u32 %v269_v55, 16  ;;  %v5570_v22 = vrot.slane %v5310_v57, 9 }
  0x65   : > { %v632_v13 = vor.u32 %v631_v63, %v628_v59  ;;  %6100 = vmatmul.mubr.msk.bf16.gmra.mrb[12].mxu1 %vm867_vm3, %v5398_v7  ;;  %v2321_v27 = vsel %vm7185_vm4, %v2316_v8, %v2320_v50  ;;  %v2852_v36 = vrot.slane %v7170_v15, 5  ;;  %v650_v39 = vshrl.u32 %v7420_v5, 16  ;;  %v7453_v7 = vld [vmem:[%s7163_s11 + $0x78] sm:$0xf] }
  0x66   : > { %v2331_v30 = vsel %vm7185_vm4, %v2326_v9, %v2330_v54  ;;  %v642_v45 = vor.u32 %v641_v19, %v637_v18  ;;  %v647_v46 = vrot.slane %v645_v20, 5  ;;  %v653_v54 = vshll.u32 %v7420_v5, 16  ;;  %v7458_v19 = vld [vmem:[%s7163_s11 + $0x7c] sm:$0xf]  ;;  %v271_v20 = vld [vmem:[%s7163_s11 + $0x80] sm:$0x1] }
  0x67   : > { %v5545_v42 = vcombine.low %v2321_v27, %v2331_v30  ;;  %v633_v43 = vrot.slane %v632_v13, 4  ;;  %v2853_v52 = vsel %vm7424_vm7, %v5570_v22, %v2852_v36  ;;  %v2854_v50 = vrot.slane %v2852_v36, 4 }
  0x68   : > { %v652_v53 = vrot.slane %v650_v39, 4  ;;  %v643_v55 = vrot.slane %v642_v45, 4  ;;  %v659_v56 = vshll.u32 %v7435_v35, 16  ;;  %v663_v57 = vshrl.u32 %v7435_v35, 16 }
  0x69   : > { %6236 = vmatmul.mubr.msk.bf16.gmra.mrb[12].mxu0 %vm867_vm3, %v5545_v42  ;;  %v638_v15 = vsel %vm7185_vm4, %v633_v43, %v637_v18  ;;  %v2856_v58 = vsel %vm7424_vm7, %v2854_v50, %v2855_v62  ;;  %v655_v59 = vrot.slane %v653_v54, 5  ;;  %v669_v63 = vshll.u32 %v270_v47, 16 }
  0x6a   : > { %v5571_v2 = vrot.slane %v5311_v48, 9  ;;  %v648_v8 = vsel %vm7185_vm4, %v643_v55, %v647_v46  ;;  %v5587_v9 = vcombine.low %v2853_v52, %v2856_v58  ;;  %v661_v18 = vrot.slane %v659_v56, 5  ;;  %v5312_v48 = vld [vmem:[%s7163_s11 + $0x24] sm:$0xe] }
  0x6b   : > { %v665_v13 = vrot.slane %v663_v57, 4  ;;  %v5399_v22 = vcombine.low %v638_v15, %v648_v8  ;;  %v656_v16 = vor.u32 %v655_v59, %v652_v53  ;;  %v671_v27 = vrot.slane %v669_v63, 5  ;;  %v7481_v56 = vld [vmem:[%s7163_s11 + $0x84] sm:$0xf]  ;;  %v7484_v57 = vld [vmem:[%s7163_s11 + $0x88] sm:$0xf] }
  0x6c   : > { %v2860_v62 = vsel %vm7424_vm7, %v5571_v2, %v2859_v23  ;;  %6257 = vmatprep.mubr.msk.bf16.mxu0 %vm867_vm3, %v5587_v9  ;;  %v2861_v36 = vrot.slane %v2859_v23, 4  ;;  %v674_v39 = vshrl.u32 %v7453_v7, 16  ;;  %v677_v42 = vshll.u32 %v7453_v7, 16 }
  0x6d   : > { %v666_v30 = vor.u32 %v665_v13, %v661_v18  ;;  %6103 = vmatprep.mubr.msk.bf16.mxu1 %vm867_vm3, %v5399_v22  ;;  %v657_v43 = vrot.slane %v656_v16, 4  ;;  %v683_v45 = vshll.u32 %v7458_v19, 16  ;;  %v687_v46 = vshrl.u32 %v7458_v19, 16 }
  0x6e   : > { %v693_v47 = vshll.u32 %v271_v20, 16  ;;  %v2863_v60 = vsel %vm7424_vm7, %v2861_v36, %v2862_v28  ;;  %v676_v23 = vrot.slane %v674_v39, 4  ;;  %v679_v50 = vrot.slane %v677_v42, 5  ;;  %v7491_v28 = vld [vmem:[%s9156_s1 + $0xe] sm:$0x3] }
  0x6f   : > { %v667_v52 = vrot.slane %v666_v30, 4  ;;  %v662_v53 = vsel %vm7185_vm4, %v657_v43, %v661_v18  ;;  %v5588_v54 = vcombine.low %v2860_v62, %v2863_v60  ;;  %v685_v15 = vrot.slane %v683_v45, 5  ;;  %v272_v20 = vld [vmem:[%s7163_s11 + $0x8c] sm:$0x1]  ;;  %v7518_v60 = vld [vmem:[%s7163_s11 + $0x94] sm:$0xf] }
  0x70   : > { %v689_v55 = vrot.slane %v687_v46, 4  ;;  %v680_v0 = vor.u32 %v679_v50, %v676_v23  ;;  %v695_v59 = vrot.slane %v693_v47, 5  ;;  %v5572_v63 = vrot.slane %v5312_v48, 9 }
  0x71   : > { %v672_v58 = vsel %vm7185_vm4, %v667_v52, %v671_v27  ;;  %6258 = vmatmul.mubr.msk.bf16.vlgmr.msra.gmra.mrb[0].mxu0 %vm867_vm3, %v5588_v54  ;;  %v2866_v9 = vrot.slane %v7238_v44, 5  ;;  %v2869_v18 = vrot.slane %v7242_v51, 5  ;;  %v698_v22 = vshrl.u32 %v7481_v56, 16  ;;  %v7515_v52 = vld [vmem:[%s7163_s11 + $0x90] sm:$0xf] }
  0x72   : > { %v5400_v2 = vcombine.low %v662_v53, %v672_v58  ;;  %v690_v8 = vor.u32 %v689_v55, %v685_v15  ;;  %6290 = vmatpush3.bf16.msra.mxu0 %v7215_v1  ;;  %v681_v13 = vrot.slane %v680_v0, 4  ;;  %v701_v16 = vshll.u32 %v7481_v56, 16  ;;  %v5313_v1 = vld [vmem:[%s7163_s11 + $0x30] sm:$0xe] }
  0x73   : > { %v707_v27 = vshll.u32 %v7484_v57, 16  ;;  %v2867_v44 = vsel %vm7424_vm7, %v5572_v63, %v2866_v9  ;;  %v2868_v30 = vrot.slane %v2866_v9, 4  ;;  %v711_v51 = vshrl.u32 %v7484_v57, 16  ;;  %6657 = vmatprep.subr.msk.bf16.mxu0 %vm916_vm0, %v7491_v28  ;;  %v273_v63 = vld [vmem:[%s7163_s11 + $0x98] sm:$0x1] }
  0x74   : > { %6104 = vmatmul.mubr.msk.bf16.gmra.mrb[16].mxu1 %vm867_vm3, %v5400_v2  ;;  %v691_v62 = vrot.slane %v690_v8, 4  ;;  %v686_v36 = vsel %vm7185_vm4, %v681_v13, %v685_v15  ;;  %v700_v39 = vrot.slane %v698_v22, 4  ;;  %v703_v42 = vrot.slane %v701_v16, 5 }
  0x75   : > { %v709_v43 = vrot.slane %v707_v27, 5  ;;  %v2870_v46 = vsel %vm7424_vm7, %v2868_v30, %v2869_v18  ;;  %v713_v47 = vrot.slane %v711_v51, 4  ;;  %v717_v48 = vshll.u32 %v272_v20, 16  ;;  %v5314_v20 = vld [vmem:[%s7163_s11 + $0x3c] sm:$0xe] }
  0x76   : > { %v696_v45 = vsel %vm7185_vm4, %v691_v62, %v695_v59  ;;  %v5589_v50 = vcombine.low %v2867_v44, %v2870_v46  ;;  %v704_v53 = vor.u32 %v703_v42, %v700_v39  ;;  %v5573_v54 = vrot.slane %v5313_v1, 9  ;;  %v7542_v39 = vld [vmem:[%s7163_s11 + $0xa0] sm:$0xf] }
  0x77   : > { %v5401_v23 = vcombine.low %v686_v36, %v696_v45  ;;  %v714_v15 = vor.u32 %v713_v47, %v709_v43  ;;  %v719_v55 = vrot.slane %v717_v48, 5  ;;  %v2873_v58 = vrot.slane %v7263_v29, 5  ;;  %v7539_v36 = vld [vmem:[%s7163_s11 + $0x9c] sm:$0xf] }
  0x78   : > { %v2876_v0 = vrot.slane %v7271_v38, 5  ;;  %6261 = vmatprep.mubr.msk.bf16.mxu0 %vm867_vm3, %v5589_v50  ;;  %v705_v59 = vrot.slane %v704_v53, 4  ;;  %v722_v2 = vshrl.u32 %v7515_v52, 16  ;;  %v725_v8 = vshll.u32 %v7515_v52, 16 }
  0x79   : > { %6107 = vmatprep.mubr.msk.bf16.mxu1 %vm867_vm3, %v5401_v23  ;;  %v731_v9 = vshll.u32 %v7518_v60, 16  ;;  %v715_v18 = vrot.slane %v714_v15, 4  ;;  %v2874_v29 = vsel %vm7424_vm7, %v5573_v54, %v2873_v58  ;;  %v2875_v13 = vrot.slane %v2873_v58, 4  ;;  %v274_v54 = vld [vmem:[%s7163_s11 + $0xa4] sm:$0x1] }
  0x7a   : > { %v735_v38 = vshrl.u32 %v7518_v60, 16  ;;  %v710_v22 = vsel %vm7185_vm4, %v705_v59, %v709_v43  ;;  %v724_v16 = vrot.slane %v722_v2, 4  ;;  %v727_v27 = vrot.slane %v725_v8, 5 }
  0x7b   : > { %v733_v62 = vrot.slane %v731_v9, 5  ;;  %v720_v44 = vsel %vm7185_vm4, %v715_v18, %v719_v55  ;;  %v2877_v30 = vsel %vm7424_vm7, %v2875_v13, %v2876_v0  ;;  %v741_v1 = vshll.u32 %v273_v63, 16  ;;  %v5315_v63 = vld [vmem:[%s7163_s11 + $0x48] sm:$0xe] }
  0x7c   : > { %v737_v51 = vrot.slane %v735_v38, 4  ;;  %v5402_v42 = vcombine.low %v710_v22, %v720_v44  ;;  %v5590_v45 = vcombine.low %v2874_v29, %v2877_v30  ;;  %v728_v46 = vor.u32 %v727_v27, %v724_v16  ;;  %v7563_v22 = vld [vmem:[%s7163_s11 + $0xa8] sm:$0xf]  ;;  %v7566_v16 = vld [vmem:[%s7163_s11 + $0xac] sm:$0xf] }
  0x7d   : > { %v5574_v43 = vrot.slane %v5314_v20, 9  ;;  %v743_v48 = vrot.slane %v741_v1, 5  ;;  %v2880_v23 = vrot.slane %v7296_v10, 5  ;;  %v2883_v50 = vrot.slane %v7301_v21, 5 }
  0x7e   : > { %v738_v47 = vor.u32 %v737_v51, %v733_v62  ;;  %6108 = vmatmul.mubr.msk.bf16.gmra.mrb[20].mxu1 %vm867_vm3, %v5402_v42  ;;  %6262 = vmatmul.mubr.msk.bf16.gmra.mrb[4].mxu0 %vm867_vm3, %v5590_v45  ;;  %v729_v53 = vrot.slane %v728_v46, 4  ;;  %v746_v15 = vshrl.u32 %v7539_v36, 16  ;;  %v749_v55 = vshll.u32 %v7539_v36, 16 }
  0x7f   : > { %v755_v58 = vshll.u32 %v7542_v39, 16  ;;  %v2881_v10 = vsel %vm7424_vm7, %v5574_v43, %v2880_v23  ;;  %v2882_v59 = vrot.slane %v2880_v23, 4  ;;  %v759_v21 = vshrl.u32 %v7542_v39, 16  ;;  %v275_v43 = vld [vmem:[%s7163_s11 + $0xb0] sm:$0x1] }
  0x80   : > { %v739_v0 = vrot.slane %v738_v47, 4  ;;  %v734_v2 = vsel %vm7185_vm4, %v729_v53, %v733_v62  ;;  %v748_v8 = vrot.slane %v746_v15, 4  ;;  %v751_v9 = vrot.slane %v749_v55, 5 }
  0x81   : > { %v757_v18 = vrot.slane %v755_v58, 5  ;;  %v2884_v13 = vsel %vm7424_vm7, %v2882_v59, %v2883_v50  ;;  %v761_v38 = vrot.slane %v759_v21, 4  ;;  %v765_v20 = vshll.u32 %v274_v54, 16  ;;  %v5316_v54 = vld [vmem:[%s7163_s11 + $0x54] sm:$0xe] }
  0x82   : > { %v744_v29 = vsel %vm7185_vm4, %v739_v0, %v743_v48  ;;  %v5591_v44 = vcombine.low %v2881_v10, %v2884_v13  ;;  %v752_v30 = vor.u32 %v751_v9, %v748_v8  ;;  %v5575_v62 = vrot.slane %v5315_v63, 9  ;;  %v7590_v8 = vld [vmem:[%s7163_s11 + $0xb8] sm:$0xf] }
  0x83   : > { %v5403_v27 = vcombine.low %v734_v2, %v744_v29  ;;  %v762_v51 = vor.u32 %v761_v38, %v757_v18  ;;  %v767_v1 = vrot.slane %v765_v20, 5  ;;  %v2887_v42 = vrot.slane %v7327_v4, 5  ;;  %v7587_v2 = vld [vmem:[%s7163_s11 + $0xb4] sm:$0xf] }
  0x84   : > { %v2890_v45 = vrot.slane %v7333_v12, 5  ;;  %6265 = vmatprep.mubr.msk.bf16.mxu0 %vm867_vm3, %v5591_v44  ;;  %v753_v46 = vrot.slane %v752_v30, 4  ;;  %v770_v47 = vshrl.u32 %v7563_v22, 16  ;;  %v773_v48 = vshll.u32 %v7563_v22, 16 }
  0x85   : > { %6111 = vmatprep.mubr.msk.bf16.mxu1 %vm867_vm3, %v5403_v27  ;;  %v779_v23 = vshll.u32 %v7566_v16, 16  ;;  %v763_v50 = vrot.slane %v762_v51, 4  ;;  %v2888_v4 = vsel %vm7424_vm7, %v5575_v62, %v2887_v42  ;;  %v2889_v53 = vrot.slane %v2887_v42, 4  ;;  %v276_v62 = vld [vmem:[%s7163_s11 + $0xbc] sm:$0x1] }
  0x86   : > { %v783_v12 = vshrl.u32 %v7566_v16, 16  ;;  %v758_v15 = vsel %vm7185_vm4, %v753_v46, %v757_v18  ;;  %v772_v55 = vrot.slane %v770_v47, 4  ;;  %v775_v58 = vrot.slane %v773_v48, 5 }
  0x87   : > { %v781_v0 = vrot.slane %v779_v23, 5  ;;  %v768_v10 = vsel %vm7185_vm4, %v763_v50, %v767_v1  ;;  %v2891_v59 = vsel %vm7424_vm7, %v2889_v53, %v2890_v45  ;;  %v789_v63 = vshll.u32 %v275_v43, 16  ;;  %v5317_v43 = vld [vmem:[%s7163_s11 + $0x60] sm:$0xe] }
  0x88   : > { %v785_v21 = vrot.slane %v783_v12, 4  ;;  %v5404_v9 = vcombine.low %v758_v15, %v768_v10  ;;  %v5592_v29 = vcombine.low %v2888_v4, %v2891_v59  ;;  %v776_v13 = vor.u32 %v775_v58, %v772_v55  ;;  %v5279_v4 = vld [vmem:[%s7163_s11 + $0x70] sm:$0xf]  ;;  %v5302_v55 = vld [vmem:[%s7163_s11 + $0x74] sm:$0x1] }
  0x89   : > { %v5576_v18 = vrot.slane %v5316_v54, 9  ;;  %v791_v20 = vrot.slane %v789_v63, 5  ;;  %v2894_v27 = vrot.slane %v7357_v17, 5  ;;  %v2897_v44 = vrot.slane %v7364_v6, 5  ;;  %v5318_v58 = vld [vmem:[%s7163_s11 + $0x6c] sm:$0xe] }
  0x8a   : > { %v786_v38 = vor.u32 %v785_v21, %v781_v0  ;;  %6112 = vmatmul.mubr.msk.bf16.gmra.mrb[24].mxu1 %vm867_vm3, %v5404_v9  ;;  %6266 = vmatmul.mubr.msk.bf16.gmra.mrb[8].mxu0 %vm867_vm3, %v5592_v29  ;;  %v777_v30 = vrot.slane %v776_v13, 4  ;;  %v794_v51 = vshrl.u32 %v7587_v2, 16  ;;  %v797_v1 = vshll.u32 %v7587_v2, 16 }
  0x8b   : > { %v803_v42 = vshll.u32 %v7590_v8, 16  ;;  %v2895_v17 = vsel %vm7424_vm7, %v5576_v18, %v2894_v27  ;;  %v2896_v6 = vrot.slane %v2894_v27, 4  ;;  %v807_v46 = vshrl.u32 %v7590_v8, 16 }
  0x8c   : > { %v787_v45 = vrot.slane %v786_v38, 4  ;;  %v782_v47 = vsel %vm7185_vm4, %v777_v30, %v781_v0  ;;  %v796_v48 = vrot.slane %v794_v51, 4  ;;  %v799_v23 = vrot.slane %v797_v1, 5  ;;  %v5319_v1 = vld [vmem:[%s7163_s11 + $0x78] sm:$0xe] }
  0x8d   : > { %v805_v50 = vrot.slane %v803_v42, 5  ;;  %v2898_v12 = vsel %vm7424_vm7, %v2896_v6, %v2897_v44  ;;  %v809_v54 = vrot.slane %v807_v46, 4  ;;  %v813_v15 = vshll.u32 %v276_v62, 16  ;;  %v7630_v6 = vld [vmem:[%s7163_s11 + $0x4] sm:$0xf] }
  0x8e   : > { %v792_v53 = vsel %vm7185_vm4, %v787_v45, %v791_v20  ;;  %v5593_v59 = vcombine.low %v2895_v17, %v2898_v12  ;;  %v800_v21 = vor.u32 %v799_v23, %v796_v48  ;;  %v5577_v63 = vrot.slane %v5317_v43, 9  ;;  %v6893_v17 = vld [vmem:[%s7163_s11] sm:$0xf]  ;;  %v5281_v43 = vld [vmem:[%s7163_s11 + $0x7c] sm:$0xf] }
  0x8f   : > { %v5405_v10 = vcombine.low %v782_v47, %v792_v53  ;;  %v810_v9 = vor.u32 %v809_v54, %v805_v50  ;;  %v815_v0 = vrot.slane %v813_v15, 5  ;;  %v2901_v29 = vrot.slane %v7389_v61, 5  ;;  %v5303_v47 = vld [vmem:[%s7163_s11 + $0x80] sm:$0x1]  ;;  %v5304_v53 = vld [vmem:[%s7163_s11 + $0x8c] sm:$0x1] }
  0x90   : > { %v2904_v13 = vrot.slane %v7394_v14, 5  ;;  %6269 = vmatprep.mubr.msk.bf16.mxu0 %vm867_vm3, %v5593_v59  ;;  %v801_v18 = vrot.slane %v800_v21, 4  ;;  %v5578_v38 = vrot.slane %v5318_v58, 9  ;;  %v2908_v20 = vrot.slane %v5279_v4, 5  ;;  %v5283_v4 = vld [vmem:[%s7163_s11 + $0x88] sm:$0xf] }
  0x91   : > { %6115 = vmatprep.mubr.msk.bf16.mxu1 %vm867_vm3, %v5405_v10  ;;  %v2911_v27 = vrot.slane %v5302_v55, 5  ;;  %v811_v44 = vrot.slane %v810_v9, 4  ;;  %v2902_v30 = vsel %vm7424_vm7, %v5577_v63, %v2901_v29  ;;  %v2903_v61 = vrot.slane %v2901_v29, 4  ;;  %v5320_v12 = vld [vmem:[%s7163_s11 + $0x84] sm:$0xe] }
  0x92   : > { %v806_v14 = vsel %vm7185_vm4, %v801_v18, %v805_v50  ;;  %v2909_v62 = vsel %vm7424_vm7, %v5578_v38, %v2908_v20  ;;  %v2910_v51 = vrot.slane %v2908_v20, 4  ;;  %v5423_v46 = vcombine.low %v6893_v17, %v7630_v6  ;;  %v5285_v55 = vld [vmem:[%s7163_s11 + $0x94] sm:$0xf]  ;;  %v5305_v59 = vld [vmem:[%s7163_s11 + $0x98] sm:$0x1] }
  0x93   : > { %v816_v42 = vsel %vm7185_vm4, %v811_v44, %v815_v0  ;;  %v2905_v45 = vsel %vm7424_vm7, %v2903_v61, %v2904_v13  ;;  %v5579_v15 = vrot.slane %v5319_v1, 9  ;;  %v2915_v58 = vrot.slane %v5281_v43, 5  ;;  %v5321_v0 = vld [vmem:[%s7163_s11 + $0x90] sm:$0xe]  ;;  %v5287_v38 = vld [vmem:[%s7163_s11 + $0xa0] sm:$0xf] }
  0x94   : > { %v5406_v48 = vcombine.low %v806_v14, %v816_v42  ;;  %v5594_v23 = vcombine.low %v2902_v30, %v2905_v45  ;;  %v2912_v50 = vsel %vm7424_vm7, %v2910_v51, %v2911_v27  ;;  %v2918_v10 = vrot.slane %v5303_v47, 5  ;;  %v6895_v20 = vld [vmem:[%s7163_s11 + $0xc] sm:$0xf]  ;;  %v7652_v27 = vld [vmem:[%s7163_s11 + $0x10] sm:$0xf] }
  0x95   : > { %v5595_v54 = vcombine.low %v2909_v62, %v2912_v50  ;;  %v5580_v21 = vrot.slane %v5320_v12, 9  ;;  %v2922_v63 = vrot.slane %v5283_v4, 5  ;;  %v2925_v9 = vrot.slane %v5304_v53, 5  ;;  %v5306_v14 = vld [vmem:[%s7163_s11 + $0xa4] sm:$0x1] }
  0x96   : > { %6116 = vmatmul.mubr.msk.bf16.gmra.mrb[28].mxu1 %vm867_vm3, %v5406_v48  ;;  %6270 = vmatmul.mubr.msk.bf16.gmra.mrb[12].mxu0 %vm867_vm3, %v5594_v23  ;;  %v2916_v29 = vsel %vm7424_vm7, %v5579_v15, %v2915_v58  ;;  %v2917_v13 = vrot.slane %v2915_v58, 4  ;;  %v2929_v18 = vrot.slane %v5285_v55, 5  ;;  %v5424_v44 = vcombine.low %v6895_v20, %v7652_v27  ;;  %v5322_v62 = vld [vmem:[%s7163_s11 + $0x9c] sm:$0xe]  ;;  %v6897_v1 = vld [vmem:[%s7163_s11 + $0x18] sm:$0xf] }
  0x97   : > { %6121 = vmatprep.mubr.msk.bf16.mxu1 %vm867_vm3, %v5423_v46  ;;  %6273 = vmatprep.mubr.msk.bf16.mxu0 %vm867_vm3, %v5595_v54  ;;  %v2923_v30 = vsel %vm7424_vm7, %v5580_v21, %v2922_v63  ;;  %v2924_v61 = vrot.slane %v2922_v63, 4  ;;  %v7663_v42 = vld [vmem:[%s7163_s11 + $0x1c] sm:$0xf]  ;;  %v5581_v17 = vrot.slane %v5321_v0, 9  ;;  %v2932_v46 = vrot.slane %v5305_v59, 5 }
  0x98   : > { %v2919_v51 = vsel %vm7424_vm7, %v2917_v13, %v2918_v10  ;;  %v5425_v45 = vcombine.low %v6897_v1, %v7663_v42  ;;  %v2931_v48 = vrot.slane %v2929_v18, 4  ;;  %v2936_v23 = vrot.slane %v5287_v38, 5  ;;  %v6899_v50 = vld [vmem:[%s9156_s1 + $0x4] sm:$0x3]  ;;  %v5289_v15 = vld [vmem:[%s7163_s11 + $0xac] sm:$0xf] }
  0x99   : > { %v5596_v43 = vcombine.low %v2916_v29, %v2919_v51  ;;  %v2926_v47 = vsel %vm7424_vm7, %v2924_v61, %v2925_v9  ;;  %v1619_v4 = vsel %vm916_vm0, %v6899_v50, 0  ;;  %v5582_v12 = vrot.slane %v5322_v62, 9  ;;  %v5291_v58 = vld [vmem:[%s7163_s11 + $0xb8] sm:$0xf]  ;;  %v7677_v10 = vld [vmem:[%s9156_s1 + $0x6] sm:$0x3] }
  0x9a   : > { %v5597_v53 = vcombine.low %v2923_v30, %v2926_v47  ;;  %v2939_v54 = vrot.slane %v5306_v14, 5  ;;  %v2938_v55 = vrot.slane %v2936_v23, 4  ;;  %v2930_v59 = vsel %vm7424_vm7, %v5581_v17, %v2929_v18  ;;  %v5307_v29 = vld [vmem:[%s7163_s11 + $0xb0] sm:$0x1]  ;;  %v5323_v13 = vld [vmem:[%s7163_s11 + $0xa8] sm:$0xe] }
  0x9b   : > { %v2933_v21 = vsel %vm7424_vm7, %v2931_v48, %v2932_v46  ;;  %v2943_v63 = vrot.slane %v5289_v15, 5  ;;  %v2937_v9 = vsel %vm7424_vm7, %v5582_v12, %v2936_v23  ;;  %v2950_v38 = vrot.slane %v5291_v58, 5  ;;  %v5308_v18 = vld [vmem:[%s7163_s11 + $0xbc] sm:$0x1]  ;;  %v5324_v20 = vld [vmem:[%s7163_s11 + $0xb4] sm:$0xe] }
  0x9c   : > { %v2940_v0 = vsel %vm7424_vm7, %v2938_v55, %v2939_v54  ;;  %v7699_v30 = vld [vmem:[%s7163_s11 + $0x28] sm:$0xf]  ;;  %v5598_v14 = vcombine.low %v2930_v59, %v2933_v21  ;;  %v5427_v62 = vcombine.low %v7274_v40, %v7280_v49  ;;  %v5583_v1 = vrot.slane %v5323_v13, 9  ;;  %v5293_v48 = vld [vmem:[%s7163_s11 + $0xc4] sm:$0xf] }
  0x9d   : > { %v5599_v51 = vcombine.low %v2937_v9, %v2940_v0  ;;  %v2946_v17 = vrot.slane %v5307_v29, 5  ;;  %v5584_v46 = vrot.slane %v5324_v20, 9  ;;  %v2953_v47 = vrot.slane %v5308_v18, 5  ;;  %v5325_v12 = vld [vmem:[%s7163_s11 + $0xc0] sm:$0xe] }
  0x9e   : > { %6122 = vmatmul.mubr.msk.bf16.vlgmr.msra.gmra.mrb[0].mxu1 %vm867_vm3, %v5424_v44  ;;  %6274 = vmatmul.mubr.msk.bf16.gmra.mrb[16].mxu0 %vm867_vm3, %v5596_v43  ;;  %v6900_v44 = vld [vmem:[%s7163_s11 + $0x24] sm:$0xf]  ;;  %v2952_v43 = vrot.slane %v2950_v38, 4  ;;  %v2944_v40 = vsel %vm7424_vm7, %v5583_v1, %v2943_v63  ;;  %v2957_v23 = vrot.slane %v5293_v48, 5  ;;  %v5428_v54 = vcombine.low %v7307_v34, %v7313_v41  ;;  %v7746_v18 = vld [vmem:[%s7163_s11 + $0x28] sm:$0xf] }
  0x9f   : > { %6154 = vmatpush3.bf16.msra.mxu1 %v1619_v4  ;;  %6125 = vmatprep.mubr.msk.bf16.mxu1 %vm867_vm3, %v5425_v45  ;;  %v5426_v61 = vcombine.low %v6900_v44, %v7699_v30  ;;  %v2945_v45 = vrot.slane %v2943_v63, 4  ;;  %v2951_v50 = vsel %vm7424_vm7, %v5584_v46, %v2950_v38  ;;  %v5429_v55 = vcombine.low %v7339_v24, %v7342_v31  ;;  %v5326_v24 = vld [vmem:[%s7163_s11 + $0x18] sm:$0xf]  ;;  %v7733_v31 = vld [vmem:[%s7163_s11 + $0x1c] sm:$0xf] }
  0xa0   : > { %6277 = vmatprep.mubr.msk.bf16.mxu0 %vm867_vm3, %v5597_v53  ;;  %6652 = vmatprep.subr.msk.bf16.mxu1 %vm916_vm0, %v7677_v10  ;;  %v2954_v4 = vsel %vm7424_vm7, %v2952_v43, %v2953_v47  ;;  %v5309_v53 = vld [vmem:[%s7163_s11 + $0xc8] sm:$0x1]  ;;  %v5585_v59 = vrot.slane %v5325_v12, 9  ;;  %v2959_v21 = vrot.slane %v2957_v23, 4  ;;  %v5430_v9 = vcombine.low %v7369_v25, %v7375_v33  ;;  %v5328_v38 = vld [vmem:[%s7163_s11 + $0x24] sm:$0xf] }
  0xa1   : > { %v2947_v49 = vsel %vm7424_vm7, %v2945_v45, %v2946_v17  ;;  %v5601_v58 = vcombine.low %v2951_v50, %v2954_v4  ;;  %v2960_v63 = vrot.slane %v5309_v53, 5  ;;  %v5431_v29 = vcombine.low %v7402_v26, %v7405_v37  ;;  %v5330_v25 = vld [vmem:[%s7163_s11 + $0x30] sm:$0xf]  ;;  %v7750_v33 = vld [vmem:[%s7163_s11 + $0x34] sm:$0xf] }
  0xa2   : > { %v5600_v15 = vcombine.low %v2944_v40, %v2947_v49  ;;  %v2958_v34 = vsel %vm7424_vm7, %v5585_v59, %v2957_v23  ;;  %v5620_v13 = vcombine.low %v5326_v24, %v7733_v31  ;;  %v5432_v26 = vcombine.low %v7420_v5, %v7435_v35  ;;  %v5332_v5 = vld [vmem:[%s7163_s11 + $0x3c] sm:$0xf]  ;;  %v7770_v35 = vld [vmem:[%s7163_s11 + $0x40] sm:$0xf]  ;;  %v7791_v23 = vld [vmem:[%s7163_s11 + $0x14] sm:$0x1] }
  0xa3   : > { %v2961_v41 = vsel %vm7424_vm7, %v2959_v21, %v2960_v63  ;;  %v5621_v37 = vcombine.low %v5328_v38, %v7746_v18  ;;  %v5433_v20 = vcombine.low %v7453_v7, %v7458_v19  ;;  %v4065_v44 = vsel %vm916_vm0, %v7491_v28, 0  ;;  %v5334_v7 = vld [vmem:[%s7163_s11 + $0x48] sm:$0xf]  ;;  %v7775_v19 = vld [vmem:[%s7163_s11 + $0x4c] sm:$0xf] }
  0xa4   : > { %v5602_v0 = vcombine.low %v2958_v34, %v2961_v41  ;;  %v3583_v28 = vshrl.u32 %v5326_v24, 16  ;;  %v3607_v45 = vshrl.u32 %v5328_v38, 16  ;;  %v5434_v17 = vcombine.low %v7481_v56, %v7484_v57  ;;  %v7806_v59 = vld [vmem:[%s7163_s11 + $0x58] sm:$0xf]  ;;  %v6909_v57 = vld [vmem:[%s7163_s11 + $0x4c] sm:$0xf] }
  0xa5   : > { %v5623_v46 = vcombine.low %v5332_v5, %v7770_v35  ;;  %v3610_v43 = vshll.u32 %v5328_v38, 16  ;;  %v3631_v47 = vshrl.u32 %v5330_v25, 16  ;;  %v5435_v48 = vcombine.low %v7515_v52, %v7518_v60  ;;  %v5336_v52 = vld [vmem:[%s7163_s11 + $0x54] sm:$0xf] }
  0xa6   : > { %6126 = vmatmul.mubr.msk.bf16.gmra.mrb[4].mxu1 %vm867_vm3, %v5426_v61  ;;  %6278 = vmatmul.mubr.msk.bf16.gmra.mrb[20].mxu0 %vm867_vm3, %v5598_v14  ;;  %v5622_v61 = vcombine.low %v5330_v25, %v7750_v33  ;;  %v7763_v14 = vld [vmem:[%s9156_s1 + $0x10] sm:$0x3]  ;;  %v5624_v40 = vcombine.low %v5334_v7, %v7775_v19  ;;  %v1417_v49 = vrot.slane %v7652_v27, 5  ;;  %v1420_v50 = vrot.slane %v7791_v23, 5  ;;  %v6904_v27 = vld [vmem:[%s7163_s11 + $0x20] sm:$0x1] }
  0xa7   : > { %6129 = vmatprep.mubr.msk.bf16.mxu1 %vm867_vm3, %v5427_v62  ;;  %6281 = vmatprep.mubr.msk.bf16.mxu0 %vm867_vm3, %v5599_v51  ;;  %v3586_v62 = vshll.u32 %v5326_v24, 16  ;;  %v7780_v51 = vld [vmem:[%s7163_s11 + $0x8] sm:$0x1]  ;;  %v3634_v4 = vshll.u32 %v5330_v25, 16  ;;  %v3655_v53 = vshrl.u32 %v5332_v5, 16  ;;  %v7794_v12 = vrot.slane %v3583_v28, 4 }
  0xa8   : > { %v1413_v1 = vrot.slane %v7780_v51, 5  ;;  %v7800_v60 = vrot.slane %v3607_v45, 4  ;;  %v7808_v21 = vrot.slane %v3610_v43, 5  ;;  %v7810_v63 = vrot.slane %v3631_v47, 4  ;;  %v5338_v24 = vld [vmem:[%s7163_s11 + $0x60] sm:$0xf] }
  0xa9   : > { %v7796_v56 = vrot.slane %v3586_v62, 5  ;;  %v1410_v38 = vrot.slane %v7630_v6, 5  ;;  %v3727_v28 = vshrl.u32 %v5338_v24, 16  ;;  %v5437_v62 = vcombine.low %v7563_v22, %v7566_v16  ;;  %v7845_v43 = vld [vmem:[%s7163_s11 + $0x70] sm:$0xf] }
  0xaa   : > { %v5438_v22 = vcombine.low %v7587_v2, %v7590_v8  ;;  %v7916_v23 = vsel %vm916_vm0, %v7677_v10, 0  ;;  %v7931_v10 = vld [vmem:[%s7163_s11 + $0xa0] sm:$0xf] }
  0xae   : > { %6130 = vmatmul.mubr.msk.bf16.gmra.mrb[8].mxu1 %vm867_vm3, %v5428_v54  ;;  %6282 = vmatmul.mubr.msk.bf16.gmra.mrb[24].mxu0 %vm867_vm3, %v5600_v15  ;;  %v3658_v54 = vshll.u32 %v5332_v5, 16  ;;  %v6907_v15 = vld [vmem:[%s7163_s11 + $0x38] sm:$0x1] }
  0xaf   : > { %6133 = vmatprep.mubr.msk.bf16.mxu1 %vm867_vm3, %v5429_v55  ;;  %6285 = vmatprep.mubr.msk.bf16.mxu0 %vm867_vm3, %v5601_v58  ;;  %v3679_v55 = vshrl.u32 %v5334_v7, 16  ;;  %v3682_v58 = vshll.u32 %v5334_v7, 16  ;;  %v5625_v7 = vcombine.low %v5336_v52, %v7806_v59 }
  0xb0   : > { %v7825_v25 = vrot.slane %v3658_v54, 5  ;;  %v5342_v54 = vld [vmem:[%s7163_s11 + $0x78] sm:$0xf] }
  0xb1   : > { %v7833_v5 = vrot.slane %v3682_v58, 5  ;;  %v3775_v58 = vshrl.u32 %v5342_v54, 16 }
  0xb6   : > { %6134 = vmatmul.mubr.msk.bf16.gmra.mrb[12].mxu1 %vm867_vm3, %v5430_v9  ;;  %6286 = vmatmul.mubr.msk.bf16.gmra.mrb[28].mxu0 %vm867_vm3, %v5602_v0  ;;  %v7817_v9 = vrot.slane %v3634_v4, 5  ;;  %v7819_v0 = vrot.slane %v3655_v53, 4  ;;  %v7909_v53 = vld [vmem:[%s7163_s11 + $0x94] sm:$0xf] }
  0xb7   : > { %6137 = vmatprep.mubr.msk.bf16.mxu1 %vm867_vm3, %v5431_v29  ;;  %6291 = vmatprep.mubr.msk.bf16.mxu0 %vm867_vm3, %v5620_v13  ;;  %v3703_v29 = vshrl.u32 %v5336_v52, 16  ;;  %v7822_v13 = vld [vmem:[%s7163_s11 + $0x64] sm:$0xf]  ;;  %9175 = vst [vmem:[#allocation8_spill] sm:$0xff] %v7909_v53 }
  0xb8   : > { %v5626_v45 = vcombine.low %v5338_v24, %v7822_v13 }
  0xbe   : > { %6138 = vmatmul.mubr.msk.bf16.gmra.mrb[16].mxu1 %vm867_vm3, %v5432_v26  ;;  %6292 = vmatmul.mubr.msk.bf16.vlgmr.msra.gmra.mrb[0].mxu0 %vm867_vm3, %v5621_v37  ;;  %v5436_v37 = vcombine.low %v7539_v36, %v7542_v39  ;;  %v5340_v36 = vld [vmem:[%s7163_s11 + $0x6c] sm:$0xf] }
  0xbf   : > { %6324 = vmatpush3.bf16.msra.mxu0 %v4065_v44  ;;  %6141 = vmatprep.mubr.msk.bf16.mxu1 %vm867_vm3, %v5433_v20  ;;  %v3706_v20 = vshll.u32 %v5336_v52, 16  ;;  %v277_v44 = vld [vmem:[%s7163_s11] sm:$0xe]  ;;  %v278_v39 = vld [vmem:[%s7163_s11 + $0xc] sm:$0xe]  ;;  %v3751_v47 = vshrl.u32 %v5340_v36, 16  ;;  %v5627_v8 = vcombine.low %v5340_v36, %v7845_v43 }
  0xc0   : > { %6295 = vmatprep.mubr.msk.bf16.mxu0 %vm867_vm3, %v5622_v61  ;;  %6658 = vmatprep.subr.msk.bf16.mxu0 %vm916_vm0, %v7763_v14  ;;  %v7831_v61 = vrot.slane %v3679_v55, 4  ;;  %v3754_v16 = vshll.u32 %v5340_v36, 16  ;;  %v7855_v52 = vrot.slane %v3727_v28, 4  ;;  %v7858_v55 = vld [vmem:[%s7163_s11 + $0x7c] sm:$0xf] }
  0xc1   : > { %v7847_v4 = vrot.slane %v3706_v20, 5  ;;  %v1424_v20 = vrot.slane %v7663_v42, 5  ;;  %v5628_v42 = vcombine.low %v5342_v54, %v7858_v55  ;;  %v6905_v26 = vld [vmem:[%s7163_s11 + $0x2c] sm:$0x1] }
  0xc2   : > { %v7881_v36 = vrot.slane %v3754_v16, 5  ;;  %v1431_v16 = vrot.slane %v7699_v30, 5  ;;  %v1434_v41 = vrot.slane %v6905_v26, 5 }
  0xc4   : > { %v1433_v6 = vrot.slane %v1431_v16, 4 }
  0xc6   : > { %6142 = vmatmul.mubr.msk.bf16.gmra.mrb[20].mxu1 %vm867_vm3, %v5434_v17  ;;  %6296 = vmatmul.mubr.msk.bf16.gmra.mrb[4].mxu0 %vm867_vm3, %v5623_v46  ;;  %v3730_v17 = vshll.u32 %v5338_v24, 16  ;;  %v7842_v46 = vrot.slane %v3703_v29, 4  ;;  %v5456_v24 = vrot.slane %v278_v39, 9  ;;  %v1419_v29 = vrot.slane %v1417_v49, 4 }
  0xc7   : > { %6145 = vmatprep.mubr.msk.bf16.mxu1 %vm867_vm3, %v5435_v48  ;;  %6299 = vmatprep.mubr.msk.bf16.mxu0 %vm867_vm3, %v5624_v40  ;;  %v5455_v48 = vrot.slane %v277_v44, 9  ;;  %v1412_v40 = vrot.slane %v1410_v38, 4  ;;  %v7869_v44 = vrot.slane %v3751_v47, 4  ;;  %v7886_v47 = vld [vmem:[%s7163_s11 + $0x88] sm:$0xf]  ;;  %v1426_v39 = vrot.slane %v1424_v20, 4 }
  0xc8   : > { %v7864_v2 = vrot.slane %v3730_v17, 5  ;;  %v279_v17 = vld [vmem:[%s7163_s11 + $0x18] sm:$0xe]  ;;  %9173 = vst [vmem:[#allocation6_spill] sm:$0xff] %v7886_v47 }
  0xc9   : > { %v1414_v28 = vsel %vm7424_vm7, %v1412_v40, %v1413_v1  ;;  %v7895_v1 = vsel %vm7424_vm7, %v5456_v24, %v1417_v49  ;;  %v7904_v40 = vld [vmem:[%s7163_s11 + $0x90] sm:$0xf]  ;;  %v280_v49 = vld [vmem:[%s7163_s11 + $0x24] sm:$0xe] }
  0xca   : > { %v5630_v26 = vcombine.low %v7904_v40, %v7909_v53 }
  0xce   : > { %6146 = vmatmul.mubr.msk.bf16.gmra.mrb[24].mxu1 %vm867_vm3, %v5436_v37  ;;  %6300 = vmatmul.mubr.msk.bf16.gmra.mrb[8].mxu0 %vm867_vm3, %v5625_v7  ;;  %v1411_v7 = vsel %vm7424_vm7, %v5455_v48, %v1410_v38  ;;  %v7889_v38 = vrot.slane %v3775_v58, 4  ;;  %v7901_v48 = vsel %vm7424_vm7, %v1419_v29, %v1420_v50  ;;  %v5457_v58 = vrot.slane %v279_v17, 9  ;;  %v7922_v29 = vld [vmem:[%s7163_s11 + $0x9c] sm:$0xf] }
  0xcf   : > { %6149 = vmatprep.mubr.msk.bf16.mxu1 %vm867_vm3, %v5437_v62  ;;  %6303 = vmatprep.mubr.msk.bf16.mxu0 %vm867_vm3, %v5626_v45  ;;  %v3778_v62 = vshll.u32 %v5342_v54, 16  ;;  %v7878_v45 = vld [vmem:[%s7163_s11 + $0x84] sm:$0xf]  ;;  %v5472_v54 = vcombine.low %v1411_v7, %v1414_v28  ;;  %v1427_v37 = vrot.slane %v6904_v27, 5  ;;  %v5473_v7 = vcombine.low %v7895_v1, %v7901_v48  ;;  %v281_v1 = vld [vmem:[%s7163_s11 + $0x30] sm:$0xe] }
  0xd0   : > { %v3799_v51 = vshrl.u32 %v7878_v45, 16  ;;  %9174 = vst [vmem:[#allocation7_spill] sm:$0xff] %v7889_v38  ;;  %v5629_v30 = vcombine.low %v7878_v45, %v7886_v47  ;;  %v3802_v50 = vshll.u32 %v7878_v45, 16  ;;  %v3826_v17 = vshll.u32 %v7904_v40, 16  ;;  %v6906_v48 = vld [vmem:[%s7163_s11 + $0x34] sm:$0xf] }
  0xd1   : > { %v7912_v24 = vrot.slane %v3778_v62, 5  ;;  %v3823_v62 = vshrl.u32 %v7904_v40, 16  ;;  %v5458_v27 = vrot.slane %v280_v49, 9  ;;  %v1438_v49 = vrot.slane %v6906_v48, 5  ;;  %v8027_v47 = vld [vmem:[%s7163_s11 + $0x20] sm:$0x1] }
  0xd2   : > { %v7926_v28 = vrot.slane %v3799_v51, 4  ;;  %v1425_v51 = vsel %vm7424_vm7, %v5457_v58, %v1424_v20  ;;  %v7946_v45 = vrot.slane %v3802_v50, 5  ;;  %v7954_v58 = vrot.slane %v3826_v17, 5  ;;  %v7959_v50 = vld [vmem:[%s7163_s11 + $0xa8] sm:$0xf] }
  0xd3   : > { %9176 = vst [vmem:[#allocation9_spill] sm:$0xff] %v7912_v24  ;;  %v7952_v20 = vrot.slane %v3823_v62, 4  ;;  %v7963_v40 = vsel %vm7424_vm7, %v5458_v27, %v1431_v16  ;;  %v7970_v62 = vld [vmem:[%s7163_s11 + $0xac] sm:$0xf]  ;;  %v3871_v17 = vshrl.u32 %v7959_v50, 16  ;;  %v3874_v16 = vshll.u32 %v7959_v50, 16 }
  0xd4   : > { %9177 = vst [vmem:[#allocation10_spill] sm:$0xff] %v7926_v28  ;;  %9178 = vst [vmem:[#allocation11_spill] sm:$0xff] %v7946_v45  ;;  %v282_v27 = vld [vmem:[%s7163_s11 + $0x3c] sm:$0xe]  ;;  %v6916_v28 = vld [vmem:[%s7163_s11 + $0x68] sm:$0x1] }
  0xd5   : > { %9179 = vst [vmem:[#allocation12_spill] sm:$0xff] %v7952_v20  ;;  %9180 = vst [vmem:[#allocation13_spill] sm:$0xff] %v7954_v58  ;;  %v1469_v53 = vrot.slane %v6916_v28, 5  ;;  %v8047_v38 = vld [vmem:[%s7163_s11 + $0xc0] sm:$0xf] }
  0xd6   : > { %6150 = vmatmul.mubr.msk.bf16.gmra.mrb[28].mxu1 %vm867_vm3, %v5438_v22  ;;  %6304 = vmatmul.mubr.msk.bf16.gmra.mrb[12].mxu0 %vm867_vm3, %v5627_v8  ;;  %v1428_v22 = vsel %vm7424_vm7, %v1426_v39, %v1427_v37  ;;  %v3847_v8 = vshrl.u32 %v7922_v29, 16  ;;  %v5459_v39 = vrot.slane %v281_v1, 9  ;;  %v1440_v1 = vrot.slane %v1438_v49, 4 }
  0xd7   : > { %6155 = vmatprep.mubr.msk.bf16.mxu1 %vm867_vm3, %v5472_v54  ;;  %6307 = vmatprep.mubr.msk.bf16.mxu0 %vm867_vm3, %v5628_v42  ;;  %v3850_v42 = vshll.u32 %v7922_v29, 16  ;;  %v5474_v48 = vcombine.low %v1425_v51, %v1428_v22  ;;  %v7967_v54 = vsel %vm7424_vm7, %v1433_v6, %v1434_v41  ;;  %v1441_v51 = vrot.slane %v6907_v15, 5  ;;  %v6908_v6 = vld [vmem:[%s7163_s11 + $0x40] sm:$0xf]  ;;  %v284_v41 = vld [vmem:[%s7163_s11 + $0x54] sm:$0xe] }
  0xd8   : > { %v7973_v34 = vrot.slane %v3847_v8, 4  ;;  %v1445_v37 = vrot.slane %v6908_v6, 5  ;;  %v1452_v8 = vrot.slane %v6909_v57, 5  ;;  %v5475_v3 = vcombine.low %v7963_v40, %v7967_v54  ;;  %v6910_v6 = vld [vmem:[%s7163_s11 + $0x58] sm:$0xf] }
  0xd9   : > { %v7978_v22 = vrot.slane %v3850_v42, 5  ;;  %v7992_v42 = vld [vmem:[%s7163_s11 + $0xb4] sm:$0xf]  ;;  %v1459_v58 = vrot.slane %v6910_v6, 5  ;;  %v7999_v57 = vrot.slane %v3871_v17, 4  ;;  %v5460_v54 = vrot.slane %v282_v27, 9 }
  0xda   : > { %9181 = vst [vmem:[#allocation14_spill] sm:$0xff] %v7973_v34  ;;  %v7987_v34 = vsel %vm7424_vm7, %v5459_v39, %v1438_v49  ;;  %v285_v39 = vld [vmem:[%s7163_s11 + $0x60] sm:$0xe]  ;;  %v6911_v40 = vld [vmem:[%s7163_s11 + $0x64] sm:$0xf]  ;;  %v1442_v6 = vsel %vm7424_vm7, %v1440_v1, %v1441_v51  ;;  %v3592_v27 = vshll.u32 %v7733_v31, 16 }
  0xdb   : > { %9182 = vst [vmem:[#allocation15_spill] sm:$0xff] %v7978_v22  ;;  %v283_v22 = vld [vmem:[%s7163_s11 + $0x48] sm:$0xe]  ;;  %9183 = vst [vmem:[#allocation16_spill] sm:$0xff] %v7999_v57  ;;  %v1466_v15 = vrot.slane %v6911_v40, 5  ;;  %v1447_v40 = vrot.slane %v1445_v37, 4  ;;  %v5476_v45 = vcombine.low %v7987_v34, %v1442_v6 }
  0xdc   : > { %v8012_v57 = vld [vmem:[%s7163_s11 + $0xb8] sm:$0xf]  ;;  %v5461_v49 = vrot.slane %v283_v22, 9  ;;  %v6914_v1 = vld [vmem:[%s9156_s1 + $0x8] sm:$0x3]  ;;  %v5462_v51 = vrot.slane %v284_v41, 9  ;;  %v1446_v22 = vsel %vm7424_vm7, %v5460_v54, %v1445_v37 }
  0xdd   : > { %v8029_v24 = vrot.slane %v3592_v27, 5  ;;  %v9185_v41 = vshrl.u32 %v7733_v31, 16  ;;  %v3616_v6 = vshll.u32 %v7746_v18, 16  ;;  %v3589_v31 = vor.u32 %v7796_v56, %v7794_v12 }
  0xde   : > { %6156 = vmatmul.mubr.msk.bf16.vlgmr.msra.gmra.mrb[0].mxu1 %vm867_vm3, %v5473_v7  ;;  %6308 = vmatmul.mubr.msk.bf16.gmra.mrb[16].mxu0 %vm867_vm3, %v5629_v30  ;;  %v8008_v7 = vrot.slane %v3874_v16, 5  ;;  %v6912_v30 = vld [vmem:[%s7163_s11 + $0x44] sm:$0x1]  ;;  %v1461_v16 = vrot.slane %v1459_v58, 4  ;;  %v1453_v27 = vsel %vm7424_vm7, %v5461_v49, %v1452_v8  ;;  %v8054_v37 = vsel %vm7424_vm7, %v5462_v51, %v1459_v58 }
  0xdf   : > { %6188 = vmatpush3.bf16.msra.mxu1 %v7916_v23  ;;  %6159 = vmatprep.mubr.msk.bf16.mxu1 %vm867_vm3, %v5474_v48  ;;  %v1448_v17 = vrot.slane %v6912_v30, 5  ;;  %v1454_v23 = vrot.slane %v1452_v8, 4  ;;  %v6913_v48 = vld [vmem:[%s7163_s11 + $0x50] sm:$0x1]  ;;  %v6915_v30 = vld [vmem:[%s7163_s11 + $0x5c] sm:$0x1]  ;;  %v9186_v56 = vcombine.low %v7922_v29, %v7931_v10 }
  0xe0   : > { %9184 = vst [vmem:[#allocation17_spill] sm:$0xff] %v8008_v7  ;;  %6311 = vmatprep.mubr.msk.bf16.mxu0 %vm867_vm3, %v5630_v26  ;;  %v1455_v20 = vrot.slane %v6913_v48, 5  ;;  %6654 = vmatprep.subr.msk.bf16.mxu1 %vm916_vm0, %v6914_v1  ;;  %v1462_v7 = vrot.slane %v6915_v30, 5  ;;  %v5463_v26 = vrot.slane %v285_v39, 9  ;;  %v1468_v48 = vrot.slane %v1466_v15, 4 }
  0xe1   : > { %v3598_v1 = vrot.slane %v9185_v41, 4  ;;  %v286_v30 = vld [vmem:[%s7163_s11 + $0x6c] sm:$0xe]  ;;  %v6917_v39 = vld [vmem:[%s7163_s11 + $0x70] sm:$0xf]  ;;  %v1449_v28 = vsel %vm7424_vm7, %v1447_v40, %v1448_v17  ;;  %v3602_v49 = vshll.u32 %v8027_v47, 16 }
  0xe2   : > { %v1473_v34 = vrot.slane %v6917_v39, 5  ;;  %v1456_v41 = vsel %vm7424_vm7, %v1454_v23, %v1455_v20  ;;  %v8050_v39 = vld [vmem:[%s7163_s11 + $0xc4] sm:$0xf]  ;;  %v8058_v54 = vsel %vm7424_vm7, %v1461_v16, %v1462_v7  ;;  %v8061_v8 = vld [vmem:[%s7163_s11 + $0xcc] sm:$0xf]  ;;  %v8065_v12 = vsel %vm7424_vm7, %v5463_v26, %v1466_v15 }
  0xe3   : > { %v8073_v20 = vld [vmem:[%s7163_s11 + $0xd0] sm:$0xf]  ;;  %v8077_v58 = vsel %vm7424_vm7, %v1468_v48, %v1469_v53  ;;  %v5464_v7 = vrot.slane %v286_v30, 9  ;;  %v6918_v17 = vld [vmem:[%s7163_s11 + $0x74] sm:$0x1]  ;;  %v3599_v29 = vor.u32 %v3598_v1, %v8029_v24  ;;  %v8090_v53 = vrot.slane %v3616_v6, 5 }
  0xe4   : > { %v1476_v40 = vrot.slane %v6918_v17, 5  ;;  %v1475_v15 = vrot.slane %v1473_v34, 4  ;;  %v8088_v23 = vld [vmem:[%s7163_s11 + $0x2c] sm:$0x1]  ;;  %v9189_v51 = vshrl.u32 %v7746_v18, 16  ;;  %v5634_v26 = vcombine.low %v8047_v38, %v8050_v39 }
  0xe5   : > { %9188 = vst [vmem:[#allocation18_spill] sm:$0xff] %v8088_v23  ;;  %v3640_v48 = vshll.u32 %v7750_v33, 16  ;;  %v5477_v1 = vcombine.low %v1446_v22, %v1449_v28  ;;  %v5478_v30 = vcombine.low %v1453_v27, %v1456_v41  ;;  %v3604_v17 = vrot.slane %v3602_v49, 5  ;;  %v6919_v41 = vld [vmem:[%s7163_s11 + $0x7c] sm:$0xf] }
  0xe6   : > { %6160 = vmatmul.mubr.msk.bf16.gmra.mrb[4].mxu1 %vm867_vm3, %v5475_v3  ;;  %6312 = vmatmul.mubr.msk.bf16.gmra.mrb[20].mxu0 %vm867_vm3, %v9186_v56  ;;  %v9187_v3 = vcombine.low %v7959_v50, %v7970_v62  ;;  %v3622_v16 = vrot.slane %v9189_v51, 4  ;;  %v3613_v50 = vor.u32 %v7808_v21, %v7800_v60  ;;  %v3626_v60 = vshll.u32 %v8088_v23, 16  ;;  %v287_v21 = vld [vmem:[%s7163_s11 + $0x78] sm:$0xe] }
  0xe7   : > { %6163 = vmatprep.mubr.msk.bf16.mxu1 %vm867_vm3, %v5476_v45  ;;  %v3590_v45 = vrot.slane %v3589_v31, 4  ;;  %v8107_v31 = vsel %vm7424_vm7, %v5464_v7, %v1473_v34  ;;  %v3600_v22 = vrot.slane %v3599_v29, 4  ;;  %v8113_v28 = vsel %vm7424_vm7, %v1475_v15, %v1476_v40  ;;  %v8123_v7 = vld [vmem:[%s7163_s11 + $0x38] sm:$0x1] }
  0xe8   : > { %6315 = vmatprep.mubr.msk.bf16.mxu0 %vm867_vm3, %v9187_v3  ;;  %v3623_v27 = vor.u32 %v3622_v16, %v8090_v53  ;;  %v1480_v3 = vrot.slane %v6919_v41, 5  ;;  %v8120_v34 = vrot.slane %v3613_v50, 4  ;;  %9190 = vst [vmem:[#allocation19_spill] sm:$0xff] %v8123_v7  ;;  %v8125_v51 = vrot.slane %v3640_v48, 5  ;;  %v288_v16 = vld [vmem:[%s7163_s11 + $0x84] sm:$0xe] }
  0xe9   : > { %v3595_v49 = vsel %vm7185_vm4, %v3590_v45, %v8029_v24  ;;  %v9191_v29 = vshrl.u32 %v7750_v33, 16  ;;  %v8131_v40 = vsel %vm916_vm0, %v7763_v14, 0  ;;  %v5465_v15 = vrot.slane %v287_v21, 9  ;;  %v6920_v41 = vld [vmem:[%s7163_s11 + $0x88] sm:$0xf] }
  0xea   : > { %v1487_v18 = vrot.slane %v6920_v41, 5  ;;  %v3664_v6 = vshll.u32 %v7770_v35, 16  ;;  %v9192_v24 = vcombine.low %v7992_v42, %v8012_v57  ;;  %v3628_v45 = vrot.slane %v3626_v60, 5  ;;  %v6921_v14 = vld [vmem:[%s7163_s11 + $0x80] sm:$0x1] }
  0xeb   : > { %v3646_v56 = vrot.slane %v9191_v29, 4  ;;  %v1483_v50 = vrot.slane %v6921_v14, 5  ;;  %v3637_v48 = vor.u32 %v7817_v9, %v7810_v63  ;;  %v3624_v21 = vrot.slane %v3623_v27, 4 }
  0xec   : > { %v1482_v29 = vrot.slane %v1480_v3, 4  ;;  %v3688_v41 = vshll.u32 %v7775_v19, 16  ;;  %v3619_v60 = vsel %vm7185_vm4, %v8120_v34, %v8090_v53  ;;  %v3650_v9 = vshll.u32 %v8123_v7, 16  ;;  %v8167_v34 = vld [vmem:[%s7163_s11 + $0x44] sm:$0x1] }
  0xed   : > { %v3647_v63 = vor.u32 %v3646_v56, %v8125_v51  ;;  %v9193_v27 = vshrl.u32 %v7770_v35, 16  ;;  %v8164_v23 = vsel %vm7424_vm7, %v5465_v15, %v1480_v3  ;;  %v3638_v53 = vrot.slane %v3637_v48, 4  ;;  %v289_v56 = vld [vmem:[%s7163_s11 + $0x90] sm:$0xe]  ;;  %v6923_v7 = vld [vmem:[%s7163_s11 + $0x94] sm:$0xf] }
  0xee   : > { %6164 = vmatmul.mubr.msk.bf16.gmra.mrb[8].mxu1 %vm867_vm3, %v5477_v1  ;;  %6316 = vmatmul.mubr.msk.bf16.gmra.mrb[24].mxu0 %vm867_vm3, %v9192_v24  ;;  %v3605_v1 = vsel %vm7185_vm4, %v3600_v22, %v3604_v17  ;;  %v6922_v24 = vld [vmem:[%s7163_s11 + $0x8c] sm:$0x1]  ;;  %v8158_v22 = vrot.slane %v3664_v6, 5  ;;  %v8175_v35 = vsel %vm7424_vm7, %v1482_v29, %v1483_v50  ;;  %v8177_v6 = vrot.slane %v3688_v41, 5 }
  0xef   : > { %6167 = vmatprep.mubr.msk.bf16.mxu1 %vm867_vm3, %v5478_v30  ;;  %6319 = vmatprep.mubr.msk.bf16.mxu0 %vm867_vm3, %v5634_v26  ;;  %v5466_v26 = vrot.slane %v288_v16, 9  ;;  %v1489_v30 = vrot.slane %v1487_v18, 4  ;;  %v1490_v17 = vrot.slane %v6922_v24, 5  ;;  %v3670_v14 = vrot.slane %v9193_v27, 4 }
  0xf0   : > { %v5653_v33 = vcombine.low %v3595_v49, %v3605_v1  ;;  %v1494_v16 = vrot.slane %v6923_v7, 5  ;;  %v3629_v24 = vsel %vm7185_vm4, %v3624_v21, %v3628_v45  ;;  %v9194_v49 = vshrl.u32 %v7775_v19, 16  ;;  %v8188_v45 = vld [vmem:[%s7163_s11 + $0x50] sm:$0x1] }
  0xf1   : > { %v3648_v15 = vrot.slane %v3647_v63, 4  ;;  %v3652_v48 = vrot.slane %v3650_v9, 5  ;;  %v8183_v1 = vsel %vm7424_vm7, %v5466_v26, %v1487_v18  ;;  %v3661_v7 = vor.u32 %v7825_v25, %v7819_v0  ;;  %v6924_v25 = vld [vmem:[%s7163_s11 + $0x98] sm:$0x1] }
  0xf2   : > { %v3694_v3 = vrot.slane %v9194_v49, 4  ;;  %v8192_v50 = vsel %vm7424_vm7, %v1489_v30, %v1490_v17  ;;  %v3671_v21 = vor.u32 %v3670_v14, %v8158_v22  ;;  %v3674_v19 = vshll.u32 %v8167_v34, 16 }
  0xf3   : > { %v5467_v29 = vrot.slane %v289_v56, 9  ;;  %v9195_v41 = vcombine.low %v8054_v37, %v8058_v54  ;;  %v9196_v18 = vcombine.low %v8061_v8, %v8073_v20  ;;  %v1496_v0 = vrot.slane %v1494_v16, 4 }
  0xf4   : > { %v1497_v63 = vrot.slane %v6924_v25, 5  ;;  %v3685_v9 = vor.u32 %v7833_v5, %v7831_v61  ;;  %v3712_v26 = vshll.u32 %v7806_v59, 16  ;;  %v9197_v30 = vcombine.low %v8065_v12, %v8077_v58 }
  0xf5   : > { %v5482_v37 = vcombine.low %v8164_v23, %v8175_v35  ;;  %v3695_v54 = vor.u32 %v3694_v3, %v8177_v6  ;;  %v3698_v17 = vshll.u32 %v8188_v45, 16  ;;  %v3736_v27 = vshll.u32 %v7822_v13, 16 }
  0xf6   : > { %6168 = vmatmul.mubr.msk.bf16.gmra.mrb[12].mxu1 %vm867_vm3, %v9195_v41  ;;  %6320 = vmatmul.mubr.msk.bf16.gmra.mrb[28].mxu0 %vm867_vm3, %v9196_v18  ;;  %v5654_v61 = vcombine.low %v3619_v60, %v3629_v24  ;;  %v3643_v5 = vsel %vm7185_vm4, %v3638_v53, %v8125_v51  ;;  %v3653_v12 = vsel %vm7185_vm4, %v3648_v15, %v3652_v48  ;;  %v3662_v58 = vrot.slane %v3661_v7, 4  ;;  %v290_v60 = vld [vmem:[%s7163_s11 + $0x9c] sm:$0xe]  ;;  %v8239_v48 = vld [vmem:[%s7163_s11 + $0x5c] sm:$0x1] }
  0xf7   : > { %6171 = vmatprep.mubr.msk.bf16.mxu1 %vm867_vm3, %v9197_v30  ;;  %6325 = vmatprep.mubr.msk.bf16.mxu0 %vm867_vm3, %v5653_v33  ;;  %v5483_v33 = vcombine.low %v8183_v1, %v8192_v50  ;;  %v3672_v23 = vrot.slane %v3671_v21, 4  ;;  %v3676_v14 = vrot.slane %v3674_v19, 5  ;;  %v8227_v56 = vsel %vm7424_vm7, %v5467_v29, %v1494_v16  ;;  %v6925_v18 = vld [vmem:[%s7163_s11 + $0xa0] sm:$0xf] }
  0xf8   : > { %v8232_v24 = vsel %vm7424_vm7, %v1496_v0, %v1497_v63  ;;  %v3686_v51 = vrot.slane %v3685_v9, 4  ;;  %v8234_v53 = vrot.slane %v3712_v26, 5  ;;  %v9198_v35 = vshrl.u32 %v7806_v59, 16  ;;  %v8250_v0 = vld [vmem:[%s7163_s11 + $0x68] sm:$0x1] }
  0xf9   : > { %v3696_v3 = vrot.slane %v3695_v54, 4  ;;  %v3700_v15 = vrot.slane %v3698_v17, 5  ;;  %v8241_v7 = vrot.slane %v3736_v27, 5  ;;  %v9199_v16 = vshrl.u32 %v7822_v13, 16  ;;  %v6926_v9 = vld [vmem:[%s7163_s11 + $0xac] sm:$0xf] }
  0xfa   : > { %v3718_v49 = vrot.slane %v9198_v35, 4  ;;  %v5655_v19 = vcombine.low %v3643_v5, %v3653_v12  ;;  %v3667_v29 = vsel %vm7185_vm4, %v3662_v58, %v8158_v22  ;;  %v5468_v41 = vrot.slane %v290_v60, 9  ;;  %v291_v27 = vld [vmem:[%s7163_s11 + $0xa8] sm:$0xe] }
  0xfb   : > { %v3742_v21 = vrot.slane %v9199_v16, 4  ;;  %v1501_v59 = vrot.slane %v6925_v18, 5  ;;  %v3677_v25 = vsel %vm7185_vm4, %v3672_v23, %v3676_v14  ;;  %v5484_v63 = vcombine.low %v8227_v56, %v8232_v24  ;;  %v6928_v23 = vld [vmem:[%s7163_s11 + $0xb0] sm:$0x1] }
  0xfc   : > { %v3709_v13 = vor.u32 %v7847_v4, %v7842_v46  ;;  %v1508_v26 = vrot.slane %v6926_v9, 5  ;;  %v9200_v30 = vcombine.low %v8107_v31, %v8113_v28  ;;  %v3691_v22 = vsel %vm7185_vm4, %v3686_v51, %v8177_v6 }
  0xfd   : > { %v3719_v54 = vor.u32 %v3718_v49, %v8234_v53  ;;  %v3722_v17 = vshll.u32 %v8239_v48, 16  ;;  %v3733_v46 = vor.u32 %v7864_v2, %v7855_v52  ;;  %v3701_v4 = vsel %vm7185_vm4, %v3696_v3, %v3700_v15  ;;  %v6927_v52 = vld [vmem:[%s7163_s11 + $0xa4] sm:$0x1]  ;;  %v8284_v3 = vld [vmem:[%s7163_s11 + $0x74] sm:$0x1] }
  0xfe   : > { %6172 = vmatmul.mubr.msk.bf16.gmra.mrb[16].mxu1 %vm867_vm3, %v9200_v30  ;;  %6326 = vmatmul.mubr.msk.bf16.vlgmr.msra.gmra.mrb[0].mxu0 %vm867_vm3, %v5654_v61  ;;  %v3743_v31 = vor.u32 %v3742_v21, %v8241_v7  ;;  %v3746_v28 = vshll.u32 %v8250_v0, 16  ;;  %v3760_v6 = vshll.u32 %v7845_v43, 16  ;;  %v5656_v61 = vcombine.low %v3667_v29, %v3677_v25 }
  0xff   : > { %6358 = vmatpush3.bf16.msra.mxu0 %v8131_v40  ;;  %6175 = vmatprep.mubr.msk.bf16.mxu1 %vm867_vm3, %v5482_v37  ;;  %v1503_v5 = vrot.slane %v1501_v59, 4  ;;  %v1504_v2 = vrot.slane %v6927_v52, 5  ;;  %v3784_v40 = vshll.u32 %v7858_v55, 16  ;;  %v3710_v12 = vrot.slane %v3709_v13, 4  ;;  %v6930_v52 = vld [vmem:[%s7163_s11 + $0xbc] sm:$0x1] }
 0x100   : > { %6329 = vmatprep.mubr.msk.bf16.mxu0 %vm867_vm3, %v5655_v19  ;;  %v5469_v37 = vrot.slane %v291_v27, 9  ;;  %v1510_v58 = vrot.slane %v1508_v26, 4  ;;  %v1511_v14 = vrot.slane %v6928_v23, 5  ;;  %v5657_v56 = vcombine.low %v3691_v22, %v3701_v4  ;;  %v6929_v22 = vld [vmem:[%s7163_s11 + $0xb8] sm:$0xf]  ;;  %v9204_v27 = vld [vmem:[#allocation9_spill] sm:$0xff] }
 0x101   : > { %v3720_v60 = vrot.slane %v3719_v54, 4  ;;  %v3724_v24 = vrot.slane %v3722_v17, 5  ;;  %v3734_v51 = vrot.slane %v3733_v46, 4  ;;  %v3744_v35 = vrot.slane %v3743_v31, 4 }
 0x102   : > { %v3748_v49 = vrot.slane %v3746_v28, 5  ;;  %v8286_v15 = vrot.slane %v3760_v6, 5  ;;  %v9201_v16 = vshrl.u32 %v7845_v43, 16  ;;  %v1502_v19 = vsel %vm7424_vm7, %v5468_v41, %v1501_v59  ;;  %v8307_v59 = vld [vmem:[%s7163_s11 + $0x80] sm:$0x1]  ;;  %v9206_v28 = vld [vmem:[#allocation8_spill] sm:$0xff] }
 0x103   : > { %v1505_v29 = vsel %vm7424_vm7, %v1503_v5, %v1504_v2  ;;  %v8294_v18 = vrot.slane %v3784_v40, 5  ;;  %v9202_v25 = vshrl.u32 %v7858_v55, 16  ;;  %v3715_v9 = vsel %vm7185_vm4, %v3710_v12, %v8234_v53 }
 0x104   : > { %v3766_v21 = vrot.slane %v9201_v16, 4  ;;  %v1509_v43 = vsel %vm7424_vm7, %v5469_v37, %v1508_v26  ;;  %v1512_v30 = vsel %vm7424_vm7, %v1510_v58, %v1511_v14  ;;  %v1515_v41 = vrot.slane %v6929_v22, 5  ;;  %v292_v26 = vld [vmem:[%s7163_s11 + $0xb4] sm:$0xe]  ;;  %v9209_v22 = vld [vmem:[#allocation10_spill] sm:$0xff] }
 0x105   : > { %v3790_v13 = vrot.slane %v9202_v25, 4  ;;  %v3725_v55 = vsel %vm7185_vm4, %v3720_v60, %v3724_v24  ;;  %v3739_v53 = vsel %vm7185_vm4, %v3734_v51, %v8241_v7  ;;  %v3757_v54 = vor.u32 %v7881_v36, %v7869_v44  ;;  %v9205_v7 = vld [vmem:[#allocation6_spill] sm:$0xff] }
 0x106   : > { %6176 = vmatmul.mubr.msk.bf16.gmra.mrb[20].mxu1 %vm867_vm3, %v5483_v33  ;;  %6330 = vmatmul.mubr.msk.bf16.gmra.mrb[4].mxu0 %vm867_vm3, %v5656_v61  ;;  %v3770_v17 = vshll.u32 %v8284_v3, 16  ;;  %v3749_v1 = vsel %vm7185_vm4, %v3744_v35, %v3748_v49  ;;  %v3767_v50 = vor.u32 %v3766_v21, %v8286_v15  ;;  %v9203_v33 = vld [vmem:[#allocation7_spill] sm:$0xff]  ;;  %v3808_v4 = vshll.u32 %v9205_v7, 16 }
 0x107   : > { %6179 = vmatprep.mubr.msk.bf16.mxu1 %vm867_vm3, %v5484_v63  ;;  %6333 = vmatprep.mubr.msk.bf16.mxu0 %vm867_vm3, %v5657_v56  ;;  %v3781_v46 = vor.u32 %v9204_v27, %v9203_v33  ;;  %v5485_v31 = vcombine.low %v1502_v19, %v1505_v29  ;;  %v3791_v44 = vor.u32 %v3790_v13, %v8294_v18  ;;  %v3794_v36 = vshll.u32 %v8307_v59, 16  ;;  %v8336_v56 = vld [vmem:[%s7163_s11 + $0x8c] sm:$0x1] }
 0x108   : > { %v3832_v63 = vshll.u32 %v9206_v28, 16  ;;  %v5486_v6 = vcombine.low %v1509_v43, %v1512_v30  ;;  %v5470_v61 = vrot.slane %v292_v26, 9  ;;  %v1517_v5 = vrot.slane %v1515_v41, 4  ;;  %v8353_v43 = vld [vmem:[%s7163_s11 + $0x98] sm:$0x1]  ;;  %v9212_v26 = vld [vmem:[#allocation13_spill] sm:$0xff] }
 0x109   : > { %v1518_v2 = vrot.slane %v6930_v52, 5  ;;  %v5658_v40 = vcombine.low %v3715_v9, %v3725_v55  ;;  %v5659_v12 = vcombine.low %v3739_v53, %v3749_v1  ;;  %v3758_v37 = vrot.slane %v3757_v54, 4  ;;  %v9210_v55 = vld [vmem:[#allocation11_spill] sm:$0xff] }
 0x10a   : > { %v3772_v58 = vrot.slane %v3770_v17, 5  ;;  %v3768_v23 = vrot.slane %v3767_v50, 4  ;;  %v3782_v14 = vrot.slane %v3781_v46, 4  ;;  %v8338_v60 = vrot.slane %v3808_v4, 5 }
 0x10b   : > { %v9207_v24 = vshrl.u32 %v9205_v7, 16  ;;  %v3792_v35 = vrot.slane %v3791_v44, 4  ;;  %v3796_v49 = vrot.slane %v3794_v36, 5  ;;  %v8342_v16 = vrot.slane %v3832_v63, 5  ;;  %v6932_v36 = vld [vmem:[%s7163_s11 + $0x10] sm:$0xf] }
 0x10c   : > { %v9208_v21 = vshrl.u32 %v9206_v28, 16  ;;  %v3895_v29 = vshrl.u32 %v7992_v42, 16  ;;  %v3898_v25 = vshll.u32 %v7992_v42, 16  ;;  %v1516_v13 = vsel %vm7424_vm7, %v5470_v61, %v1515_v41  ;;  %v9211_v41 = vld [vmem:[#allocation12_spill] sm:$0xff] }
 0x10d   : > { %v3814_v51 = vrot.slane %v9207_v24, 4  ;;  %v1519_v9 = vsel %vm7424_vm7, %v1517_v5, %v1518_v2  ;;  %v3763_v30 = vsel %vm7185_vm4, %v3758_v37, %v8286_v15  ;;  %v3805_v53 = vor.u32 %v9210_v55, %v9209_v22  ;;  %v9218_v22 = vld [vmem:[#allocation17_spill] sm:$0xff] }
 0x10e   : > { %v3838_v19 = vrot.slane %v9208_v21, 4  ;;  %6180 = vmatmul.mubr.msk.bf16.gmra.mrb[24].mxu1 %vm867_vm3, %v5485_v31  ;;  %6334 = vmatmul.mubr.msk.bf16.gmra.mrb[8].mxu0 %vm867_vm3, %v5658_v40  ;;  %v3818_v42 = vshll.u32 %v8336_v56, 16  ;;  %v3829_v54 = vor.u32 %v9212_v26, %v9211_v41  ;;  %v3773_v17 = vsel %vm7185_vm4, %v3768_v23, %v3772_v58  ;;  %v8385_v40 = vld [vmem:[%s7163_s11 + $0xa4] sm:$0x1] }
 0x10f   : > { %6183 = vmatprep.mubr.msk.bf16.mxu1 %vm867_vm3, %v5486_v6  ;;  %6337 = vmatprep.mubr.msk.bf16.mxu0 %vm867_vm3, %v5659_v12  ;;  %v3787_v15 = vsel %vm7185_vm4, %v3782_v14, %v8294_v18  ;;  %v3815_v1 = vor.u32 %v3814_v51, %v8338_v60  ;;  %v3856_v50 = vshll.u32 %v7931_v10, 16  ;;  %v3797_v33 = vsel %vm7185_vm4, %v3792_v35, %v3796_v49  ;;  %v6931_v18 = vld [vmem:[%s7163_s11 + $0xc] sm:$0xf] }
 0x110   : > { %v3839_v27 = vor.u32 %v3838_v19, %v8342_v16  ;;  %v3842_v46 = vshll.u32 %v8353_v43, 16  ;;  %v3880_v7 = vshll.u32 %v7970_v62, 16  ;;  %v8379_v4 = vrot.slane %v3895_v29, 4 }
 0x111   : > { %v3908_v31 = vshrl.u32 %v8012_v57, 16  ;;  %v5487_v44 = vcombine.low %v1516_v13, %v1519_v9  ;;  %v5505_v28 = vcombine.low %v6931_v18, %v6932_v36  ;;  %v5660_v63 = vcombine.low %v3763_v30, %v3773_v17  ;;  %v8401_v13 = vld [vmem:[%s7163_s11 + $0xb0] sm:$0x1]  ;;  %v9216_v9 = vld [vmem:[#allocation15_spill] sm:$0xff] }
 0x112   : > { %v3806_v6 = vrot.slane %v3805_v53, 4  ;;  %v3820_v61 = vrot.slane %v3818_v42, 5  ;;  %v3830_v5 = vrot.slane %v3829_v54, 4  ;;  %v5661_v52 = vcombine.low %v3787_v15, %v3797_v33  ;;  %v6933_v33 = vld [vmem:[%s7163_s11 + $0x18] sm:$0xf] }
 0x113   : > { %v3816_v2 = vrot.slane %v3815_v1, 4  ;;  %v8387_v12 = vrot.slane %v3856_v50, 5  ;;  %v9213_v37 = vshrl.u32 %v7931_v10, 16  ;;  %v3840_v23 = vrot.slane %v3839_v27, 4  ;;  %v6934_v27 = vld [vmem:[%s7163_s11 + $0x1c] sm:$0xf] }
 0x114   : > { %v3844_v14 = vrot.slane %v3842_v46, 5  ;;  %v8391_v24 = vrot.slane %v3880_v7, 5  ;;  %v9214_v51 = vshrl.u32 %v7970_v62, 16  ;;  %v8395_v49 = vrot.slane %v3898_v25, 5  ;;  %v9215_v62 = vld [vmem:[#allocation14_spill] sm:$0xff] }
 0x115   : > { %v3862_v58 = vrot.slane %v9213_v37, 4  ;;  %v3919_v21 = vshrl.u32 %v8047_v38, 16  ;;  %v3922_v19 = vshll.u32 %v8047_v38, 16  ;;  %v3932_v29 = vshrl.u32 %v8050_v39, 16  ;;  %v9217_v38 = vld [vmem:[#allocation16_spill] sm:$0xff] }
 0x116   : > { %v3886_v35 = vrot.slane %v9214_v51, 4  ;;  %6184 = vmatmul.mubr.msk.bf16.gmra.mrb[28].mxu1 %vm867_vm3, %v5487_v44  ;;  %6338 = vmatmul.mubr.msk.bf16.gmra.mrb[12].mxu0 %vm867_vm3, %v5660_v63  ;;  %v3811_v10 = vsel %vm7185_vm4, %v3806_v6, %v8338_v60  ;;  %v3853_v25 = vor.u32 %v9216_v9, %v9215_v62  ;;  %v3866_v30 = vshll.u32 %v8385_v40, 16  ;;  %v6936_v7 = vld [vmem:[%s7163_s11 + $0x28] sm:$0xf] }
 0x117   : > { %v3877_v55 = vor.u32 %v9218_v22, %v9217_v38  ;;  %6189 = vmatprep.mubr.msk.bf16.mxu1 %vm867_vm3, %v5505_v28  ;;  %6341 = vmatprep.mubr.msk.bf16.mxu0 %vm867_vm3, %v5661_v52  ;;  %v3821_v53 = vsel %vm7185_vm4, %v3816_v2, %v3820_v61  ;;  %v3835_v60 = vsel %vm7185_vm4, %v3830_v5, %v8342_v16  ;;  %v3904_v41 = vshll.u32 %v8012_v57, 16  ;;  %v6935_v16 = vld [vmem:[%s7163_s11 + $0x24] sm:$0xf]  ;;  %v8432_v61 = vld [vmem:[%s7163_s11 + $0xbc] sm:$0x1] }
 0x118   : > { %v3863_v42 = vor.u32 %v3862_v58, %v8387_v12  ;;  %v3845_v26 = vsel %vm7185_vm4, %v3840_v23, %v3844_v14  ;;  %v3887_v54 = vor.u32 %v3886_v35, %v8391_v24  ;;  %v3890_v17 = vshll.u32 %v8401_v13, 16  ;;  %v8441_v51 = vld [vmem:[%s7163_s11 + $0xc8] sm:$0x1]  ;;  %v6937_v22 = vld [vmem:[%s7163_s11 + $0x30] sm:$0xf] }
 0x119   : > { %v3928_v15 = vshll.u32 %v8050_v39, 16  ;;  %v3921_v1 = vrot.slane %v3919_v21, 4  ;;  %v3924_v50 = vrot.slane %v3922_v19, 5  ;;  %v5506_v46 = vcombine.low %v6933_v33, %v6934_v27 }
 0x11a   : > { %v5507_v44 = vcombine.low %v6935_v16, %v6936_v7  ;;  %v5662_v57 = vcombine.low %v3811_v10, %v3821_v53  ;;  %v3854_v18 = vrot.slane %v3853_v25, 4  ;;  %v3868_v36 = vrot.slane %v3866_v30, 5  ;;  %v8476_v16 = vld [vmem:[%s7163_s11 + $0x7c] sm:$0xf] }
 0x11b   : > { %v3878_v28 = vrot.slane %v3877_v55, 4  ;;  %v5663_v63 = vcombine.low %v3835_v60, %v3845_v26  ;;  %v3864_v6 = vrot.slane %v3863_v42, 4  ;;  %v8434_v5 = vrot.slane %v3904_v41, 5  ;;  %v6938_v55 = vld [vmem:[%s7163_s11 + $0x34] sm:$0xf] }
 0x11c   : > { %v3910_v39 = vrot.slane %v3908_v31, 4  ;;  %v3888_v52 = vrot.slane %v3887_v54, 4  ;;  %v3892_v2 = vrot.slane %v3890_v17, 5  ;;  %v8436_v37 = vrot.slane %v3928_v15, 5  ;;  %v6939_v60 = vld [vmem:[%s7163_s11 + $0x3c] sm:$0xf] }
 0x11d   : > { %v3934_v58 = vrot.slane %v3932_v29, 4  ;;  %v3943_v23 = vshrl.u32 %v8061_v8, 16  ;;  %v3946_v14 = vshll.u32 %v8061_v8, 16  ;;  %v3956_v35 = vshrl.u32 %v8073_v20, 16  ;;  %v9219_v8 = vld [vmem:[#allocation5_spill] sm:$0xff] }
 0x11e   : > { %6190 = vmatmul.mubr.msk.bf16.vlgmr.msra.gmra.mrb[0].mxu1 %vm867_vm3, %v5506_v46  ;;  %6342 = vmatmul.mubr.msk.bf16.gmra.mrb[16].mxu0 %vm867_vm3, %v5662_v57  ;;  %v3859_v31 = vsel %vm7185_vm4, %v3854_v18, %v8387_v12  ;;  %v3901_v21 = vor.u32 %v8395_v49, %v8379_v4  ;;  %v3914_v19 = vshll.u32 %v8432_v61, 16  ;;  %v3869_v29 = vsel %vm7185_vm4, %v3864_v6, %v3868_v36  ;;  %v8473_v46 = vld [vmem:[%s7163_s11 + $0xd4] sm:$0x1] }
 0x11f   : > { %6392 = vmatpush3.bf16.msra.mxu1 %v9219_v8  ;;  %6193 = vmatprep.mubr.msk.bf16.mxu1 %vm867_vm3, %v5507_v44  ;;  %v3883_v12 = vsel %vm7185_vm4, %v3878_v28, %v8391_v24  ;;  %v3911_v10 = vor.u32 %v3910_v39, %v8434_v5  ;;  %v3952_v4 = vshll.u32 %v8073_v20, 16  ;;  %v3893_v49 = vsel %vm7185_vm4, %v3888_v52, %v3892_v2  ;;  %v6940_v20 = vld [vmem:[%s7163_s11 + $0x40] sm:$0xf]  ;;  %v6942_v39 = vld [vmem:[%s7163_s11 + $0x1c] sm:$0xf] }
 0x120   : > { %6345 = vmatprep.mubr.msk.bf16.mxu0 %vm867_vm3, %v5663_v63  ;;  %v3925_v62 = vor.u32 %v3924_v50, %v3921_v1  ;;  %v3935_v9 = vor.u32 %v3934_v58, %v8436_v37  ;;  %v3938_v25 = vshll.u32 %v8441_v51, 16  ;;  %v3945_v30 = vrot.slane %v3943_v23, 4  ;;  %v6943_v58 = vld [vmem:[%s7163_s11 + $0x80] sm:$0x1] }
 0x121   : > { %v3948_v38 = vrot.slane %v3946_v14, 5  ;;  %v5508_v24 = vcombine.low %v6937_v22, %v6938_v55  ;;  %v5664_v53 = vcombine.low %v3859_v31, %v3869_v29  ;;  %v5509_v42 = vcombine.low %v6939_v60, %v6940_v20  ;;  %v6944_v14 = vld [vmem:[%s7163_s11 + $0x48] sm:$0xf]  ;;  %v6946_v29 = vld [vmem:[%s7163_s11 + $0x54] sm:$0xf] }
 0x122   : > { %v3902_v41 = vrot.slane %v3901_v21, 4  ;;  %v3916_v26 = vrot.slane %v3914_v19, 5  ;;  %v5665_v54 = vcombine.low %v3883_v12, %v3893_v49  ;;  %v3912_v17 = vrot.slane %v3911_v10, 4  ;;  %v5374_v21 = vld [vmem:[%s7163_s11 + $0x18] sm:$0xe] }
 0x123   : > { %v8470_v15 = vrot.slane %v3952_v4, 5  ;;  %v3958_v1 = vrot.slane %v3956_v35, 4  ;;  %v3926_v50 = vrot.slane %v3925_v62, 4  ;;  %v3936_v33 = vrot.slane %v3935_v9, 4  ;;  %v6945_v35 = vld [vmem:[%s7163_s11 + $0x4c] sm:$0xf] }
 0x124   : > { %v3940_v27 = vrot.slane %v3938_v25, 5  ;;  %v2366_v7 = vshll.u32 %v8476_v16, 16  ;;  %v3907_v44 = vsel %vm7185_vm4, %v3902_v41, %v8434_v5  ;;  %v3917_v57 = vsel %vm7185_vm4, %v3912_v17, %v3916_v26  ;;  %v8504_v19 = vld [vmem:[%s7163_s11 + $0x78] sm:$0xf]  ;;  %v5375_v60 = vld [vmem:[%s7163_s11 + $0x24] sm:$0xe] }
 0x125   : > { %v3949_v18 = vor.u32 %v3948_v38, %v3945_v30  ;;  %v3959_v36 = vor.u32 %v3958_v1, %v8470_v15  ;;  %v3962_v28 = vshll.u32 %v8473_v46, 16  ;;  %v2370_v63 = vshrl.u32 %v8476_v16, 16  ;;  %v6948_v20 = vld [vmem:[%s7163_s11 + $0x28] sm:$0xf]  ;;  %v6950_v1 = vld [vmem:[%s7163_s11 + $0x64] sm:$0xf] }
 0x126   : > { %6194 = vmatmul.mubr.msk.bf16.gmra.mrb[4].mxu1 %vm867_vm3, %v5508_v24  ;;  %6346 = vmatmul.mubr.msk.bf16.gmra.mrb[20].mxu0 %vm867_vm3, %v5664_v53  ;;  %v3931_v6 = vsel %vm7185_vm4, %v3926_v50, %v8436_v37  ;;  %v3941_v5 = vsel %vm7185_vm4, %v3936_v33, %v3940_v27  ;;  %v4294_v52 = vrot.slane %v6942_v39, 5  ;;  %v8497_v2 = vrot.slane %v2366_v7, 5  ;;  %v6947_v37 = vld [vmem:[%s7163_s11 + $0x58] sm:$0xf]  ;;  %v5278_v53 = vld [vmem:[%s7163_s11 + $0x6c] sm:$0xf] }
 0x127   : > { %6197 = vmatprep.mubr.msk.bf16.mxu1 %vm867_vm3, %v5509_v42  ;;  %6349 = vmatprep.mubr.msk.bf16.mxu0 %vm867_vm3, %v5665_v54  ;;  %v2376_v23 = vshll.u32 %v6943_v58, 16  ;;  %v5510_v31 = vcombine.low %v6944_v14, %v6945_v35  ;;  %v5666_v8 = vcombine.low %v3907_v44, %v3917_v57  ;;  %v5511_v12 = vcombine.low %v6946_v29, %v6947_v37  ;;  %v6951_v7 = vld [vmem:[%s7163_s11 + $0x34] sm:$0xf]  ;;  %v8531_v57 = vld [vmem:[%s7163_s11 + $0x70] sm:$0xf]  ;;  %v9220_v39 = vld [vmem:[#allocation18_spill] sm:$0xff] }
 0x128   : > { %v2357_v10 = vshrl.u32 %v8504_v19, 16  ;;  %v2360_v4 = vshll.u32 %v8504_v19, 16  ;;  %v5667_v49 = vcombine.low %v3931_v6, %v3941_v5  ;;  %v3950_v62 = vrot.slane %v3949_v18, 4  ;;  %v8539_v6 = vld [vmem:[%s7163_s11 + $0x84] sm:$0xf] }
 0x129   : > { %v3960_v9 = vrot.slane %v3959_v36, 4  ;;  %v3964_v25 = vrot.slane %v3962_v28, 5  ;;  %v8510_v30 = vrot.slane %v2370_v63, 4  ;;  %v5685_v38 = vrot.slane %v5374_v21, 9 }
 0x12a   : > { %v4296_v22 = vrot.slane %v4294_v52, 4  ;;  %v4297_v55 = vrot.slane %v8027_v47, 5  ;;  %v8513_v24 = vrot.slane %v2376_v23, 5  ;;  %v4301_v42 = vrot.slane %v6948_v20, 5  ;;  %v6949_v47 = vld [vmem:[%s7163_s11 + $0x60] sm:$0xf] }
 0x12b   : > { %v2333_v41 = vshrl.u32 %v5278_v53, 16  ;;  %v2336_v26 = vshll.u32 %v5278_v53, 16  ;;  %v2359_v54 = vrot.slane %v2357_v10, 4  ;;  %v2362_v17 = vrot.slane %v2360_v4, 5  ;;  %v8551_v4 = vld [vmem:[%s7163_s11 + $0x90] sm:$0xf] }
 0x12c   : > { %v5512_v50 = vcombine.low %v6949_v47, %v6950_v1  ;;  %v3955_v33 = vsel %vm7185_vm4, %v3950_v62, %v8470_v15  ;;  %v3965_v27 = vsel %vm7185_vm4, %v3960_v9, %v3964_v25  ;;  %v4308_v44 = vrot.slane %v6951_v7, 5  ;;  %v5376_v15 = vld [vmem:[%s7163_s11 + $0x30] sm:$0xe]  ;;  %v8558_v9 = vld [vmem:[%s7163_s11 + $0x88] sm:$0xf] }
 0x12d   : > { %v5513_v18 = vcombine.low %v5278_v53, %v8531_v57  ;;  %v4295_v36 = vsel %vm7424_vm7, %v5685_v38, %v4294_v52  ;;  %v4298_v28 = vsel %vm7424_vm7, %v4296_v22, %v4297_v55  ;;  %v5686_v63 = vrot.slane %v5375_v60, 9  ;;  %v5377_v38 = vld [vmem:[%s7163_s11 + $0x3c] sm:$0xe]  ;;  %v6954_v22 = vld [vmem:[%s7163_s11 + $0x40] sm:$0xf] }
 0x12e   : > { %6198 = vmatmul.mubr.msk.bf16.gmra.mrb[8].mxu1 %vm867_vm3, %v5510_v31  ;;  %6350 = vmatmul.mubr.msk.bf16.gmra.mrb[24].mxu0 %vm867_vm3, %v5666_v8  ;;  %v4303_v5 = vrot.slane %v4301_v42, 4  ;;  %v4304_v58 = vrot.slane %v9220_v39, 5  ;;  %v2381_v23 = vshrl.u32 %v8539_v6, 16  ;;  %v2384_v14 = vshll.u32 %v8539_v6, 16  ;;  %v5378_v1 = vld [vmem:[%s7163_s11 + $0x48] sm:$0xe] }
 0x12f   : > { %6201 = vmatprep.mubr.msk.bf16.mxu1 %vm867_vm3, %v5511_v12  ;;  %6353 = vmatprep.mubr.msk.bf16.mxu0 %vm867_vm3, %v5667_v49  ;;  %v5668_v35 = vcombine.low %v3955_v33, %v3965_v27  ;;  %v8545_v52 = vrot.slane %v2333_v41, 4  ;;  %v8547_v31 = vrot.slane %v2336_v26, 5  ;;  %v2363_v21 = vor.u32 %v2362_v17, %v2359_v54  ;;  %v9221_v12 = vld [vmem:[#allocation19_spill] sm:$0xff]  ;;  %v8579_v26 = vld [vmem:[%s7163_s11 + $0x94] sm:$0xf] }
 0x130   : > { %v5702_v8 = vcombine.low %v4295_v36, %v4298_v28  ;;  %v5687_v29 = vrot.slane %v5376_v15, 9  ;;  %v4310_v37 = vrot.slane %v4308_v44, 4  ;;  %v4311_v10 = vrot.slane %v9221_v12, 5  ;;  %v8599_v15 = vld [vmem:[%s7163_s11 + $0xa0] sm:$0xf] }
 0x131   : > { %v5514_v49 = vcombine.low %v8504_v19, %v8476_v16  ;;  %v4302_v62 = vsel %vm7424_vm7, %v5686_v63, %v4301_v42  ;;  %v5515_v25 = vcombine.low %v8539_v6, %v8558_v9  ;;  %v4315_v55 = vrot.slane %v6954_v22, 5  ;;  %v8571_v16 = vld [vmem:[%s7163_s11 + $0x9c] sm:$0xf]  ;;  %v6955_v19 = vld [vmem:[%s7163_s11 + $0x4c] sm:$0xf] }
 0x132   : > { %v4305_v53 = vsel %vm7424_vm7, %v4303_v5, %v4304_v58  ;;  %v8566_v60 = vrot.slane %v2381_v23, 4  ;;  %v8568_v20 = vrot.slane %v2384_v14, 5  ;;  %v4322_v42 = vrot.slane %v6955_v19, 5  ;;  %v5379_v23 = vld [vmem:[%s7163_s11 + $0x54] sm:$0xe] }
 0x133   : > { %v8576_v41 = vrot.slane %v2363_v21, 4  ;;  %v5516_v54 = vcombine.low %v8551_v4, %v8579_v26  ;;  %v2405_v17 = vshrl.u32 %v8551_v4, 16  ;;  %v2408_v47 = vshll.u32 %v8551_v4, 16  ;;  %v6958_v21 = vld [vmem:[%s7163_s11 + $0x58] sm:$0xf] }
 0x134   : > { %v4312_v33 = vsel %vm7424_vm7, %v4310_v37, %v4311_v10  ;;  %v5688_v27 = vrot.slane %v5377_v38, 9  ;;  %v2429_v7 = vshrl.u32 %v8571_v16, 16  ;;  %v5703_v36 = vcombine.low %v4302_v62, %v4305_v53  ;;  %v8621_v38 = vld [vmem:[%s7163_s11 + $0xac] sm:$0xf]  ;;  %v8626_v19 = vld [vmem:[%s7163_s11 + $0xb4] sm:$0xf] }
 0x135   : > { %v4317_v28 = vrot.slane %v4315_v55, 4  ;;  %v4318_v63 = vrot.slane %v8167_v34, 5  ;;  %v2432_v6 = vshll.u32 %v8571_v16, 16  ;;  %v5689_v5 = vrot.slane %v5378_v1, 9  ;;  %v5380_v1 = vld [vmem:[%s7163_s11 + $0x60] sm:$0xe] }
 0x136   : > { %6202 = vmatmul.mubr.msk.bf16.gmra.mrb[12].mxu1 %vm867_vm3, %v5512_v50  ;;  %6354 = vmatmul.mubr.msk.bf16.gmra.mrb[28].mxu0 %vm867_vm3, %v5668_v35  ;;  %v4309_v50 = vsel %vm7424_vm7, %v5687_v29, %v4308_v44  ;;  %v5517_v44 = vcombine.low %v8571_v16, %v8599_v15  ;;  %v4324_v39 = vrot.slane %v4322_v42, 4  ;;  %v4325_v58 = vrot.slane %v8188_v45, 5  ;;  %v6965_v22 = vld [vmem:[%s7163_s11 + $0x7c] sm:$0xf] }
 0x137   : > { %6205 = vmatprep.mubr.msk.bf16.mxu1 %vm867_vm3, %v5513_v18  ;;  %6359 = vmatprep.mubr.msk.bf16.mxu0 %vm867_vm3, %v5702_v8  ;;  %v8596_v18 = vld [vmem:[%s7163_s11 + $0xa8] sm:$0xf]  ;;  %v5704_v14 = vcombine.low %v4309_v50, %v4312_v33  ;;  %v8605_v35 = vrot.slane %v2405_v17, 4  ;;  %v8607_v34 = vrot.slane %v2408_v47, 5  ;;  %v4329_v8 = vrot.slane %v6958_v21, 5 }
 0x138   : > { %v4316_v29 = vsel %vm7424_vm7, %v5688_v27, %v4315_v55  ;;  %v8612_v37 = vrot.slane %v2429_v7, 4  ;;  %v2453_v12 = vshrl.u32 %v8596_v18, 16  ;;  %v2456_v45 = vshll.u32 %v8596_v18, 16  ;;  %v6960_v50 = vld [vmem:[%s7163_s11 + $0x64] sm:$0xf] }
 0x139   : > { %v4319_v10 = vsel %vm7424_vm7, %v4317_v28, %v4318_v63  ;;  %v8618_v62 = vrot.slane %v2432_v6, 5  ;;  %v5690_v53 = vrot.slane %v5379_v23, 9  ;;  %v4323_v55 = vsel %vm7424_vm7, %v5689_v5, %v4322_v42  ;;  %v6962_v23 = vld [vmem:[%s7163_s11 + $0x70] sm:$0xf] }
 0x13a   : > { %v4326_v17 = vsel %vm7424_vm7, %v4324_v39, %v4325_v58  ;;  %v2477_v47 = vshrl.u32 %v8626_v19, 16  ;;  %v4336_v33 = vrot.slane %v6960_v50, 5  ;;  %v4331_v27 = vrot.slane %v4329_v8, 4  ;;  %v8648_v39 = vld [vmem:[%s7163_s11 + $0xb8] sm:$0xf] }
 0x13b   : > { %v4332_v7 = vrot.slane %v8239_v48, 5  ;;  %v2342_v42 = vshll.u32 %v8531_v57, 16  ;;  %v2346_v28 = vshrl.u32 %v8531_v57, 16  ;;  %v5705_v63 = vcombine.low %v4316_v29, %v4319_v10  ;;  %v8653_v57 = vld [vmem:[%s7163_s11 + $0xc0] sm:$0xf] }
 0x13c   : > { %v8642_v6 = vrot.slane %v2453_v12, 4  ;;  %v5706_v5 = vcombine.low %v4323_v55, %v4326_v17  ;;  %v5691_v58 = vrot.slane %v5380_v1, 9  ;;  %v8659_v21 = vsel %vm7424_vm7, %v5690_v53, %v4329_v8  ;;  %v8672_v8 = vld [vmem:[%s7163_s11 + $0xc4] sm:$0xf]  ;;  %v5382_v53 = vld [vmem:[%s7163_s11 + $0x78] sm:$0xe] }
 0x13d   : > { %v8661_v29 = vrot.slane %v2477_v47, 4  ;;  %v4338_v12 = vrot.slane %v4336_v33, 4  ;;  %v4333_v10 = vsel %vm7424_vm7, %v4331_v27, %v4332_v7  ;;  %v2501_v55 = vshrl.u32 %v8653_v57, 16 }
 0x13e   : > { %6206 = vmatmul.mubr.msk.bf16.gmra.mrb[16].mxu1 %vm867_vm3, %v5514_v49  ;;  %6360 = vmatmul.mubr.msk.bf16.vlgmr.msra.gmra.mrb[0].mxu0 %vm867_vm3, %v5703_v36  ;;  %v8644_v49 = vrot.slane %v2456_v45, 5  ;;  %v2480_v36 = vshll.u32 %v8626_v19, 16  ;;  %v4339_v45 = vrot.slane %v8250_v0, 5  ;;  %v8667_v17 = vrot.slane %v2342_v42, 5 }
 0x13f   : > { %6209 = vmatprep.mubr.msk.bf16.mxu1 %vm867_vm3, %v5515_v25  ;;  %6363 = vmatprep.mubr.msk.bf16.mxu0 %vm867_vm3, %v5704_v14  ;;  %v5381_v25 = vld [vmem:[%s7163_s11 + $0x6c] sm:$0xe]  ;;  %v4343_v14 = vrot.slane %v6962_v23, 5  ;;  %v2348_v1 = vrot.slane %v2346_v28, 4  ;;  %v2339_v0 = vor.u32 %v8547_v31, %v8545_v52  ;;  %v4337_v27 = vsel %vm7424_vm7, %v5691_v58, %v4336_v33  ;;  %v6964_v28 = vld [vmem:[%s7163_s11 + $0x74] sm:$0x1] }
 0x140   : > { %v8669_v50 = vrot.slane %v2480_v36, 5  ;;  %v5692_v47 = vrot.slane %v5381_v25, 9  ;;  %v4346_v42 = vrot.slane %v8284_v3, 5  ;;  %v2352_v36 = vshll.u32 %v6964_v28, 16  ;;  %v5383_v58 = vld [vmem:[%s7163_s11 + $0x84] sm:$0xe] }
 0x141   : > { %v4345_v7 = vrot.slane %v4343_v14, 4  ;;  %v5707_v23 = vcombine.low %v8659_v21, %v4333_v10  ;;  %v4340_v48 = vsel %vm7424_vm7, %v4338_v12, %v4339_v45  ;;  %v2504_v25 = vshll.u32 %v8653_v57, 16  ;;  %v6966_v21 = vld [vmem:[%s7163_s11 + $0x88] sm:$0xf] }
 0x142   : > { %v4350_v52 = vrot.slane %v6965_v22, 5  ;;  %v8693_v3 = vrot.slane %v2501_v55, 4  ;;  %v2349_v31 = vor.u32 %v2348_v1, %v8667_v17  ;;  %v2373_v33 = vor.u32 %v8510_v30, %v8497_v2 }
 0x143   : > { %v4357_v12 = vrot.slane %v6966_v21, 5  ;;  %v8707_v4 = vsel %vm7424_vm7, %v5692_v47, %v4343_v14  ;;  %v2390_v22 = vshll.u32 %v8558_v9, 16  ;;  %v8713_v30 = vsel %vm7424_vm7, %v4345_v7, %v4346_v42  ;;  %v6968_v21 = vld [vmem:[%s7163_s11 + $0x94] sm:$0xf] }
 0x144   : > { %v2354_v45 = vrot.slane %v2352_v36, 5  ;;  %v5693_v10 = vrot.slane %v5382_v53, 9  ;;  %v4353_v16 = vrot.slane %v8307_v59, 5  ;;  %v5694_v55 = vrot.slane %v5383_v58, 9  ;;  %v5384_v58 = vld [vmem:[%s7163_s11 + $0x90] sm:$0xe] }
 0x145   : > { %v2418_v14 = vshrl.u32 %v8579_v26, 16  ;;  %v2350_v1 = vrot.slane %v2349_v31, 4  ;;  %v2374_v47 = vrot.slane %v2373_v33, 4  ;;  %v4360_v28 = vrot.slane %v8336_v56, 5 }
 0x146   : > { %6210 = vmatmul.mubr.msk.bf16.gmra.mrb[20].mxu1 %vm867_vm3, %v5516_v54  ;;  %6364 = vmatmul.mubr.msk.bf16.gmra.mrb[4].mxu0 %vm867_vm3, %v5705_v63  ;;  %v2340_v54 = vrot.slane %v2339_v0, 4  ;;  %v2394_v63 = vshrl.u32 %v8558_v9, 16  ;;  %v4359_v0 = vrot.slane %v4357_v12, 4  ;;  %v5708_v9 = vcombine.low %v4337_v27, %v4340_v48 }
 0x147   : > { %6213 = vmatprep.mubr.msk.bf16.mxu1 %vm867_vm3, %v5517_v44  ;;  %6367 = vmatprep.mubr.msk.bf16.mxu0 %vm867_vm3, %v5706_v5  ;;  %v4352_v44 = vrot.slane %v4350_v52, 4  ;;  %v2414_v5 = vshll.u32 %v8579_v26, 16  ;;  %v5709_v7 = vcombine.low %v8707_v4, %v8713_v30  ;;  %v8721_v42 = vrot.slane %v2390_v22, 5 }
 0x148   : > { %v2396_v53 = vrot.slane %v2394_v63, 4  ;;  %v2345_v59 = vsel %vm7185_vm4, %v2340_v54, %v8667_v17  ;;  %v4351_v26 = vsel %vm7424_vm7, %v5693_v10, %v4350_v52  ;;  %v2369_v56 = vsel %vm7185_vm4, %v8576_v41, %v8497_v2  ;;  %v6967_v41 = vld [vmem:[%s7163_s11 + $0x8c] sm:$0x1]  ;;  %v6969_v63 = vld [vmem:[%s7163_s11 + $0x98] sm:$0x1] }
 0x149   : > { %v2387_v48 = vor.u32 %v8568_v20, %v8566_v60  ;;  %v4354_v27 = vsel %vm7424_vm7, %v4352_v44, %v4353_v16  ;;  %v8738_v36 = vsel %vm7424_vm7, %v5694_v55, %v4357_v12  ;;  %v8740_v17 = vrot.slane %v2414_v5, 5  ;;  %v5385_v44 = vld [vmem:[%s7163_s11 + $0x9c] sm:$0xe]  ;;  %v6970_v55 = vld [vmem:[%s7163_s11 + $0xa0] sm:$0xf] }
 0x14a   : > { %v2420_v52 = vrot.slane %v2418_v14, 4  ;;  %v9222_v31 = vcombine.low %v8596_v18, %v8621_v38  ;;  %v2355_v2 = vsel %vm7185_vm4, %v2350_v1, %v2354_v45  ;;  %v2379_v60 = vsel %vm7185_vm4, %v2374_v47, %v8513_v24 }
 0x14b   : > { %v8754_v20 = vsel %vm7424_vm7, %v4359_v0, %v4360_v28  ;;  %v2400_v33 = vshll.u32 %v6967_v41, 16  ;;  %v9223_v18 = vcombine.low %v8626_v19, %v8648_v39  ;;  %v4364_v24 = vrot.slane %v6968_v21, 5 }
 0x14c   : > { %v2438_v12 = vshll.u32 %v8599_v15, 16  ;;  %v2442_v4 = vshrl.u32 %v8599_v15, 16  ;;  %v5710_v54 = vcombine.low %v4351_v26, %v4354_v27  ;;  %v2388_v22 = vrot.slane %v2387_v48, 4 }
 0x14d   : > { %v2411_v19 = vor.u32 %v8607_v34, %v8605_v35  ;;  %v2424_v30 = vshll.u32 %v6969_v63, 16  ;;  %v5546_v45 = vcombine.low %v2345_v59, %v2355_v2  ;;  %v8770_v10 = vcombine.low %v2369_v56, %v2379_v60 }
 0x14e   : > { %6214 = vmatmul.mubr.msk.bf16.gmra.mrb[24].mxu1 %vm867_vm3, %v9222_v31  ;;  %6368 = vmatmul.mubr.msk.bf16.gmra.mrb[8].mxu0 %vm867_vm3, %v5707_v23  ;;  %v2397_v23 = vor.u32 %v2396_v53, %v8721_v42  ;;  %v2421_v16 = vor.u32 %v2420_v52, %v8740_v17  ;;  %v4371_v5 = vrot.slane %v6970_v55, 5  ;;  %v5711_v14 = vcombine.low %v8738_v36, %v8754_v20  ;;  %v5386_v36 = vld [vmem:[%s7163_s11 + $0xa8] sm:$0xe]  ;;  %v6971_v31 = vld [vmem:[%s7163_s11 + $0xac] sm:$0xf] }
 0x14f   : > { %6217 = vmatprep.mubr.msk.bf16.mxu1 %vm867_vm3, %v9223_v18  ;;  %6371 = vmatprep.mubr.msk.bf16.mxu0 %vm867_vm3, %v5708_v9  ;;  %v2402_v15 = vrot.slane %v2400_v33, 5  ;;  %v5695_v1 = vrot.slane %v5384_v58, 9  ;;  %v4367_v47 = vrot.slane %v8353_v43, 5  ;;  %v4366_v35 = vrot.slane %v4364_v24, 4  ;;  %v6972_v20 = vld [vmem:[%s7163_s11 + $0xa4] sm:$0x1] }
 0x150   : > { %v2398_v0 = vrot.slane %v2397_v23, 4  ;;  %v8778_v34 = vrot.slane %v2438_v12, 5  ;;  %v2444_v28 = vrot.slane %v2442_v4, 4  ;;  %v2393_v9 = vsel %vm7185_vm4, %v2388_v22, %v8721_v42 }
 0x151   : > { %v2412_v53 = vrot.slane %v2411_v19, 4  ;;  %v2426_v59 = vrot.slane %v2424_v30, 5  ;;  %v5696_v26 = vrot.slane %v5385_v44, 9  ;;  %v2422_v56 = vrot.slane %v2421_v16, 4 }
 0x152   : > { %v4373_v48 = vrot.slane %v4371_v5, 4  ;;  %v4374_v27 = vrot.slane %v8385_v40, 5  ;;  %v2435_v43 = vor.u32 %v8618_v62, %v8612_v37  ;;  %v9224_v52 = vcombine.low %v8653_v57, %v8672_v8 }
 0x153   : > { %v4365_v42 = vsel %vm7424_vm7, %v5695_v1, %v4364_v24  ;;  %v4378_v2 = vrot.slane %v6971_v31, 5  ;;  %v2462_v60 = vshll.u32 %v8621_v38, 16  ;;  %v2466_v40 = vshrl.u32 %v8621_v38, 16 }
 0x154   : > { %v2403_v37 = vsel %vm7185_vm4, %v2398_v0, %v2402_v15  ;;  %v4368_v62 = vsel %vm7424_vm7, %v4366_v35, %v4367_v47  ;;  %v2448_v41 = vshll.u32 %v6972_v20, 16  ;;  %v2417_v33 = vsel %vm7185_vm4, %v2412_v53, %v8740_v17  ;;  %v6973_v15 = vld [vmem:[%s7163_s11 + $0xb0] sm:$0x1]  ;;  %v5387_v47 = vld [vmem:[%s7163_s11 + $0xb4] sm:$0xe] }
 0x155   : > { %v5697_v18 = vrot.slane %v5386_v36, 9  ;;  %v2486_v38 = vshll.u32 %v8648_v39, 16  ;;  %v2490_v23 = vshrl.u32 %v8648_v39, 16  ;;  %v2427_v58 = vsel %vm7185_vm4, %v2422_v56, %v2426_v59  ;;  %v6974_v0 = vld [vmem:[%s7163_s11 + $0xb8] sm:$0xf] }
 0x156   : > { %6218 = vmatmul.mubr.msk.bf16.gmra.mrb[28].mxu1 %vm867_vm3, %v9224_v52  ;;  %6372 = vmatmul.mubr.msk.bf16.gmra.mrb[12].mxu0 %vm867_vm3, %v5709_v7  ;;  %v2445_v7 = vor.u32 %v2444_v28, %v8778_v34  ;;  %v4372_v21 = vsel %vm7424_vm7, %v5696_v26, %v4371_v5  ;;  %v4375_v24 = vsel %vm7424_vm7, %v4373_v48, %v4374_v27  ;;  %v2436_v12 = vrot.slane %v2435_v43, 4  ;;  %v6976_v48 = vld [vmem:[%s7163_s11 + $0xbc] sm:$0x1] }
 0x157   : > { %6239 = vmatprep.mubr.msk.bf16.mxu1 %vm867_vm3, %v5546_v45  ;;  %6375 = vmatprep.mubr.msk.bf16.mxu0 %vm867_vm3, %v5710_v54  ;;  %v4380_v4 = vrot.slane %v4378_v2, 4  ;;  %v4381_v17 = vrot.slane %v8401_v13, 5  ;;  %v8817_v54 = vrot.slane %v2462_v60, 5  ;;  %v2468_v22 = vrot.slane %v2466_v40, 4 }
 0x158   : > { %v5548_v39 = vcombine.low %v2393_v9, %v2403_v37  ;;  %v5712_v19 = vcombine.low %v4365_v42, %v4368_v62  ;;  %v2446_v63 = vrot.slane %v2445_v7, 4  ;;  %v2450_v30 = vrot.slane %v2448_v41, 5 }
 0x159   : > { %v5713_v45 = vcombine.low %v4372_v21, %v4375_v24  ;;  %v4379_v16 = vsel %vm7424_vm7, %v5697_v18, %v4378_v2  ;;  %v8821_v44 = vrot.slane %v2486_v38, 5  ;;  %v2492_v55 = vrot.slane %v2490_v23, 4  ;;  %v6977_v38 = vld [vmem:[%s7163_s11 + $0xc8] sm:$0x1] }
 0x15a   : > { %v5549_v5 = vcombine.low %v2417_v33, %v2427_v58  ;;  %v2459_v13 = vor.u32 %v8644_v49, %v8642_v6  ;;  %v2472_v1 = vshll.u32 %v6973_v15, 16  ;;  %v4385_v35 = vrot.slane %v6974_v0, 5 }
 0x15b   : > { %v2506_v28 = vrot.slane %v2504_v25, 5  ;;  %v2441_v9 = vsel %vm7185_vm4, %v2436_v12, %v8778_v34  ;;  %v4382_v6 = vsel %vm7424_vm7, %v4380_v4, %v4381_v17  ;;  %v2469_v49 = vor.u32 %v2468_v22, %v8817_v54  ;;  %v5388_v25 = vld [vmem:[%s7163_s11 + $0xc0] sm:$0xe]  ;;  %v5389_v12 = vld [vmem:[%s7163_s11 + $0xcc] sm:$0xe] }
 0x15c   : > { %v2451_v57 = vsel %vm7185_vm4, %v2446_v63, %v2450_v30  ;;  %v2514_v59 = vshrl.u32 %v8672_v8, 16  ;;  %v5698_v34 = vrot.slane %v5387_v47, 9  ;;  %v2483_v26 = vor.u32 %v8669_v50, %v8661_v29  ;;  %v6978_v4 = vld [vmem:[%s7163_s11 + $0xd0] sm:$0xf] }
 0x15d   : > { %v2493_v56 = vor.u32 %v2492_v55, %v8821_v44  ;;  %v2496_v27 = vshll.u32 %v6976_v48, 16  ;;  %v5714_v43 = vcombine.low %v4379_v16, %v4382_v6  ;;  %v2460_v36 = vrot.slane %v2459_v13, 4 }
 0x15e   : > { %6240 = vmatmul.mubr.msk.bf16.vlgmr.msra.gmra.mrb[16].mxu1 %vm867_vm3, %v8770_v10  ;;  %6376 = vmatmul.mubr.msk.bf16.gmra.mrb[16].mxu0 %vm867_vm3, %v5711_v14  ;;  %v6975_v10 = vld [vmem:[%s7163_s11 + $0xc4] sm:$0xf]  ;;  %v2510_v14 = vshll.u32 %v8672_v8, 16  ;;  %v2474_v52 = vrot.slane %v2472_v1, 5  ;;  %v4387_v42 = vrot.slane %v4385_v35, 4  ;;  %v5550_v31 = vcombine.low %v2441_v9, %v2451_v57  ;;  %s208_s11 = sand.u32 1, %s7041_s13  }
 0x15f   : > { %6243 = vmatprep.mubr.msk.bf16.mxu1 %vm867_vm3, %v5548_v39  ;;  %6379 = vmatprep.mubr.msk.bf16.mxu0 %vm867_vm3, %v5712_v19  ;;  %v4392_v53 = vrot.slane %v6975_v10, 5  ;;  %v2470_v2 = vrot.slane %v2469_v49, 4  ;;  %v4388_v60 = vrot.slane %v8432_v61, 5  ;;  %v5699_v40 = vrot.slane %v5388_v25, 9  ;;  %s8979_s18 = sshll.u32 %s208_s11, 7  ;;  %s9109_s15 = scalar_lea.sflag [#allocation3], %s208_s11 }
 0x160   : > { %v4395_v8 = vrot.slane %v8441_v51, 5  ;;  %v2512_v62 = vrot.slane %v2510_v14, 5  ;;  %v2516_v7 = vrot.slane %v2514_v59, 4  ;;  %v2484_v29 = vrot.slane %v2483_v26, 4  ;;  %s8994_s19 = scalar_lea.vmem [#allocation2], %s8979_s18 }
 0x161   : > { %v4394_v37 = vrot.slane %v4392_v53, 4  ;;  %v2494_v50 = vrot.slane %v2493_v56, 4  ;;  %v2498_v20 = vrot.slane %v2496_v27, 5  ;;  %v2465_v41 = vsel %vm7185_vm4, %v2460_v36, %v8817_v54  ;;  %v8907_v27 = vld [vmem:[%s9157_s2] ss:$0 sm:$0xff]  ;;  %s5139_s23 = sshll.u32 %s8994_s19, 4  ;;  %s9103_s23 = int_to_ptr.vmem [resolvable:$true] %s5139_s23 }
 0x162   : > { %v4386_v33 = vsel %vm7424_vm7, %v5698_v34, %v4385_v35  ;;  %v2475_v61 = vsel %vm7185_vm4, %v2470_v2, %v2474_v52  ;;  %v4389_v51 = vsel %vm7424_vm7, %v4387_v42, %v4388_v60  ;;  %v2507_v18 = vor.u32 %v2506_v28, %v8693_v3  ;;  %s6979_s29 = scalar_lea.vmem %s9103_s23, 2048  ;;  %p6986_p1 = scmp.lt.s32.totalorder %s9103_s23, %s6984_s4 }
 0x163   : > { %v2520_v23 = vshll.u32 %v6977_v38, 16  ;;  %v4393_v58 = vsel %vm7424_vm7, %v5699_v40, %v4392_v53  ;;  %v4396_v21 = vsel %vm7424_vm7, %v4394_v37, %v4395_v8  ;;  %v2517_v24 = vor.u32 %v2516_v7, %v2512_v62  ;;  %p6980_p12 = scmp.ne.s32.totalorder %s9103_s23, %s6979_s29  ;;  %p6987_p2 = scmp.lt.s32.totalorder %s6985_s5, %s6979_s29 }
 0x164   : > { %v4399_v17 = vrot.slane %v6978_v4, 5  ;;  %v2489_v3 = vsel %vm7185_vm4, %v2484_v29, %v8821_v44  ;;  %v2499_v54 = vsel %vm7185_vm4, %v2494_v50, %v2498_v20  ;;  %v5551_v22 = vcombine.low %v2465_v41, %v2475_v61 }
 0x165   : > { %v5715_v39 = vcombine.low %v4386_v33, %v4389_v51  ;;  %v5716_v19 = vcombine.low %v4393_v58, %v4396_v21  ;;  %v2508_v63 = vrot.slane %v2507_v18, 4  ;;  %v2522_v30 = vrot.slane %v2520_v23, 5  ;;  %p6981_p13 = pnand %p6980_p12, %p7122_p4  ;;  %p6988_p3 = por %p6987_p2, %p6986_p1 }
 0x166   : > { %6244 = vmatmul.mubr.msk.bf16.gmra.mrb[20].mxu1 %vm867_vm3, %v5549_v5  ;;  %6380 = vmatmul.mubr.msk.bf16.gmra.mrb[20].mxu0 %vm867_vm3, %v5713_v45  ;;  %v5700_v45 = vrot.slane %v5389_v12, 9  ;;  %v5552_v16 = vcombine.low %v2489_v3, %v2499_v54  ;;  %v2518_v55 = vrot.slane %v2517_v24, 4  ;;  %v4401_v5 = vrot.slane %v4399_v17, 4 }
 0x167   : > { %6247 = vmatprep.mubr.msk.bf16.mxu1 %vm867_vm3, %v5550_v31  ;;  %6383 = vmatprep.mubr.msk.bf16.mxu0 %vm867_vm3, %v5714_v43  ;;  %v4402_v13 = vrot.slane %v8473_v46, 5  ;;  %v2513_v15 = vsel %vm7185_vm4, %v2508_v63, %v2512_v62  ;;  %p6982_p0 = pneg %p6981_p13 }
 0x168   : > { %v4400_v44 = vsel %vm7424_vm7, %v5700_v45, %v4399_v17  ;;  %v2523_v1 = vsel %vm7185_vm4, %v2518_v55, %v2522_v30 }
 0x169   : > { %v4403_v46 = vsel %vm7424_vm7, %v4401_v5, %v4402_v13  ;;  %v5553_v47 = vcombine.low %v2513_v15, %v2523_v1  ;;  %p6989_p5 = pnand %p6988_p3, %p6982_p0 }
 0x16a   : > { %v5717_v0 = vcombine.low %v4400_v44, %v4403_v46 }
 0x16e   : > { %6248 = vmatmul.mubr.msk.bf16.gmra.mrb[24].mxu1 %vm867_vm3, %v5551_v22  ;;  %6384 = vmatmul.mubr.msk.bf16.gmra.mrb[24].mxu0 %vm867_vm3, %v5715_v39 }
 0x16f   : > { %6251 = vmatprep.mubr.msk.bf16.mxu1 %vm867_vm3, %v5552_v16  ;;  %6387 = vmatprep.mubr.msk.bf16.mxu0 %vm867_vm3, %v5716_v19 }
 0x176   : > { %6252 = vmatmul.mubr.msk.bf16.gmra.mrb[28].mxu1 %vm867_vm3, %v5553_v47  ;;  %6388 = vmatmul.mubr.msk.bf16.gmra.mrb[28].mxu0 %vm867_vm3, %v5717_v0 }
 0x1f1   : > { %v6191_v35 = vpop.f32.mrb[0].mxu1 }
 0x1f2   : > { %v1981_v28 = vpop.f32.mrb[1].mxu1 }
 0x1f3   : > { %v6192_v9 = vpop.f32.mrb[2].mxu1 }
 0x1f4   : > { %v1984_v6 = vpop.f32.mrb[3].mxu1 }
 0x1f9   : > { %v6195_v49 = vpop.f32.mrb[4].mxu1 }
 0x1fa   : > { %v1997_v57 = vpop.f32.mrb[5].mxu1 }
 0x1fb   : > { %v6196_v25 = vpop.f32.mrb[6].mxu1 }
 0x1fc   : > { %v2000_v10 = vpop.f32.mrb[7].mxu1 }
 0x201   : > { %v6199_v53 = vpop.f32.mrb[8].mxu1 }
 0x202   : > { %v2013_v32 = vpop.f32.mrb[9].mxu1 }
 0x203   : > { %v6200_v14 = vpop.f32.mrb[10].mxu1 }
 0x204   : > { %v8894_v59 = vpop.f32.mrb[11].mxu1 }
 0x209   : > { %v8896_v11 = vpop.f32.mrb[12].mxu1 }
 0x20a   : > { %v8898_v34 = vpop.f32.mrb[13].mxu1 }
 0x20b   : > { %v8900_v26 = vpop.f32.mrb[14].mxu1 }
 0x20c   : > { %v8902_v56 = vpop.f32.mrb[15].mxu1 }
 0x211   : > { %v6361_v48 = vpop.f32.mrb[0].mxu0 }
 0x212   : > { %v6393_v43 = vadd.f32 %v6361_v48, %v6191_v35  ;;  %v4539_v36 = vpop.f32.mrb[1].mxu0 }
 0x213   : > { %v6394_v52 = vadd.f32 %v4539_v36, %v1981_v28  ;;  %v6362_v42 = vpop.f32.mrb[2].mxu0 }
 0x214   : > { %v8910_v31 = vadd.f32 %v6393_v43, %v8907_v27  ;;  %v6395_v2 = vadd.f32 %v6362_v42, %v6192_v9  ;;  %v4542_v60 = vpop.f32.mrb[3].mxu0 }
 0x215   : > { %v8913_v40 = vadd.f32 %v6394_v52, %v8907_v27  ;;  %v6396_v37 = vadd.f32 %v4542_v60, %v1984_v6 }
 0x216   : > { %v5737_v8 = vmul.f32 -1.442695, %v8910_v31  ;;  %v8917_v62 = vadd.f32 %v6395_v2, %v8907_v27 }
 0x217   : > { %v5735_v7 = vmul.f32 -1.442695, %v8913_v40  ;;  %v8921_v29 = vadd.f32 %v6396_v37, %v8907_v27 }
 0x218   : > { %6765 = vpow2.f32 %v5737_v8  ;;  %v5738_v50 = vmul.f32 -1.442695, %v8917_v62 }
 0x219   : > { %6767 = vpow2.f32 %v5735_v7  ;;  %v5736_v20 = vmul.f32 -1.442695, %v8921_v29  ;;  %v6365_v41 = vpop.f32.mrb[4].mxu0 }
 0x21a   : > { %6769 = vpow2.f32 %v5738_v50  ;;  %v6397_v33 = vadd.f32 %v6365_v41, %v6195_v49  ;;  %v4555_v61 = vpop.f32.mrb[5].mxu0 }
 0x21b   : > { %6771 = vpow2.f32 %v5736_v20  ;;  %v6398_v51 = vadd.f32 %v4555_v61, %v1997_v57  ;;  %v6366_v18 = vpop.f32.mrb[6].mxu0 }
 0x21c   : > { %v8926_v38 = vadd.f32 %v6397_v33, %v8907_v27  ;;  %v6399_v23 = vadd.f32 %v6366_v18, %v6196_v25  ;;  %v4558_v58 = vpop.f32.mrb[7].mxu0 }
 0x21d   : > { %v8929_v21 = vadd.f32 %v6398_v51, %v8907_v27  ;;  %v6400_v24 = vadd.f32 %v4558_v58, %v2000_v10 }
 0x21e   : > { %v5741_v12 = vmul.f32 -1.442695, %v8926_v38  ;;  %v8933_v4 = vadd.f32 %v6399_v23, %v8907_v27 }
 0x21f   : > { %v5739_v17 = vmul.f32 -1.442695, %v8929_v21  ;;  %v8937_v3 = vadd.f32 %v6400_v24, %v8907_v27 }
 0x220   : > { %6773 = vpow2.f32 %v5741_v12  ;;  %v5742_v54 = vmul.f32 -1.442695, %v8933_v4 }
 0x221   : > { %6775 = vpow2.f32 %v5739_v17  ;;  %v5740_v22 = vmul.f32 -1.442695, %v8937_v3  ;;  %v6369_v39 = vpop.f32.mrb[8].mxu0 }
 0x222   : > { %v6766_v19 = vpop.eup %6765  ;;  %6777 = vpow2.f32 %v5742_v54  ;;  %v6401_v63 = vadd.f32 %v6369_v39, %v6199_v53  ;;  %v4571_v30 = vpop.f32.mrb[9].mxu0 }
 0x223   : > { %v6768_v45 = vpop.eup %6767  ;;  %v4835_v16 = vadd.f32 1.0, %v6766_v19  ;;  %6779 = vpow2.f32 %v5740_v22  ;;  %v6402_v55 = vadd.f32 %v4571_v30, %v2013_v32  ;;  %v6370_v5 = vpop.f32.mrb[10].mxu0 }
 0x224   : > { %v6770_v13 = vpop.eup %6769  ;;  %v4833_v44 = vadd.f32 1.0, %v6768_v45  ;;  %v8942_v15 = vadd.f32 %v6401_v63, %v8907_v27  ;;  %v6403_v1 = vadd.f32 %v6370_v5, %v6200_v14  ;;  %v4574_v46 = vpop.f32.mrb[11].mxu0 }
 0x225   : > { %v6772_v47 = vpop.eup %6771  ;;  %6781 = vrcp.f32 %v4835_v16  ;;  %v4836_v0 = vadd.f32 1.0, %v6770_v13  ;;  %v8945_v35 = vadd.f32 %v6402_v55, %v8907_v27  ;;  %v6404_v28 = vadd.f32 %v4574_v46, %v8894_v59 }
 0x226   : > { %6783 = vrcp.f32 %v4833_v44  ;;  %v4834_v9 = vadd.f32 1.0, %v6772_v47  ;;  %v5745_v6 = vmul.f32 -1.442695, %v8942_v15  ;;  %v8950_v49 = vadd.f32 %v6403_v1, %v8907_v27 }
 0x227   : > { %6785 = vrcp.f32 %v4836_v0  ;;  %v5743_v57 = vmul.f32 -1.442695, %v8945_v35  ;;  %v8954_v25 = vadd.f32 %v6404_v28, %v8907_v27 }
 0x228   : > { %6787 = vrcp.f32 %v4834_v9  ;;  %v5746_v10 = vmul.f32 -1.442695, %v8950_v49 }
 0x229   : > { %6789 = vpow2.f32 %v5745_v6  ;;  %v5744_v53 = vmul.f32 -1.442695, %v8954_v25  ;;  %v6373_v32 = vpop.f32.mrb[12].mxu0 }
 0x22a   : > { %v6774_v14 = vpop.eup %6773  ;;  %6791 = vpow2.f32 %v5743_v57  ;;  %v6405_v59 = vadd.f32 %v6373_v32, %v8896_v11  ;;  %v4587_v48 = vpop.f32.mrb[13].mxu0 }
 0x22b   : > { %v6776_v43 = vpop.eup %6775  ;;  %v4839_v36 = vadd.f32 1.0, %v6774_v14  ;;  %6793 = vpow2.f32 %v5746_v10  ;;  %v6406_v52 = vadd.f32 %v4587_v48, %v8898_v34  ;;  %v6374_v42 = vpop.f32.mrb[14].mxu0 }
 0x22c   : > { %v6778_v2 = vpop.eup %6777  ;;  %v4837_v60 = vadd.f32 1.0, %v6776_v43  ;;  %6795 = vpow2.f32 %v5744_v53  ;;  %v8961_v37 = vadd.f32 %v6405_v59, %v8907_v27  ;;  %v6407_v8 = vadd.f32 %v6374_v42, %v8900_v26  ;;  %v4590_v7 = vpop.f32.mrb[15].mxu0 }
 0x22d   : > { %v6780_v50 = vpop.eup %6779  ;;  %6797 = vrcp.f32 %v4839_v36  ;;  %v4840_v11 = vadd.f32 1.0, %v6778_v2  ;;  %v8966_v20 = vadd.f32 %v6406_v52, %v8907_v27  ;;  %v6408_v34 = vadd.f32 %v4590_v7, %v8902_v56 }
 0x22e   : > { %6799 = vrcp.f32 %v4837_v60  ;;  %v4838_v41 = vadd.f32 1.0, %v6780_v50  ;;  %v5749_v33 = vmul.f32 -1.442695, %v8961_v37  ;;  %v8971_v61 = vadd.f32 %v6407_v8, %v8907_v27 }
 0x22f   : > { %v6782_v51 = vpop.eup %6781  ;;  %6801 = vrcp.f32 %v4840_v11  ;;  %v5747_v26 = vmul.f32 -1.442695, %v8966_v20  ;;  %v8975_v18 = vadd.f32 %v6408_v34, %v8907_v27 }
 0x230   : > { %v6784_v23 = vpop.eup %6783  ;;  %6803 = vrcp.f32 %v4838_v41  ;;  %v5750_v56 = vmul.f32 -1.442695, %v8971_v61  ;;  %v4931_v22 = vmul.f32 %v6782_v51, %v8910_v31 }
 0x231   : > { %v6786_v58 = vpop.eup %6785  ;;  %6805 = vpow2.f32 %v5749_v33  ;;  %v5748_v24 = vmul.f32 -1.442695, %v8975_v18  ;;  %v6241_v12 = vpop.f32.mrb[16].mxu1  ;;  %v4929_v16 = vmul.f32 %v6784_v23, %v8913_v40 }
 0x232   : > { %v6377_v17 = vpop.f32.mrb[16].mxu0  ;;  %v6788_v54 = vpop.eup %6787  ;;  %v4932_v39 = vmul.f32 %v6786_v58, %v8917_v62  ;;  %6807 = vpow2.f32 %v5747_v26 }
 0x233   : > { %v6409_v19 = vadd.f32 %v6377_v17, %v6241_v12  ;;  %v2723_v63 = vpop.f32.mrb[17].mxu1  ;;  %v4603_v30 = vpop.f32.mrb[17].mxu0  ;;  %v4930_v55 = vmul.f32 %v6788_v54, %v8921_v29  ;;  %6809 = vpow2.f32 %v5750_v56 }
 0x234   : > { %v6790_v45 = vpop.eup %6789  ;;  %v6410_v5 = vadd.f32 %v4603_v30, %v2723_v63  ;;  %v6242_v13 = vpop.f32.mrb[18].mxu1  ;;  %v5845_v46 = vpack.c.bf16 %v4932_v39, %v4931_v22  ;;  %6811 = vpow2.f32 %v5748_v24 }
 0x235   : > { %v6378_v44 = vpop.f32.mrb[18].mxu0  ;;  %v6792_v1 = vpop.eup %6791  ;;  %v4843_v47 = vadd.f32 1.0, %v6790_v45  ;;  %v8988_v31 = vadd.f32 %v6409_v19, %v8907_v27  ;;  %v5840_v9 = vpack.c.bf16 %v4930_v55, %v4929_v16 }
 0x236   : > { %v2726_v62 = vpop.f32.mrb[19].mxu1  ;;  %v4606_v0 = vpop.f32.mrb[19].mxu0  ;;  %v4841_v6 = vadd.f32 1.0, %v6792_v1  ;;  %v8991_v40 = vadd.f32 %v6410_v5, %v8907_v27  ;;  %v6411_v29 = vadd.f32 %v6378_v44, %v6242_v13  ;;  %5917 = vst [vmem:[%s8994_s19 + $0x8] sm:$0xff] %v5845_v46  }
 0x237   : > { %v6794_v28 = vpop.eup %6793  ;;  %6813 = vrcp.f32 %v4843_v47  ;;  %v5753_v53 = vmul.f32 -1.442695, %v8988_v31  ;;  %v6412_v32 = vadd.f32 %v4606_v0, %v2726_v62  ;;  %5841 = vst [vmem:[%s8994_s19] sm:$0xff] %v5840_v9  }
 0x238   : > { %v6796_v57 = vpop.eup %6795  ;;  %v4844_v10 = vadd.f32 1.0, %v6794_v28  ;;  %6815 = vrcp.f32 %v4841_v6  ;;  %v5751_v48 = vmul.f32 -1.442695, %v8991_v40  ;;  %v9001_v43 = vadd.f32 %v6411_v29, %v8907_v27 }
 0x239   : > { %v6798_v14 = vpop.eup %6797  ;;  %v4842_v59 = vadd.f32 1.0, %v6796_v57  ;;  %v9004_v52 = vadd.f32 %v6412_v32, %v8907_v27  ;;  %v6245_v8 = vpop.f32.mrb[20].mxu1 }
 0x23a   : > { %v6800_v36 = vpop.eup %6799  ;;  %6817 = vrcp.f32 %v4844_v10  ;;  %v4935_v2 = vmul.f32 %v6798_v14, %v8926_v38  ;;  %v5754_v60 = vmul.f32 -1.442695, %v9001_v43  ;;  %v6381_v7 = vpop.f32.mrb[20].mxu0 }
 0x23b   : > { %v6802_v42 = vpop.eup %6801  ;;  %6819 = vrcp.f32 %v4842_v59  ;;  %v5752_v34 = vmul.f32 -1.442695, %v9004_v52  ;;  %v6413_v41 = vadd.f32 %v6381_v7, %v6245_v8  ;;  %v2739_v33 = vpop.f32.mrb[21].mxu1  ;;  %v4933_v23 = vmul.f32 %v6800_v36, %v8929_v21 }
 0x23c   : > { %v6804_v50 = vpop.eup %6803  ;;  %v4936_v11 = vmul.f32 %v6802_v42, %v8933_v4  ;;  %6821 = vpow2.f32 %v5753_v53  ;;  %v4619_v51 = vpop.f32.mrb[21].mxu0 }
 0x23d   : > { %v6806_v26 = vpop.eup %6805  ;;  %v4934_v56 = vmul.f32 %v6804_v50, %v8937_v3  ;;  %6823 = vpow2.f32 %v5751_v48  ;;  %v6414_v38 = vadd.f32 %v4619_v51, %v2739_v33  ;;  %v6246_v58 = vpop.f32.mrb[22].mxu1  ;;  %v9013_v4 = vadd.f32 %v6413_v41, %v8907_v27 }
 0x23e   : > { %v6382_v24 = vpop.f32.mrb[22].mxu0  ;;  %v6808_v12 = vpop.eup %6807  ;;  %v5855_v17 = vpack.c.bf16 %v4936_v11, %v4935_v2  ;;  %v4847_v54 = vadd.f32 1.0, %v6806_v26  ;;  %6825 = vpow2.f32 %v5754_v60 }
 0x23f   : > { %v2742_v22 = vpop.f32.mrb[23].mxu1  ;;  %v4622_v39 = vpop.f32.mrb[23].mxu0  ;;  %v5850_v63 = vpack.c.bf16 %v4934_v56, %v4933_v23  ;;  %v4845_v21 = vadd.f32 1.0, %v6808_v12  ;;  %6827 = vpow2.f32 %v5752_v34  ;;  %v9016_v3 = vadd.f32 %v6414_v38, %v8907_v27 }
 0x240   : > { %v6810_v19 = vpop.eup %6809  ;;  %5919 = vst [vmem:[%s8994_s19 + $0x18] sm:$0xff] %v5855_v17   ;;  %6829 = vrcp.f32 %v4847_v54  ;;  %v5757_v16 = vmul.f32 -1.442695, %v9013_v4  ;;  %v6415_v55 = vadd.f32 %v6382_v24, %v6246_v58  ;;  %v6416_v44 = vadd.f32 %v4622_v39, %v2742_v22 }
 0x241   : > { %v6812_v30 = vpop.eup %6811  ;;  %v4848_v45 = vadd.f32 1.0, %v6810_v19  ;;  %5918 = vst [vmem:[%s8994_s19 + $0x10] sm:$0xff] %v5850_v63   ;;  %6831 = vrcp.f32 %v4845_v21  ;;  %v5755_v13 = vmul.f32 -1.442695, %v9016_v3  ;;  %v6249_v28 = vpop.f32.mrb[24].mxu1 }
 0x242   : > { %v4846_v5 = vadd.f32 1.0, %v6812_v30  ;;  %v6814_v1 = vpop.eup %6813  ;;  %v9023_v46 = vadd.f32 %v6415_v55, %v8907_v27  ;;  %v9027_v0 = vadd.f32 %v6416_v44, %v8907_v27  ;;  %v6385_v9 = vpop.f32.mrb[24].mxu0 }
 0x243   : > { %6833 = vrcp.f32 %v4848_v45  ;;  %v6816_v47 = vpop.eup %6815  ;;  %v4939_v62 = vmul.f32 %v6814_v1, %v8942_v15  ;;  %v6417_v10 = vadd.f32 %v6385_v9, %v6249_v28  ;;  %v2755_v53 = vpop.f32.mrb[25].mxu1 }
 0x244   : > { %6835 = vrcp.f32 %v4846_v5  ;;  %v6818_v6 = vpop.eup %6817  ;;  %v4937_v29 = vmul.f32 %v6816_v47, %v8945_v35  ;;  %v5758_v57 = vmul.f32 -1.442695, %v9023_v46  ;;  %v4635_v32 = vpop.f32.mrb[25].mxu0  ;;  %v5756_v15 = vmul.f32 -1.442695, %v9027_v0 }
 0x245   : > { %6837 = vpow2.f32 %v5757_v16  ;;  %v6820_v14 = vpop.eup %6819  ;;  %v4940_v59 = vmul.f32 %v6818_v6, %v8950_v49  ;;  %v6418_v48 = vadd.f32 %v4635_v32, %v2755_v53  ;;  %v6250_v36 = vpop.f32.mrb[26].mxu1  ;;  %v9035_v35 = vadd.f32 %v6417_v10, %v8907_v27 }
 0x246   : > { %6839 = vpow2.f32 %v5755_v13  ;;  %v6386_v42 = vpop.f32.mrb[26].mxu0  ;;  %v6822_v2 = vpop.eup %6821  ;;  %v4938_v60 = vmul.f32 %v6820_v14, %v8954_v25 }
 0x247   : > { %6841 = vpow2.f32 %v5758_v57  ;;  %v6419_v8 = vadd.f32 %v6386_v42, %v6250_v36  ;;  %v2758_v7 = vpop.f32.mrb[27].mxu1  ;;  %v4638_v50 = vpop.f32.mrb[27].mxu0  ;;  %v5865_v49 = vpack.c.bf16 %v4940_v59, %v4939_v62  ;;  %v4851_v34 = vadd.f32 1.0, %v6822_v2 }
 0x248   : > { %v6824_v11 = vpop.eup %6823  ;;  %6843 = vpow2.f32 %v5756_v15  ;;  %v9038_v41 = vadd.f32 %v6418_v48, %v8907_v27  ;;  %v5860_v51 = vpack.c.bf16 %v4938_v60, %v4937_v29  ;;  %v5761_v38 = vmul.f32 -1.442695, %v9035_v35 }
 0x249   : > { %v6826_v33 = vpop.eup %6825  ;;  %v4849_v26 = vadd.f32 1.0, %v6824_v11  ;;  %v9041_v25 = vadd.f32 %v6419_v8, %v8907_v27  ;;  %5921 = vst [vmem:[%s8994_s19 + $0x28] sm:$0xff] %v5865_v49   ;;  %6845 = vrcp.f32 %v4851_v34  ;;  %v6420_v58 = vadd.f32 %v4638_v50, %v2758_v7  ;;  %v6253_v19 = vpop.f32.mrb[28].mxu1 }
 0x24a   : > { %v6828_v23 = vpop.eup %6827  ;;  %v4852_v56 = vadd.f32 1.0, %v6826_v33  ;;  %5920 = vst [vmem:[%s8994_s19 + $0x20] sm:$0xff] %v5860_v51   ;;  %v5759_v17 = vmul.f32 -1.442695, %v9038_v41  ;;  %v6389_v63 = vpop.f32.mrb[28].mxu0 }
 0x24b   : > { %v6830_v24 = vpop.eup %6829  ;;  %6847 = vrcp.f32 %v4849_v26  ;;  %v4850_v12 = vadd.f32 1.0, %v6828_v23  ;;  %v5762_v22 = vmul.f32 -1.442695, %v9041_v25  ;;  %v9049_v39 = vadd.f32 %v6420_v58, %v8907_v27  ;;  %v2771_v55 = vpop.f32.mrb[29].mxu1 }
 0x24c   : > { %v6832_v54 = vpop.eup %6831  ;;  %6849 = vrcp.f32 %v4852_v56  ;;  %v4943_v30 = vmul.f32 %v6830_v24, %v8961_v37  ;;  %v6421_v16 = vadd.f32 %v6389_v63, %v6253_v19  ;;  %v4651_v5 = vpop.f32.mrb[29].mxu0 }
 0x24d   : > { %v6834_v21 = vpop.eup %6833  ;;  %v4941_v45 = vmul.f32 %v6832_v54, %v8966_v20  ;;  %6851 = vrcp.f32 %v4850_v12  ;;  %v5760_v1 = vmul.f32 -1.442695, %v9049_v39  ;;  %v6422_v47 = vadd.f32 %v4651_v5, %v2771_v55  ;;  %v6254_v62 = vpop.f32.mrb[30].mxu1 }
 0x24e   : > { %v6836_v13 = vpop.eup %6835  ;;  %v4944_v44 = vmul.f32 %v6834_v21, %v8971_v61  ;;  %6853 = vpow2.f32 %v5761_v38  ;;  %v6390_v28 = vpop.f32.mrb[30].mxu0  ;;  %v9057_v37 = vadd.f32 %v6421_v16, %v8907_v27 }
 0x24f   : > { %v6838_v9 = vpop.eup %6837  ;;  %v4942_v6 = vmul.f32 %v6836_v13, %v8975_v18  ;;  %6855 = vpow2.f32 %v5759_v17  ;;  %v6423_v20 = vadd.f32 %v6390_v28, %v6254_v62  ;;  %v2774_v29 = vpop.f32.mrb[31].mxu1  ;;  %v9060_v32 = vadd.f32 %v6422_v47, %v8907_v27 }
 0x250   : > { %v4654_v57 = vpop.f32.mrb[31].mxu0  ;;  %v6840_v10 = vpop.eup %6839  ;;  %v5875_v61 = vpack.c.bf16 %v4944_v44, %v4943_v30  ;;  %v4855_v53 = vadd.f32 1.0, %v6838_v9  ;;  %6857 = vpow2.f32 %v5762_v22  ;;  %v5765_v36 = vmul.f32 -1.442695, %v9057_v37 }
 0x251   : > { %v6842_v14 = vpop.eup %6841  ;;  %v5870_v59 = vpack.c.bf16 %v4942_v6, %v4941_v45  ;;  %v4853_v15 = vadd.f32 1.0, %v6840_v10  ;;  %6859 = vpow2.f32 %v5760_v1  ;;  %v9065_v42 = vadd.f32 %v6423_v20, %v8907_v27 }
 0x252   : > { %v6844_v18 = vpop.eup %6843  ;;  %5923 = vst [vmem:[%s8994_s19 + $0x38] sm:$0xff] %v5875_v61   ;;  %6861 = vrcp.f32 %v4855_v53  ;;  %v4856_v48 = vadd.f32 1.0, %v6842_v14  ;;  %v5763_v60 = vmul.f32 -1.442695, %v9060_v32  ;;  %v6424_v8 = vadd.f32 %v4654_v57, %v2774_v29 }
 0x253   : > { %5922 = vst [vmem:[%s8994_s19 + $0x30] sm:$0xff] %v5870_v59   ;;  %6863 = vrcp.f32 %v4853_v15  ;;  %v4854_v2 = vadd.f32 1.0, %v6844_v18  ;;  %v6846_v7 = vpop.eup %6845  ;;  %v5766_v50 = vmul.f32 -1.442695, %v9065_v42 }
 0x254   : > { %6865 = vrcp.f32 %v4856_v48  ;;  %v9071_v49 = vadd.f32 %v6424_v8, %v8907_v27  ;;  %v4947_v51 = vmul.f32 %v6846_v7, %v8988_v31 }
 0x255   : > { %v6848_v11 = vpop.eup %6847  ;;  %6867 = vrcp.f32 %v4854_v2 }
 0x256   : > { %v6850_v34 = vpop.eup %6849  ;;  %6869 = vpow2.f32 %v5765_v36  ;;  %v5764_v23 = vmul.f32 -1.442695, %v9071_v49  ;;  %v4945_v38 = vmul.f32 %v6848_v11, %v8991_v40 }
 0x257   : > { %v6852_v33 = vpop.eup %6851  ;;  %v4948_v26 = vmul.f32 %v6850_v34, %v9001_v43  ;;  %6871 = vpow2.f32 %v5763_v60 }
 0x258   : > { %v6854_v56 = vpop.eup %6853  ;;  %v4946_v58 = vmul.f32 %v6852_v33, %v9004_v52  ;;  %6873 = vpow2.f32 %v5766_v50 }
 0x259   : > { %v6856_v27 = vpop.eup %6855  ;;  %v5885_v24 = vpack.c.bf16 %v4948_v26, %v4947_v51  ;;  %v4859_v12 = vadd.f32 1.0, %v6854_v56  ;;  %6875 = vpow2.f32 %v5764_v23 }
 0x25a   : > { %v6858_v17 = vpop.eup %6857  ;;  %v5880_v54 = vpack.c.bf16 %v4946_v58, %v4945_v38  ;;  %v4857_v31 = vadd.f32 1.0, %v6856_v27 }
 0x25b   : > { %v6860_v22 = vpop.eup %6859  ;;  %5925 = vst [vmem:[%s8994_s19 + $0x48] sm:$0xff] %v5885_v24   ;;  %6877 = vrcp.f32 %v4859_v12  ;;  %v4860_v43 = vadd.f32 1.0, %v6858_v17 }
 0x25c   : > { %v6862_v19 = vpop.eup %6861  ;;  %5924 = vst [vmem:[%s8994_s19 + $0x40] sm:$0xff] %v5880_v54   ;;  %6879 = vrcp.f32 %v4857_v31  ;;  %v4858_v63 = vadd.f32 1.0, %v6860_v22 }
 0x25d   : > { %v6864_v21 = vpop.eup %6863  ;;  %6881 = vrcp.f32 %v4860_v43  ;;  %v4951_v30 = vmul.f32 %v6862_v19, %v9013_v4 }
 0x25e   : > { %v6866_v40 = vpop.eup %6865  ;;  %6883 = vrcp.f32 %v4858_v63  ;;  %v4949_v55 = vmul.f32 %v6864_v21, %v9016_v3 }
 0x25f   : > { %v6868_v52 = vpop.eup %6867  ;;  %v4952_v45 = vmul.f32 %v6866_v40, %v9023_v46 }
 0x260   : > { %v6870_v16 = vpop.eup %6869  ;;  %v4950_v5 = vmul.f32 %v6868_v52, %v9027_v0 }
 0x261   : > { %v6872_v13 = vpop.eup %6871  ;;  %v5895_v44 = vpack.c.bf16 %v4952_v45, %v4951_v30  ;;  %v4863_v1 = vadd.f32 1.0, %v6870_v16 }
 0x262   : > { %v6874_v47 = vpop.eup %6873  ;;  %v5890_v62 = vpack.c.bf16 %v4950_v5, %v4949_v55  ;;  %v4861_v28 = vadd.f32 1.0, %v6872_v13 }
 0x263   : > { %v6876_v9 = vpop.eup %6875  ;;  %5927 = vst [vmem:[%s8994_s19 + $0x58] sm:$0xff] %v5895_v44   ;;  %6885 = vrcp.f32 %v4863_v1  ;;  %v4864_v6 = vadd.f32 1.0, %v6874_v47 }
 0x264   : > { %5926 = vst [vmem:[%s8994_s19 + $0x50] sm:$0xff] %v5890_v62   ;;  %6887 = vrcp.f32 %v4861_v28  ;;  %v4862_v4 = vadd.f32 1.0, %v6876_v9 }
 0x265   : > { %v6878_v46 = vpop.eup %6877  ;;  %6889 = vrcp.f32 %v4864_v6 }
 0x266   : > { %v6880_v3 = vpop.eup %6879  ;;  %6891 = vrcp.f32 %v4862_v4  ;;  %v4955_v29 = vmul.f32 %v6878_v46, %v9035_v35 }
 0x267   : > { %v6882_v0 = vpop.eup %6881  ;;  %v4953_v10 = vmul.f32 %v6880_v3, %v9038_v41 }
 0x268   : > { %v6884_v20 = vpop.eup %6883  ;;  %v4956_v57 = vmul.f32 %v6882_v0, %v9041_v25 }
 0x269   : > { %v4954_v61 = vmul.f32 %v6884_v20, %v9049_v39 }
 0x26a   : > { %v5905_v53 = vpack.c.bf16 %v4956_v57, %v4955_v29 }
 0x26b   : > { %v5900_v14 = vpack.c.bf16 %v4954_v61, %v4953_v10 }
 0x26c   : > { %5929 = vst [vmem:[%s8994_s19 + $0x68] sm:$0xff] %v5905_v53  }
 0x26d   : > { %v6886_v59 = vpop.eup %6885  ;;  %5928 = vst [vmem:[%s8994_s19 + $0x60] sm:$0xff] %v5900_v14  }
 0x26e   : > { %v6888_v15 = vpop.eup %6887  ;;  %v4959_v25 = vmul.f32 %v6886_v59, %v9057_v37 }
 0x26f   : > { %v6890_v18 = vpop.eup %6889  ;;  %v4957_v39 = vmul.f32 %v6888_v15, %v9060_v32 }
 0x270   : > { %v6892_v35 = vpop.eup %6891  ;;  %v4960_v41 = vmul.f32 %v6890_v18, %v9065_v42 }
 0x271   : > { %v4958_v48 = vmul.f32 %v6892_v35, %v9071_v49 }
 0x272   : > { %v5915_v36 = vpack.c.bf16 %v4960_v41, %v4959_v25 }
 0x273   : > { %v5910_v2 = vpack.c.bf16 %v4958_v48, %v4957_v39 }
 0x274   : > { %5931 = vst [vmem:[%s8994_s19 + $0x78] sm:$0xff] %v5915_v36  }
 0x275   : > { %5930 = vst [vmem:[%s8994_s19 + $0x70] sm:$0xff] %v5910_v2  }
 0x276   : > { %6992 = shalt.err (!%p6989_p5)
}
 0x277   : > { %s6993_s6 = scalar_lea.hbm %s9101_s28, 2048  ;;  %s6997_s9 = scalar_lea.hbm %s9158_s3, 4096 }
 0x278   : > { %p6994_p6 = scmp.ne.s32.totalorder %s9101_s28, %s6993_s6  ;;  %p6998_p10 = scmp.lt.u32.totalorder %s9101_s28, %s9158_s3 }
 0x279   : > { %p6999_p11 = scmp.lt.u32.totalorder %s6997_s9, %s6993_s6  ;;  %p7001_p13 = scmp.lt.u32.totalorder %s6993_s6, %s9101_s28 }
 0x27a   : > { %p6995_p7 = pnand %p6994_p6, %p7122_p4 }
 0x27b   : > { %p7000_p12 = por %p6999_p11, %p6998_p10 }
 0x27c   : > { %p6996_p9 = pneg %p6995_p7 }
 0x27d   : > { %p7002_p0 = por %p7001_p13, %p7000_p12 }
 0x27f   : > { %p7003_p1 = pnand %p7002_p0, %p6996_p9 }
 0x281   : > { %7006 = shalt.err (!%p7003_p1)
}
 0x282   : > { %s7060_s18 = smov 64   ;;  %s7061_s19 = smov 4  }
 0x283   : > { %6660 = dma.vmem_to_hbm [thread:$0]  (%p7122_p4), %s9103_s23, 2048, %s9101_s28, %s9109_s15, %s7060_s18, %s7060_s18, %s7061_s19  }
 0x284 PF: > { %p6666_p2 = scmp.ge.s32.totalorder %s7057_s17, 2  ;;  %s5154_s21 = sand.u32 1, %s7037_s12  }
 0x285   : > { %s5155_s26 = scalar_lea.sflag [#allocation3], %s5154_s21 }
 0x286   : > { %p6663_p3 = pnand %p6666_p2, %p7129_p8 }
 0x288   : > { %7032 = dma.done.wait (!%p6663_p3), %s5155_s26, 2048  }
 0x289   : > { %7034 = vsyncadd (!%p6663_p3), %s5155_s26, 4294965248  ;;  %s16_s17 = sadd.s32 1, %s7057_s17   ;;  %s9225_s12 = smov %s7041_s13 }
 0x28a   : > { %p13_p5 = scmp.ge.s32.totalorder %s16_s17, 4   ;;  %s9226_s13 = smov %s7045_s14 }
 0x28b   : > { %s9227_s14 = smov %s7135_s25  ;;  %s9228_s15 = smov %s7053_s16 }
 0x28c   : > { %s9229_s16 = smov %s9231_s20  ;;  %15 = sbr.rel (!%p13_p5) target bundleno = 4 (0x4), region = 84 }
 0x293   :  { %5160 = vsyncpa [#allocation3], 1 }
 0x294   :  { %5162 = vsyncpa [#allocation3 + $0x1], 1 }

</bundles_post_ra>
